<compile_context>
chip_gen: v7x
topology: tpu7x:2x2x1
jax: 0.10.0
libtpu: 0.0.40
codegen_flags: <defaults>
</compile_context>

<pallas_src>
import functools

import numpy as np
import jax
import jax.numpy as jnp
from jax import lax
from jax.experimental import pallas as pl
from jax.experimental.pallas import tpu as pltpu

LANE_BLK = 128  # one lane-tile per LSTM gate (i, f, o, g each padded to 128 lanes)


def _round8(n):
    return ((n + 7) // 8) * 8


def _slab_layout(hidden):
    """Static row offsets of the packed parameter slab (shared by packer and kernel)."""
    rows = dict(
        b_comb=0, gscale=1, goffset=2,      # (1, 4*LANE_BLK) rows
        b1=3, g1=4, beta1=5, w2t=6,         # (1, M) rows (cols 0:M)
        b2=7, g2=8, beta2=9,                # scalars at lane 0
        w_comb=16,                          # 2 rows, 8-aligned section start
        w_hh=24,                            # H rows, 8-aligned section start
    )
    rows["w1"] = rows["w_hh"] + _round8(hidden)
    rows["total"] = rows["w1"] + _round8(hidden)
    return rows


def discriminator_kernel(x_ref, p_ref, mask_ref, out_ref, zx_ref, *,
                         seq_len, batch_pad, n_valid, hidden, mlp):
    H, M, B, S = hidden, mlp, batch_pad, seq_len
    L = LANE_BLK
    R = _slab_layout(H)

    # ---- Time-parallel input projection, hoisted off the serial path ----
    # One (S*B, 2) @ (2, 128) matmul per gate block, written straight into VMEM scratch
    # so the unrolled recurrence only loads (B, 512) per step (bounded vreg pressure).
    for blk in range(4):
        lo = blk * L
        zx_ref[:, lo:lo + L] = (
            jnp.dot(x_ref[...], p_ref[R["w_comb"]:R["w_comb"] + 2, lo:lo + L],
                    preferred_element_type=jnp.float32)
            + p_ref[R["b_comb"]:R["b_comb"] + 1, lo:lo + L])

    # ---- Recurrent weights and post-tanh affine lane constants (hoisted) ----
    w_hh = p_ref[R["w_hh"]:R["w_hh"] + H, :]          # (H, 4L), gate-padded, 0.5-folded
    g_scale = p_ref[R["gscale"]:R["gscale"] + 1, :]   # 0.5 on i/f/o blocks, 1.0 on g
    g_off = p_ref[R["goffset"]:R["goffset"] + 1, :]   # 0.5 on i/f/o blocks, 0.0 on g

    # ---- Serial LSTM recurrence (statically unrolled, S is compile-time) ----
    h = jnp.zeros((B, H), jnp.float32)
    c = jnp.zeros((B, H), jnp.float32)
    for t in range(S):
        z = zx_ref[t * B:(t + 1) * B, :] + jnp.dot(
            h, w_hh, preferred_element_type=jnp.float32)          # (B, 4L)
        # Single full-width tanh + lane-constant affine:
        #   i/f/o blocks were pre-scaled by 0.5, so 0.5*tanh(z)+0.5 == sigmoid(orig);
        #   g block keeps scale 1 / offset 0 -> tanh(orig).
        gates = jnp.tanh(z) * g_scale + g_off
        # Each gate lives in its own 128-lane block -> tile-aligned slices, no lane moves.
        ig = gates[:, 0 * L:0 * L + H]
        fg = gates[:, 1 * L:1 * L + H]
        og = gates[:, 2 * L:2 * L + H]
        gg = gates[:, 3 * L:3 * L + H]
        c = fg * c + ig * gg
        h = og * jnp.tanh(c)

    # ---- real_classifier: Linear -> BN(batch stats, masked) -> ReLU, twice ----
    eps = jnp.float32(1e-5)
    inv_n = jnp.float32(1.0 / n_valid)
    mask = mask_ref[...]                                           # (B, 1); 1.0 = real row

    def bn_relu(y, gamma, beta):
        # Masked, two-pass, biased variance (training-mode BatchNorm semantics).
        m = jnp.sum(y * mask, axis=0, keepdims=True) * inv_n
        d = (y - m) * mask
        v = jnp.sum(d * d, axis=0, keepdims=True) * inv_n
        return jnp.maximum((y - m) * lax.rsqrt(v + eps) * gamma + beta, 0.0)

    w1 = p_ref[R["w1"]:R["w1"] + H, 0:M]
    b1 = p_ref[R["b1"]:R["b1"] + 1, 0:M]
    g1 = p_ref[R["g1"]:R["g1"] + 1, 0:M]
    beta1 = p_ref[R["beta1"]:R["beta1"] + 1, 0:M]
    y1 = jnp.dot(h, w1, preferred_element_type=jnp.float32) + b1
    y1 = bn_relu(y1, g1, beta1)                                    # (B, M)

    # Final Linear(M, 1) as a row-broadcast multiply + lane reduction (w2 packed as a row).
    w2t = p_ref[R["w2t"]:R["w2t"] + 1, 0:M]
    b2 = p_ref[R["b2"]:R["b2"] + 1, 0:1]
    g2 = p_ref[R["g2"]:R["g2"] + 1, 0:1]
    beta2 = p_ref[R["beta2"]:R["beta2"] + 1, 0:1]
    y2 = jnp.sum(y1 * w2t, axis=-1, keepdims=True) + b2            # (B, 1)
    out_ref[...] = bn_relu(y2, g2, beta2)


def pack_params(p):
    """Offline weight prep: gate reorder, 0.5-fold, gate-block padding, single slab."""
    H = int(p["w_hh"].shape[0])
    M = int(p["w1"].shape[1])
    L = LANE_BLK
    assert H <= L, "hidden_dim must fit in one 128-lane gate block"
    assert M <= 4 * L, "mlp_dim must fit in the slab width"
    R = _slab_layout(H)

    def to_np(a):
        return np.asarray(a, np.float32)

    # PyTorch LSTM gate order [i, f, g, o] -> [i, f, o, g] (sigmoid gates contiguous).
    perm = np.concatenate([np.arange(0, 2 * H), np.arange(3 * H, 4 * H),
                           np.arange(2 * H, 3 * H)])
    w_ih = to_np(p["w_ih"])[:, perm]
    w_hh = to_np(p["w_hh"])[:, perm]
    b_l = to_np(p["b_lstm"])[:, perm]

    # Compose spatial embedding into the LSTM input projection (both linear -> exact).
    w_comb = to_np(p["w_emb"]) @ w_ih                 # (2, 4H)
    b_comb = to_np(p["b_emb"]) @ w_ih + b_l           # (1, 4H)

    # Fold sigmoid(a) = 0.5*tanh(0.5*a) + 0.5: scale i/f/o columns (first 3H) by 0.5.
    col_scale = np.concatenate([np.full(3 * H, 0.5), np.ones(H)]).astype(np.float32)
    w_comb = w_comb * col_scale
    b_comb = b_comb * col_scale
    w_hh = w_hh * col_scale

    def pad_gates(a):  # (rows, 4H) -> (rows, 4L): gate k -> lanes [k*L, k*L+H)
        out = np.zeros((a.shape[0], 4 * L), np.float32)
        for k in range(4):
            out[:, k * L:k * L + H] = a[:, k * H:(k + 1) * H]
        return out

    slab = np.zeros((R["total"], 4 * L), np.float32)
    slab[R["b_comb"]] = pad_gates(b_comb)[0]
    slab[R["gscale"]] = np.repeat([0.5, 0.5, 0.5, 1.0], L)
    slab[R["goffset"]] = np.repeat([0.5, 0.5, 0.5, 0.0], L)
    slab[R["b1"], :M] = to_np(p["b1"])[0]
    slab[R["g1"], :M] = to_np(p["g1"])[0]
    slab[R["beta1"], :M] = to_np(p["beta1"])[0]
    slab[R["w2t"], :M] = to_np(p["w2"])[:, 0]
    slab[R["b2"], 0] = to_np(p["b2"])[0, 0]
    slab[R["g2"], 0] = to_np(p["g2"])[0, 0]
    slab[R["beta2"], 0] = to_np(p["beta2"])[0, 0]
    slab[R["w_comb"]:R["w_comb"] + 2] = pad_gates(w_comb)
    slab[R["w_hh"]:R["w_hh"] + H] = pad_gates(w_hh)
    slab[R["w1"]:R["w1"] + H, :M] = to_np(p["w1"])
    return jnp.asarray(slab)


def discriminator_forward(traj, traj_rel, params):
    """traj is unused for d_type='local' (kept for signature parity with the module)."""
    del traj
    S, B, _ = traj_rel.shape
    H = int(params["w_hh"].shape[0])
    M = int(params["w1"].shape[1])
    Bp = _round8(B)

    x = traj_rel.astype(jnp.float32)
    if Bp != B:
        x = jnp.concatenate([x, jnp.zeros((S, Bp - B, 2), jnp.float32)], axis=1)
    x2d = x.reshape(S * Bp, 2)                                    # time-major flatten
    mask = (jnp.arange(Bp) < B).astype(jnp.float32).reshape(Bp, 1)
    slab = pack_params(params)

    kernel = functools.partial(discriminator_kernel, seq_len=S, batch_pad=Bp,
                               n_valid=B, hidden=H, mlp=M)
    vmem = pl.BlockSpec(memory_space=pltpu.MemorySpace.VMEM)
    out = pl.pallas_call(
        kernel,
        out_shape=jax.ShapeDtypeStruct((Bp, 1), jnp.float32),
        in_specs=[vmem, vmem, vmem],      # 3 input DMAs total: x, param slab, BN mask
        out_specs=vmem,
        scratch_shapes=[pltpu.VMEM((S * Bp, 4 * LANE_BLK), jnp.float32)],
    )(x2d, slab, mask)
    return out[:B]


def init_params(key, embedding_dim, hidden_dim, mlp_dim):
    E, H, M = embedding_dim, hidden_dim, mlp_dim
    ks = jax.random.split(key, 9)

    def rnd(k, shape, scale):
        return jax.random.normal(k, shape, jnp.float32) * scale

    return dict(
        w_emb=rnd(ks[0], (2, E), 0.5),
        b_emb=rnd(ks[1], (1, E), 0.1),
        w_ih=rnd(ks[2], (E, 4 * H), 1.0 / np.sqrt(E)),
        w_hh=rnd(ks[3], (H, 4 * H), 1.0 / np.sqrt(H)),
        b_lstm=rnd(ks[4], (1, 4 * H), 0.1),          # b_ih + b_hh pre-summed
        w1=rnd(ks[5], (H, M), 1.0 / np.sqrt(H)),
        b1=rnd(ks[6], (1, M), 0.1),
        g1=jnp.ones((1, M), jnp.float32),            # BatchNorm1d default weight=1
        beta1=jnp.zeros((1, M), jnp.float32),        # BatchNorm1d default bias=0
        w2=rnd(ks[7], (M, 1), 1.0 / np.sqrt(M)),
        b2=rnd(ks[8], (1, 1), 0.1),
        g2=jnp.ones((1, 1), jnp.float32),
        beta2=jnp.zeros((1, 1), jnp.float32),
    )


def reference_forward(traj_rel, p):
    """Pure-JAX reference (original gate order / unfused weights / unpadded batch)."""
    S, B, _ = traj_rel.shape
    H = p["w_hh"].shape[0]
    h = jnp.zeros((B, H), jnp.float32)
    c = jnp.zeros((B, H), jnp.float32)
    for t in range(S):
        e = traj_rel[t] @ p["w_emb"] + p["b_emb"]
        z = e @ p["w_ih"] + h @ p["w_hh"] + p["b_lstm"]
        i = jax.nn.sigmoid(z[:, :H])
        f = jax.nn.sigmoid(z[:, H:2 * H])
        g = jnp.tanh(z[:, 2 * H:3 * H])
        o = jax.nn.sigmoid(z[:, 3 * H:])
        c = f * c + i * g
        h = o * jnp.tanh(c)

    eps = 1e-5

    def bn_relu(y, gmm, bta):
        m = y.mean(0, keepdims=True)
        v = ((y - m) ** 2).mean(0, keepdims=True)
        return jnp.maximum((y - m) / jnp.sqrt(v + eps) * gmm + bta, 0.0)

    y1 = bn_relu(h @ p["w1"] + p["b1"], p["g1"], p["beta1"])
    y2 = bn_relu(y1 @ p["w2"] + p["b2"], p["g2"], p["beta2"])
    return y2


if __name__ == "__main__":
    # Small shapes consistent with the module's forward contract.
    obs_len, pred_len = 8, 8
    seq_len = obs_len + pred_len          # 16
    batch = 12                            # not a multiple of 8 -> exercises pad + masked BN
    embedding_dim = 32
    hidden_dim = 32
    mlp_dim = 128

    key = jax.random.PRNGKey(0)
    k_traj, k_rel, k_par = jax.random.split(key, 3)
    traj = jax.random.normal(k_traj, (seq_len, batch, 2), jnp.float32)
    traj_rel = jax.random.normal(k_rel, (seq_len, batch, 2), jnp.float32)
    params = init_params(k_par, embedding_dim, hidden_dim, mlp_dim)

    scores = discriminator_forward(traj, traj_rel, params)
    scores = jax.block_until_ready(scores)

    ref = jax.block_until_ready(reference_forward(traj_rel, params))
    assert scores.shape == (batch, 1), scores.shape
    assert np.allclose(np.asarray(scores), np.asarray(ref), rtol=1e-2, atol=1e-2), (
        scores, ref)

    print("KERNEL_OK")
</pallas_src>

<mosaic_0001>
module attributes {stable_mosaic.version = 11 : i64} {
  func.func @discriminator_kernel(%arg0: memref<256x2xf32, #tpu.memory_space<vmem>>, %arg1: memref<88x512xf32, #tpu.memory_space<vmem>>, %arg2: memref<16x1xf32, #tpu.memory_space<vmem>>, %arg3: memref<16x1xf32, #tpu.memory_space<vmem>>, %arg4: memref<256x512xf32, #tpu.memory_space<vmem>>) attributes {dimension_semantics = [], scalar_prefetch = 0 : i64, scratch_operands = 1 : i64, tpu.core_type = #tpu.core_type<tc>} {
    %c0 = arith.constant 0 : index
    %c0_0 = arith.constant 0 : index
    %0 = vector.load %arg0[%c0, %c0_0] : memref<256x2xf32, #tpu.memory_space<vmem>>, vector<256x2xf32>
    %c16 = arith.constant 16 : index
    %c0_1 = arith.constant 0 : index
    %1 = vector.load %arg1[%c16, %c0_1] : memref<88x512xf32, #tpu.memory_space<vmem>>, vector<2x128xf32>
    %cst = arith.constant dense<0.000000e+00> : vector<256x128xf32>
    %2 = tpu.matmul %0, %1, %cst {dimension_numbers = #tpu.dot_dimension_numbers<[1], [0], [0], [1], [0, 0, 1, 1], [], []>} : vector<256x2xf32>, vector<2x128xf32>, vector<256x128xf32> -> vector<256x128xf32>
    %c0_2 = arith.constant 0 : index
    %c0_3 = arith.constant 0 : index
    %3 = vector.load %arg1[%c0_2, %c0_3] : memref<88x512xf32, #tpu.memory_space<vmem>>, vector<1x128xf32>
    %4 = vector.broadcast %3 : vector<1x128xf32> to vector<256x128xf32>
    %5 = arith.addf %2, %4 : vector<256x128xf32>
    %c0_4 = arith.constant 0 : index
    %c0_5 = arith.constant 0 : index
    %6 = vector.load %arg4[%c0_4, %c0_5] : memref<256x512xf32, #tpu.memory_space<vmem>>, vector<256x128xf32>
    tpu.vector_store %arg4[%c0_4, %c0_5], %5 {strides = array<i32>} : memref<256x512xf32, #tpu.memory_space<vmem>>, vector<256x128xf32>,
    %c0_6 = arith.constant 0 : index
    %c0_7 = arith.constant 0 : index
    %7 = vector.load %arg0[%c0_6, %c0_7] : memref<256x2xf32, #tpu.memory_space<vmem>>, vector<256x2xf32>
    %c16_8 = arith.constant 16 : index
    %c128 = arith.constant 128 : index
    %8 = vector.load %arg1[%c16_8, %c128] : memref<88x512xf32, #tpu.memory_space<vmem>>, vector<2x128xf32>
    %cst_9 = arith.constant dense<0.000000e+00> : vector<256x128xf32>
    %9 = tpu.matmul %7, %8, %cst_9 {dimension_numbers = #tpu.dot_dimension_numbers<[1], [0], [0], [1], [0, 0, 1, 1], [], []>} : vector<256x2xf32>, vector<2x128xf32>, vector<256x128xf32> -> vector<256x128xf32>
    %c0_10 = arith.constant 0 : index
    %c128_11 = arith.constant 128 : index
    %10 = vector.load %arg1[%c0_10, %c128_11] : memref<88x512xf32, #tpu.memory_space<vmem>>, vector<1x128xf32>
    %11 = vector.broadcast %10 : vector<1x128xf32> to vector<256x128xf32>
    %12 = arith.addf %9, %11 : vector<256x128xf32>
    %c0_12 = arith.constant 0 : index
    %c128_13 = arith.constant 128 : index
    %13 = vector.load %arg4[%c0_12, %c128_13] : memref<256x512xf32, #tpu.memory_space<vmem>>, vector<256x128xf32>
    tpu.vector_store %arg4[%c0_12, %c128_13], %12 {strides = array<i32>} : memref<256x512xf32, #tpu.memory_space<vmem>>, vector<256x128xf32>,
    %c0_14 = arith.constant 0 : index
    %c0_15 = arith.constant 0 : index
    %14 = vector.load %arg0[%c0_14, %c0_15] : memref<256x2xf32, #tpu.memory_space<vmem>>, vector<256x2xf32>
    %c16_16 = arith.constant 16 : index
    %c256 = arith.constant 256 : index
    %15 = vector.load %arg1[%c16_16, %c256] : memref<88x512xf32, #tpu.memory_space<vmem>>, vector<2x128xf32>
    %cst_17 = arith.constant dense<0.000000e+00> : vector<256x128xf32>
    %16 = tpu.matmul %14, %15, %cst_17 {dimension_numbers = #tpu.dot_dimension_numbers<[1], [0], [0], [1], [0, 0, 1, 1], [], []>} : vector<256x2xf32>, vector<2x128xf32>, vector<256x128xf32> -> vector<256x128xf32>
    %c0_18 = arith.constant 0 : index
    %c256_19 = arith.constant 256 : index
    %17 = vector.load %arg1[%c0_18, %c256_19] : memref<88x512xf32, #tpu.memory_space<vmem>>, vector<1x128xf32>
    %18 = vector.broadcast %17 : vector<1x128xf32> to vector<256x128xf32>
    %19 = arith.addf %16, %18 : vector<256x128xf32>
    %c0_20 = arith.constant 0 : index
    %c256_21 = arith.constant 256 : index
    %20 = vector.load %arg4[%c0_20, %c256_21] : memref<256x512xf32, #tpu.memory_space<vmem>>, vector<256x128xf32>
    tpu.vector_store %arg4[%c0_20, %c256_21], %19 {strides = array<i32>} : memref<256x512xf32, #tpu.memory_space<vmem>>, vector<256x128xf32>,
    %c0_22 = arith.constant 0 : index
    %c0_23 = arith.constant 0 : index
    %21 = vector.load %arg0[%c0_22, %c0_23] : memref<256x2xf32, #tpu.memory_space<vmem>>, vector<256x2xf32>
    %c16_24 = arith.constant 16 : index
    %c384 = arith.constant 384 : index
    %22 = vector.load %arg1[%c16_24, %c384] : memref<88x512xf32, #tpu.memory_space<vmem>>, vector<2x128xf32>
    %cst_25 = arith.constant dense<0.000000e+00> : vector<256x128xf32>
    %23 = tpu.matmul %21, %22, %cst_25 {dimension_numbers = #tpu.dot_dimension_numbers<[1], [0], [0], [1], [0, 0, 1, 1], [], []>} : vector<256x2xf32>, vector<2x128xf32>, vector<256x128xf32> -> vector<256x128xf32>
    %c0_26 = arith.constant 0 : index
    %c384_27 = arith.constant 384 : index
    %24 = vector.load %arg1[%c0_26, %c384_27] : memref<88x512xf32, #tpu.memory_space<vmem>>, vector<1x128xf32>
    %25 = vector.broadcast %24 : vector<1x128xf32> to vector<256x128xf32>
    %26 = arith.addf %23, %25 : vector<256x128xf32>
    %c0_28 = arith.constant 0 : index
    %c384_29 = arith.constant 384 : index
    %27 = vector.load %arg4[%c0_28, %c384_29] : memref<256x512xf32, #tpu.memory_space<vmem>>, vector<256x128xf32>
    tpu.vector_store %arg4[%c0_28, %c384_29], %26 {strides = array<i32>} : memref<256x512xf32, #tpu.memory_space<vmem>>, vector<256x128xf32>,
    %c24 = arith.constant 24 : index
    %c0_30 = arith.constant 0 : index
    %28 = vector.load %arg1[%c24, %c0_30] : memref<88x512xf32, #tpu.memory_space<vmem>>, vector<32x512xf32>
    %c1 = arith.constant 1 : index
    %c0_31 = arith.constant 0 : index
    %29 = vector.load %arg1[%c1, %c0_31] : memref<88x512xf32, #tpu.memory_space<vmem>>, vector<1x512xf32>
    %c2 = arith.constant 2 : index
    %c0_32 = arith.constant 0 : index
    %30 = vector.load %arg1[%c2, %c0_32] : memref<88x512xf32, #tpu.memory_space<vmem>>, vector<1x512xf32>
    %cst_33 = arith.constant 0.000000e+00 : f32
    %31 = vector.broadcast %cst_33 : f32 to vector<16x32xf32>
    %cst_34 = arith.constant 0.000000e+00 : f32
    %32 = vector.broadcast %cst_34 : f32 to vector<16x32xf32>
    %c0_35 = arith.constant 0 : index
    %c0_36 = arith.constant 0 : index
    %33 = vector.load %arg4[%c0_35, %c0_36] : memref<256x512xf32, #tpu.memory_space<vmem>>, vector<16x512xf32>
    %cst_37 = arith.constant dense<0.000000e+00> : vector<16x512xf32>
    %34 = tpu.matmul %31, %28, %cst_37 {dimension_numbers = #tpu.dot_dimension_numbers<[1], [0], [0], [1], [0, 0, 1, 1], [], []>} : vector<16x32xf32>, vector<32x512xf32>, vector<16x512xf32> -> vector<16x512xf32>
    %35 = arith.addf %33, %34 : vector<16x512xf32>
    %36 = math.tanh %35 : vector<16x512xf32>
    %37 = vector.broadcast %29 : vector<1x512xf32> to vector<16x512xf32>
    %38 = arith.mulf %36, %37 : vector<16x512xf32>
    %39 = vector.broadcast %30 : vector<1x512xf32> to vector<16x512xf32>
    %40 = arith.addf %38, %39 : vector<16x512xf32>
    %41 = vector.extract_strided_slice %40 {offsets = [0, 0], sizes = [16, 32], strides = [1, 1]} : vector<16x512xf32> to vector<16x32xf32>
    %42 = vector.extract_strided_slice %40 {offsets = [0, 128], sizes = [16, 32], strides = [1, 1]} : vector<16x512xf32> to vector<16x32xf32>
    %43 = vector.extract_strided_slice %40 {offsets = [0, 256], sizes = [16, 32], strides = [1, 1]} : vector<16x512xf32> to vector<16x32xf32>
    %44 = vector.extract_strided_slice %40 {offsets = [0, 384], sizes = [16, 32], strides = [1, 1]} : vector<16x512xf32> to vector<16x32xf32>
    %45 = arith.mulf %42, %32 : vector<16x32xf32>
    %46 = arith.mulf %41, %44 : vector<16x32xf32>
    %47 = arith.addf %45, %46 : vector<16x32xf32>
    %48 = math.tanh %47 : vector<16x32xf32>
    %49 = arith.mulf %43, %48 : vector<16x32xf32>
    %c16_38 = arith.constant 16 : index
    %c0_39 = arith.constant 0 : index
    %50 = vector.load %arg4[%c16_38, %c0_39] : memref<256x512xf32, #tpu.memory_space<vmem>>, vector<16x512xf32>
    %cst_40 = arith.constant dense<0.000000e+00> : vector<16x512xf32>
    %51 = tpu.matmul %49, %28, %cst_40 {dimension_numbers = #tpu.dot_dimension_numbers<[1], [0], [0], [1], [0, 0, 1, 1], [], []>} : vector<16x32xf32>, vector<32x512xf32>, vector<16x512xf32> -> vector<16x512xf32>
    %52 = arith.addf %50, %51 : vector<16x512xf32>
    %53 = math.tanh %52 : vector<16x512xf32>
    %54 = vector.broadcast %29 : vector<1x512xf32> to vector<16x512xf32>
    %55 = arith.mulf %53, %54 : vector<16x512xf32>
    %56 = vector.broadcast %30 : vector<1x512xf32> to vector<16x512xf32>
    %57 = arith.addf %55, %56 : vector<16x512xf32>
    %58 = vector.extract_strided_slice %57 {offsets = [0, 0], sizes = [16, 32], strides = [1, 1]} : vector<16x512xf32> to vector<16x32xf32>
    %59 = vector.extract_strided_slice %57 {offsets = [0, 128], sizes = [16, 32], strides = [1, 1]} : vector<16x512xf32> to vector<16x32xf32>
    %60 = vector.extract_strided_slice %57 {offsets = [0, 256], sizes = [16, 32], strides = [1, 1]} : vector<16x512xf32> to vector<16x32xf32>
    %61 = vector.extract_strided_slice %57 {offsets = [0, 384], sizes = [16, 32], strides = [1, 1]} : vector<16x512xf32> to vector<16x32xf32>
    %62 = arith.mulf %59, %47 : vector<16x32xf32>
    %63 = arith.mulf %58, %61 : vector<16x32xf32>
    %64 = arith.addf %62, %63 : vector<16x32xf32>
    %65 = math.tanh %64 : vector<16x32xf32>
    %66 = arith.mulf %60, %65 : vector<16x32xf32>
    %c32 = arith.constant 32 : index
    %c0_41 = arith.constant 0 : index
    %67 = vector.load %arg4[%c32, %c0_41] : memref<256x512xf32, #tpu.memory_space<vmem>>, vector<16x512xf32>
    %cst_42 = arith.constant dense<0.000000e+00> : vector<16x512xf32>
    %68 = tpu.matmul %66, %28, %cst_42 {dimension_numbers = #tpu.dot_dimension_numbers<[1], [0], [0], [1], [0, 0, 1, 1], [], []>} : vector<16x32xf32>, vector<32x512xf32>, vector<16x512xf32> -> vector<16x512xf32>
    %69 = arith.addf %67, %68 : vector<16x512xf32>
    %70 = math.tanh %69 : vector<16x512xf32>
    %71 = vector.broadcast %29 : vector<1x512xf32> to vector<16x512xf32>
    %72 = arith.mulf %70, %71 : vector<16x512xf32>
    %73 = vector.broadcast %30 : vector<1x512xf32> to vector<16x512xf32>
    %74 = arith.addf %72, %73 : vector<16x512xf32>
    %75 = vector.extract_strided_slice %74 {offsets = [0, 0], sizes = [16, 32], strides = [1, 1]} : vector<16x512xf32> to vector<16x32xf32>
    %76 = vector.extract_strided_slice %74 {offsets = [0, 128], sizes = [16, 32], strides = [1, 1]} : vector<16x512xf32> to vector<16x32xf32>
    %77 = vector.extract_strided_slice %74 {offsets = [0, 256], sizes = [16, 32], strides = [1, 1]} : vector<16x512xf32> to vector<16x32xf32>
    %78 = vector.extract_strided_slice %74 {offsets = [0, 384], sizes = [16, 32], strides = [1, 1]} : vector<16x512xf32> to vector<16x32xf32>
    %79 = arith.mulf %76, %64 : vector<16x32xf32>
    %80 = arith.mulf %75, %78 : vector<16x32xf32>
    %81 = arith.addf %79, %80 : vector<16x32xf32>
    %82 = math.tanh %81 : vector<16x32xf32>
    %83 = arith.mulf %77, %82 : vector<16x32xf32>
    %c48 = arith.constant 48 : index
    %c0_43 = arith.constant 0 : index
    %84 = vector.load %arg4[%c48, %c0_43] : memref<256x512xf32, #tpu.memory_space<vmem>>, vector<16x512xf32>
    %cst_44 = arith.constant dense<0.000000e+00> : vector<16x512xf32>
    %85 = tpu.matmul %83, %28, %cst_44 {dimension_numbers = #tpu.dot_dimension_numbers<[1], [0], [0], [1], [0, 0, 1, 1], [], []>} : vector<16x32xf32>, vector<32x512xf32>, vector<16x512xf32> -> vector<16x512xf32>
    %86 = arith.addf %84, %85 : vector<16x512xf32>
    %87 = math.tanh %86 : vector<16x512xf32>
    %88 = vector.broadcast %29 : vector<1x512xf32> to vector<16x512xf32>
    %89 = arith.mulf %87, %88 : vector<16x512xf32>
    %90 = vector.broadcast %30 : vector<1x512xf32> to vector<16x512xf32>
    %91 = arith.addf %89, %90 : vector<16x512xf32>
    %92 = vector.extract_strided_slice %91 {offsets = [0, 0], sizes = [16, 32], strides = [1, 1]} : vector<16x512xf32> to vector<16x32xf32>
    %93 = vector.extract_strided_slice %91 {offsets = [0, 128], sizes = [16, 32], strides = [1, 1]} : vector<16x512xf32> to vector<16x32xf32>
    %94 = vector.extract_strided_slice %91 {offsets = [0, 256], sizes = [16, 32], strides = [1, 1]} : vector<16x512xf32> to vector<16x32xf32>
    %95 = vector.extract_strided_slice %91 {offsets = [0, 384], sizes = [16, 32], strides = [1, 1]} : vector<16x512xf32> to vector<16x32xf32>
    %96 = arith.mulf %93, %81 : vector<16x32xf32>
    %97 = arith.mulf %92, %95 : vector<16x32xf32>
    %98 = arith.addf %96, %97 : vector<16x32xf32>
    %99 = math.tanh %98 : vector<16x32xf32>
    %100 = arith.mulf %94, %99 : vector<16x32xf32>
    %c64 = arith.constant 64 : index
    %c0_45 = arith.constant 0 : index
    %101 = vector.load %arg4[%c64, %c0_45] : memref<256x512xf32, #tpu.memory_space<vmem>>, vector<16x512xf32>
    %cst_46 = arith.constant dense<0.000000e+00> : vector<16x512xf32>
    %102 = tpu.matmul %100, %28, %cst_46 {dimension_numbers = #tpu.dot_dimension_numbers<[1], [0], [0], [1], [0, 0, 1, 1], [], []>} : vector<16x32xf32>, vector<32x512xf32>, vector<16x512xf32> -> vector<16x512xf32>
    %103 = arith.addf %101, %102 : vector<16x512xf32>
    %104 = math.tanh %103 : vector<16x512xf32>
    %105 = vector.broadcast %29 : vector<1x512xf32> to vector<16x512xf32>
    %106 = arith.mulf %104, %105 : vector<16x512xf32>
    %107 = vector.broadcast %30 : vector<1x512xf32> to vector<16x512xf32>
    %108 = arith.addf %106, %107 : vector<16x512xf32>
    %109 = vector.extract_strided_slice %108 {offsets = [0, 0], sizes = [16, 32], strides = [1, 1]} : vector<16x512xf32> to vector<16x32xf32>
    %110 = vector.extract_strided_slice %108 {offsets = [0, 128], sizes = [16, 32], strides = [1, 1]} : vector<16x512xf32> to vector<16x32xf32>
    %111 = vector.extract_strided_slice %108 {offsets = [0, 256], sizes = [16, 32], strides = [1, 1]} : vector<16x512xf32> to vector<16x32xf32>
    %112 = vector.extract_strided_slice %108 {offsets = [0, 384], sizes = [16, 32], strides = [1, 1]} : vector<16x512xf32> to vector<16x32xf32>
    %113 = arith.mulf %110, %98 : vector<16x32xf32>
    %114 = arith.mulf %109, %112 : vector<16x32xf32>
    %115 = arith.addf %113, %114 : vector<16x32xf32>
    %116 = math.tanh %115 : vector<16x32xf32>
    %117 = arith.mulf %111, %116 : vector<16x32xf32>
    %c80 = arith.constant 80 : index
    %c0_47 = arith.constant 0 : index
    %118 = vector.load %arg4[%c80, %c0_47] : memref<256x512xf32, #tpu.memory_space<vmem>>, vector<16x512xf32>
    %cst_48 = arith.constant dense<0.000000e+00> : vector<16x512xf32>
    %119 = tpu.matmul %117, %28, %cst_48 {dimension_numbers = #tpu.dot_dimension_numbers<[1], [0], [0], [1], [0, 0, 1, 1], [], []>} : vector<16x32xf32>, vector<32x512xf32>, vector<16x512xf32> -> vector<16x512xf32>
    %120 = arith.addf %118, %119 : vector<16x512xf32>
    %121 = math.tanh %120 : vector<16x512xf32>
    %122 = vector.broadcast %29 : vector<1x512xf32> to vector<16x512xf32>
    %123 = arith.mulf %121, %122 : vector<16x512xf32>
    %124 = vector.broadcast %30 : vector<1x512xf32> to vector<16x512xf32>
    %125 = arith.addf %123, %124 : vector<16x512xf32>
    %126 = vector.extract_strided_slice %125 {offsets = [0, 0], sizes = [16, 32], strides = [1, 1]} : vector<16x512xf32> to vector<16x32xf32>
    %127 = vector.extract_strided_slice %125 {offsets = [0, 128], sizes = [16, 32], strides = [1, 1]} : vector<16x512xf32> to vector<16x32xf32>
    %128 = vector.extract_strided_slice %125 {offsets = [0, 256], sizes = [16, 32], strides = [1, 1]} : vector<16x512xf32> to vector<16x32xf32>
    %129 = vector.extract_strided_slice %125 {offsets = [0, 384], sizes = [16, 32], strides = [1, 1]} : vector<16x512xf32> to vector<16x32xf32>
    %130 = arith.mulf %127, %115 : vector<16x32xf32>
    %131 = arith.mulf %126, %129 : vector<16x32xf32>
    %132 = arith.addf %130, %131 : vector<16x32xf32>
    %133 = math.tanh %132 : vector<16x32xf32>
    %134 = arith.mulf %128, %133 : vector<16x32xf32>
    %c96 = arith.constant 96 : index
    %c0_49 = arith.constant 0 : index
    %135 = vector.load %arg4[%c96, %c0_49] : memref<256x512xf32, #tpu.memory_space<vmem>>, vector<16x512xf32>
    %cst_50 = arith.constant dense<0.000000e+00> : vector<16x512xf32>
    %136 = tpu.matmul %134, %28, %cst_50 {dimension_numbers = #tpu.dot_dimension_numbers<[1], [0], [0], [1], [0, 0, 1, 1], [], []>} : vector<16x32xf32>, vector<32x512xf32>, vector<16x512xf32> -> vector<16x512xf32>
    %137 = arith.addf %135, %136 : vector<16x512xf32>
    %138 = math.tanh %137 : vector<16x512xf32>
    %139 = vector.broadcast %29 : vector<1x512xf32> to vector<16x512xf32>
    %140 = arith.mulf %138, %139 : vector<16x512xf32>
    %141 = vector.broadcast %30 : vector<1x512xf32> to vector<16x512xf32>
    %142 = arith.addf %140, %141 : vector<16x512xf32>
    %143 = vector.extract_strided_slice %142 {offsets = [0, 0], sizes = [16, 32], strides = [1, 1]} : vector<16x512xf32> to vector<16x32xf32>
    %144 = vector.extract_strided_slice %142 {offsets = [0, 128], sizes = [16, 32], strides = [1, 1]} : vector<16x512xf32> to vector<16x32xf32>
    %145 = vector.extract_strided_slice %142 {offsets = [0, 256], sizes = [16, 32], strides = [1, 1]} : vector<16x512xf32> to vector<16x32xf32>
    %146 = vector.extract_strided_slice %142 {offsets = [0, 384], sizes = [16, 32], strides = [1, 1]} : vector<16x512xf32> to vector<16x32xf32>
    %147 = arith.mulf %144, %132 : vector<16x32xf32>
    %148 = arith.mulf %143, %146 : vector<16x32xf32>
    %149 = arith.addf %147, %148 : vector<16x32xf32>
    %150 = math.tanh %149 : vector<16x32xf32>
    %151 = arith.mulf %145, %150 : vector<16x32xf32>
    %c112 = arith.constant 112 : index
    %c0_51 = arith.constant 0 : index
    %152 = vector.load %arg4[%c112, %c0_51] : memref<256x512xf32, #tpu.memory_space<vmem>>, vector<16x512xf32>
    %cst_52 = arith.constant dense<0.000000e+00> : vector<16x512xf32>
    %153 = tpu.matmul %151, %28, %cst_52 {dimension_numbers = #tpu.dot_dimension_numbers<[1], [0], [0], [1], [0, 0, 1, 1], [], []>} : vector<16x32xf32>, vector<32x512xf32>, vector<16x512xf32> -> vector<16x512xf32>
    %154 = arith.addf %152, %153 : vector<16x512xf32>
    %155 = math.tanh %154 : vector<16x512xf32>
    %156 = vector.broadcast %29 : vector<1x512xf32> to vector<16x512xf32>
    %157 = arith.mulf %155, %156 : vector<16x512xf32>
    %158 = vector.broadcast %30 : vector<1x512xf32> to vector<16x512xf32>
    %159 = arith.addf %157, %158 : vector<16x512xf32>
    %160 = vector.extract_strided_slice %159 {offsets = [0, 0], sizes = [16, 32], strides = [1, 1]} : vector<16x512xf32> to vector<16x32xf32>
    %161 = vector.extract_strided_slice %159 {offsets = [0, 128], sizes = [16, 32], strides = [1, 1]} : vector<16x512xf32> to vector<16x32xf32>
    %162 = vector.extract_strided_slice %159 {offsets = [0, 256], sizes = [16, 32], strides = [1, 1]} : vector<16x512xf32> to vector<16x32xf32>
    %163 = vector.extract_strided_slice %159 {offsets = [0, 384], sizes = [16, 32], strides = [1, 1]} : vector<16x512xf32> to vector<16x32xf32>
    %164 = arith.mulf %161, %149 : vector<16x32xf32>
    %165 = arith.mulf %160, %163 : vector<16x32xf32>
    %166 = arith.addf %164, %165 : vector<16x32xf32>
    %167 = math.tanh %166 : vector<16x32xf32>
    %168 = arith.mulf %162, %167 : vector<16x32xf32>
    %c128_53 = arith.constant 128 : index
    %c0_54 = arith.constant 0 : index
    %169 = vector.load %arg4[%c128_53, %c0_54] : memref<256x512xf32, #tpu.memory_space<vmem>>, vector<16x512xf32>
    %cst_55 = arith.constant dense<0.000000e+00> : vector<16x512xf32>
    %170 = tpu.matmul %168, %28, %cst_55 {dimension_numbers = #tpu.dot_dimension_numbers<[1], [0], [0], [1], [0, 0, 1, 1], [], []>} : vector<16x32xf32>, vector<32x512xf32>, vector<16x512xf32> -> vector<16x512xf32>
    %171 = arith.addf %169, %170 : vector<16x512xf32>
    %172 = math.tanh %171 : vector<16x512xf32>
    %173 = vector.broadcast %29 : vector<1x512xf32> to vector<16x512xf32>
    %174 = arith.mulf %172, %173 : vector<16x512xf32>
    %175 = vector.broadcast %30 : vector<1x512xf32> to vector<16x512xf32>
    %176 = arith.addf %174, %175 : vector<16x512xf32>
    %177 = vector.extract_strided_slice %176 {offsets = [0, 0], sizes = [16, 32], strides = [1, 1]} : vector<16x512xf32> to vector<16x32xf32>
    %178 = vector.extract_strided_slice %176 {offsets = [0, 128], sizes = [16, 32], strides = [1, 1]} : vector<16x512xf32> to vector<16x32xf32>
    %179 = vector.extract_strided_slice %176 {offsets = [0, 256], sizes = [16, 32], strides = [1, 1]} : vector<16x512xf32> to vector<16x32xf32>
    %180 = vector.extract_strided_slice %176 {offsets = [0, 384], sizes = [16, 32], strides = [1, 1]} : vector<16x512xf32> to vector<16x32xf32>
    %181 = arith.mulf %178, %166 : vector<16x32xf32>
    %182 = arith.mulf %177, %180 : vector<16x32xf32>
    %183 = arith.addf %181, %182 : vector<16x32xf32>
    %184 = math.tanh %183 : vector<16x32xf32>
    %185 = arith.mulf %179, %184 : vector<16x32xf32>
    %c144 = arith.constant 144 : index
    %c0_56 = arith.constant 0 : index
    %186 = vector.load %arg4[%c144, %c0_56] : memref<256x512xf32, #tpu.memory_space<vmem>>, vector<16x512xf32>
    %cst_57 = arith.constant dense<0.000000e+00> : vector<16x512xf32>
    %187 = tpu.matmul %185, %28, %cst_57 {dimension_numbers = #tpu.dot_dimension_numbers<[1], [0], [0], [1], [0, 0, 1, 1], [], []>} : vector<16x32xf32>, vector<32x512xf32>, vector<16x512xf32> -> vector<16x512xf32>
    %188 = arith.addf %186, %187 : vector<16x512xf32>
    %189 = math.tanh %188 : vector<16x512xf32>
    %190 = vector.broadcast %29 : vector<1x512xf32> to vector<16x512xf32>
    %191 = arith.mulf %189, %190 : vector<16x512xf32>
    %192 = vector.broadcast %30 : vector<1x512xf32> to vector<16x512xf32>
    %193 = arith.addf %191, %192 : vector<16x512xf32>
    %194 = vector.extract_strided_slice %193 {offsets = [0, 0], sizes = [16, 32], strides = [1, 1]} : vector<16x512xf32> to vector<16x32xf32>
    %195 = vector.extract_strided_slice %193 {offsets = [0, 128], sizes = [16, 32], strides = [1, 1]} : vector<16x512xf32> to vector<16x32xf32>
    %196 = vector.extract_strided_slice %193 {offsets = [0, 256], sizes = [16, 32], strides = [1, 1]} : vector<16x512xf32> to vector<16x32xf32>
    %197 = vector.extract_strided_slice %193 {offsets = [0, 384], sizes = [16, 32], strides = [1, 1]} : vector<16x512xf32> to vector<16x32xf32>
    %198 = arith.mulf %195, %183 : vector<16x32xf32>
    %199 = arith.mulf %194, %197 : vector<16x32xf32>
    %200 = arith.addf %198, %199 : vector<16x32xf32>
    %201 = math.tanh %200 : vector<16x32xf32>
    %202 = arith.mulf %196, %201 : vector<16x32xf32>
    %c160 = arith.constant 160 : index
    %c0_58 = arith.constant 0 : index
    %203 = vector.load %arg4[%c160, %c0_58] : memref<256x512xf32, #tpu.memory_space<vmem>>, vector<16x512xf32>
    %cst_59 = arith.constant dense<0.000000e+00> : vector<16x512xf32>
    %204 = tpu.matmul %202, %28, %cst_59 {dimension_numbers = #tpu.dot_dimension_numbers<[1], [0], [0], [1], [0, 0, 1, 1], [], []>} : vector<16x32xf32>, vector<32x512xf32>, vector<16x512xf32> -> vector<16x512xf32>
    %205 = arith.addf %203, %204 : vector<16x512xf32>
    %206 = math.tanh %205 : vector<16x512xf32>
    %207 = vector.broadcast %29 : vector<1x512xf32> to vector<16x512xf32>
    %208 = arith.mulf %206, %207 : vector<16x512xf32>
    %209 = vector.broadcast %30 : vector<1x512xf32> to vector<16x512xf32>
    %210 = arith.addf %208, %209 : vector<16x512xf32>
    %211 = vector.extract_strided_slice %210 {offsets = [0, 0], sizes = [16, 32], strides = [1, 1]} : vector<16x512xf32> to vector<16x32xf32>
    %212 = vector.extract_strided_slice %210 {offsets = [0, 128], sizes = [16, 32], strides = [1, 1]} : vector<16x512xf32> to vector<16x32xf32>
    %213 = vector.extract_strided_slice %210 {offsets = [0, 256], sizes = [16, 32], strides = [1, 1]} : vector<16x512xf32> to vector<16x32xf32>
    %214 = vector.extract_strided_slice %210 {offsets = [0, 384], sizes = [16, 32], strides = [1, 1]} : vector<16x512xf32> to vector<16x32xf32>
    %215 = arith.mulf %212, %200 : vector<16x32xf32>
    %216 = arith.mulf %211, %214 : vector<16x32xf32>
    %217 = arith.addf %215, %216 : vector<16x32xf32>
    %218 = math.tanh %217 : vector<16x32xf32>
    %219 = arith.mulf %213, %218 : vector<16x32xf32>
    %c176 = arith.constant 176 : index
    %c0_60 = arith.constant 0 : index
    %220 = vector.load %arg4[%c176, %c0_60] : memref<256x512xf32, #tpu.memory_space<vmem>>, vector<16x512xf32>
    %cst_61 = arith.constant dense<0.000000e+00> : vector<16x512xf32>
    %221 = tpu.matmul %219, %28, %cst_61 {dimension_numbers = #tpu.dot_dimension_numbers<[1], [0], [0], [1], [0, 0, 1, 1], [], []>} : vector<16x32xf32>, vector<32x512xf32>, vector<16x512xf32> -> vector<16x512xf32>
    %222 = arith.addf %220, %221 : vector<16x512xf32>
    %223 = math.tanh %222 : vector<16x512xf32>
    %224 = vector.broadcast %29 : vector<1x512xf32> to vector<16x512xf32>
    %225 = arith.mulf %223, %224 : vector<16x512xf32>
    %226 = vector.broadcast %30 : vector<1x512xf32> to vector<16x512xf32>
    %227 = arith.addf %225, %226 : vector<16x512xf32>
    %228 = vector.extract_strided_slice %227 {offsets = [0, 0], sizes = [16, 32], strides = [1, 1]} : vector<16x512xf32> to vector<16x32xf32>
    %229 = vector.extract_strided_slice %227 {offsets = [0, 128], sizes = [16, 32], strides = [1, 1]} : vector<16x512xf32> to vector<16x32xf32>
    %230 = vector.extract_strided_slice %227 {offsets = [0, 256], sizes = [16, 32], strides = [1, 1]} : vector<16x512xf32> to vector<16x32xf32>
    %231 = vector.extract_strided_slice %227 {offsets = [0, 384], sizes = [16, 32], strides = [1, 1]} : vector<16x512xf32> to vector<16x32xf32>
    %232 = arith.mulf %229, %217 : vector<16x32xf32>
    %233 = arith.mulf %228, %231 : vector<16x32xf32>
    %234 = arith.addf %232, %233 : vector<16x32xf32>
    %235 = math.tanh %234 : vector<16x32xf32>
    %236 = arith.mulf %230, %235 : vector<16x32xf32>
    %c192 = arith.constant 192 : index
    %c0_62 = arith.constant 0 : index
    %237 = vector.load %arg4[%c192, %c0_62] : memref<256x512xf32, #tpu.memory_space<vmem>>, vector<16x512xf32>
    %cst_63 = arith.constant dense<0.000000e+00> : vector<16x512xf32>
    %238 = tpu.matmul %236, %28, %cst_63 {dimension_numbers = #tpu.dot_dimension_numbers<[1], [0], [0], [1], [0, 0, 1, 1], [], []>} : vector<16x32xf32>, vector<32x512xf32>, vector<16x512xf32> -> vector<16x512xf32>
    %239 = arith.addf %237, %238 : vector<16x512xf32>
    %240 = math.tanh %239 : vector<16x512xf32>
    %241 = vector.broadcast %29 : vector<1x512xf32> to vector<16x512xf32>
    %242 = arith.mulf %240, %241 : vector<16x512xf32>
    %243 = vector.broadcast %30 : vector<1x512xf32> to vector<16x512xf32>
    %244 = arith.addf %242, %243 : vector<16x512xf32>
    %245 = vector.extract_strided_slice %244 {offsets = [0, 0], sizes = [16, 32], strides = [1, 1]} : vector<16x512xf32> to vector<16x32xf32>
    %246 = vector.extract_strided_slice %244 {offsets = [0, 128], sizes = [16, 32], strides = [1, 1]} : vector<16x512xf32> to vector<16x32xf32>
    %247 = vector.extract_strided_slice %244 {offsets = [0, 256], sizes = [16, 32], strides = [1, 1]} : vector<16x512xf32> to vector<16x32xf32>
    %248 = vector.extract_strided_slice %244 {offsets = [0, 384], sizes = [16, 32], strides = [1, 1]} : vector<16x512xf32> to vector<16x32xf32>
    %249 = arith.mulf %246, %234 : vector<16x32xf32>
    %250 = arith.mulf %245, %248 : vector<16x32xf32>
    %251 = arith.addf %249, %250 : vector<16x32xf32>
    %252 = math.tanh %251 : vector<16x32xf32>
    %253 = arith.mulf %247, %252 : vector<16x32xf32>
    %c208 = arith.constant 208 : index
    %c0_64 = arith.constant 0 : index
    %254 = vector.load %arg4[%c208, %c0_64] : memref<256x512xf32, #tpu.memory_space<vmem>>, vector<16x512xf32>
    %cst_65 = arith.constant dense<0.000000e+00> : vector<16x512xf32>
    %255 = tpu.matmul %253, %28, %cst_65 {dimension_numbers = #tpu.dot_dimension_numbers<[1], [0], [0], [1], [0, 0, 1, 1], [], []>} : vector<16x32xf32>, vector<32x512xf32>, vector<16x512xf32> -> vector<16x512xf32>
    %256 = arith.addf %254, %255 : vector<16x512xf32>
    %257 = math.tanh %256 : vector<16x512xf32>
    %258 = vector.broadcast %29 : vector<1x512xf32> to vector<16x512xf32>
    %259 = arith.mulf %257, %258 : vector<16x512xf32>
    %260 = vector.broadcast %30 : vector<1x512xf32> to vector<16x512xf32>
    %261 = arith.addf %259, %260 : vector<16x512xf32>
    %262 = vector.extract_strided_slice %261 {offsets = [0, 0], sizes = [16, 32], strides = [1, 1]} : vector<16x512xf32> to vector<16x32xf32>
    %263 = vector.extract_strided_slice %261 {offsets = [0, 128], sizes = [16, 32], strides = [1, 1]} : vector<16x512xf32> to vector<16x32xf32>
    %264 = vector.extract_strided_slice %261 {offsets = [0, 256], sizes = [16, 32], strides = [1, 1]} : vector<16x512xf32> to vector<16x32xf32>
    %265 = vector.extract_strided_slice %261 {offsets = [0, 384], sizes = [16, 32], strides = [1, 1]} : vector<16x512xf32> to vector<16x32xf32>
    %266 = arith.mulf %263, %251 : vector<16x32xf32>
    %267 = arith.mulf %262, %265 : vector<16x32xf32>
    %268 = arith.addf %266, %267 : vector<16x32xf32>
    %269 = math.tanh %268 : vector<16x32xf32>
    %270 = arith.mulf %264, %269 : vector<16x32xf32>
    %c224 = arith.constant 224 : index
    %c0_66 = arith.constant 0 : index
    %271 = vector.load %arg4[%c224, %c0_66] : memref<256x512xf32, #tpu.memory_space<vmem>>, vector<16x512xf32>
    %cst_67 = arith.constant dense<0.000000e+00> : vector<16x512xf32>
    %272 = tpu.matmul %270, %28, %cst_67 {dimension_numbers = #tpu.dot_dimension_numbers<[1], [0], [0], [1], [0, 0, 1, 1], [], []>} : vector<16x32xf32>, vector<32x512xf32>, vector<16x512xf32> -> vector<16x512xf32>
    %273 = arith.addf %271, %272 : vector<16x512xf32>
    %274 = math.tanh %273 : vector<16x512xf32>
    %275 = vector.broadcast %29 : vector<1x512xf32> to vector<16x512xf32>
    %276 = arith.mulf %274, %275 : vector<16x512xf32>
    %277 = vector.broadcast %30 : vector<1x512xf32> to vector<16x512xf32>
    %278 = arith.addf %276, %277 : vector<16x512xf32>
    %279 = vector.extract_strided_slice %278 {offsets = [0, 0], sizes = [16, 32], strides = [1, 1]} : vector<16x512xf32> to vector<16x32xf32>
    %280 = vector.extract_strided_slice %278 {offsets = [0, 128], sizes = [16, 32], strides = [1, 1]} : vector<16x512xf32> to vector<16x32xf32>
    %281 = vector.extract_strided_slice %278 {offsets = [0, 256], sizes = [16, 32], strides = [1, 1]} : vector<16x512xf32> to vector<16x32xf32>
    %282 = vector.extract_strided_slice %278 {offsets = [0, 384], sizes = [16, 32], strides = [1, 1]} : vector<16x512xf32> to vector<16x32xf32>
    %283 = arith.mulf %280, %268 : vector<16x32xf32>
    %284 = arith.mulf %279, %282 : vector<16x32xf32>
    %285 = arith.addf %283, %284 : vector<16x32xf32>
    %286 = math.tanh %285 : vector<16x32xf32>
    %287 = arith.mulf %281, %286 : vector<16x32xf32>
    %c240 = arith.constant 240 : index
    %c0_68 = arith.constant 0 : index
    %288 = vector.load %arg4[%c240, %c0_68] : memref<256x512xf32, #tpu.memory_space<vmem>>, vector<16x512xf32>
    %cst_69 = arith.constant dense<0.000000e+00> : vector<16x512xf32>
    %289 = tpu.matmul %287, %28, %cst_69 {dimension_numbers = #tpu.dot_dimension_numbers<[1], [0], [0], [1], [0, 0, 1, 1], [], []>} : vector<16x32xf32>, vector<32x512xf32>, vector<16x512xf32> -> vector<16x512xf32>
    %290 = arith.addf %288, %289 : vector<16x512xf32>
    %291 = math.tanh %290 : vector<16x512xf32>
    %292 = vector.broadcast %29 : vector<1x512xf32> to vector<16x512xf32>
    %293 = arith.mulf %291, %292 : vector<16x512xf32>
    %294 = vector.broadcast %30 : vector<1x512xf32> to vector<16x512xf32>
    %295 = arith.addf %293, %294 : vector<16x512xf32>
    %296 = vector.extract_strided_slice %295 {offsets = [0, 0], sizes = [16, 32], strides = [1, 1]} : vector<16x512xf32> to vector<16x32xf32>
    %297 = vector.extract_strided_slice %295 {offsets = [0, 128], sizes = [16, 32], strides = [1, 1]} : vector<16x512xf32> to vector<16x32xf32>
    %298 = vector.extract_strided_slice %295 {offsets = [0, 256], sizes = [16, 32], strides = [1, 1]} : vector<16x512xf32> to vector<16x32xf32>
    %299 = vector.extract_strided_slice %295 {offsets = [0, 384], sizes = [16, 32], strides = [1, 1]} : vector<16x512xf32> to vector<16x32xf32>
    %300 = arith.mulf %297, %285 : vector<16x32xf32>
    %301 = arith.mulf %296, %299 : vector<16x32xf32>
    %302 = arith.addf %300, %301 : vector<16x32xf32>
    %303 = math.tanh %302 : vector<16x32xf32>
    %304 = arith.mulf %298, %303 : vector<16x32xf32>
    %c0_70 = arith.constant 0 : index
    %c0_71 = arith.constant 0 : index
    %305 = vector.load %arg2[%c0_70, %c0_71] : memref<16x1xf32, #tpu.memory_space<vmem>>, vector<16x1xf32>
    %c56 = arith.constant 56 : index
    %c0_72 = arith.constant 0 : index
    %306 = vector.load %arg1[%c56, %c0_72] : memref<88x512xf32, #tpu.memory_space<vmem>>, vector<32x128xf32>
    %c3 = arith.constant 3 : index
    %c0_73 = arith.constant 0 : index
    %307 = vector.load %arg1[%c3, %c0_73] : memref<88x512xf32, #tpu.memory_space<vmem>>, vector<1x128xf32>
    %c4 = arith.constant 4 : index
    %c0_74 = arith.constant 0 : index
    %308 = vector.load %arg1[%c4, %c0_74] : memref<88x512xf32, #tpu.memory_space<vmem>>, vector<1x128xf32>
    %c5 = arith.constant 5 : index
    %c0_75 = arith.constant 0 : index
    %309 = vector.load %arg1[%c5, %c0_75] : memref<88x512xf32, #tpu.memory_space<vmem>>, vector<1x128xf32>
    %cst_76 = arith.constant dense<0.000000e+00> : vector<16x128xf32>
    %310 = tpu.matmul %304, %306, %cst_76 {dimension_numbers = #tpu.dot_dimension_numbers<[1], [0], [0], [1], [0, 0, 1, 1], [], []>} : vector<16x32xf32>, vector<32x128xf32>, vector<16x128xf32> -> vector<16x128xf32>
    %311 = vector.broadcast %307 : vector<1x128xf32> to vector<16x128xf32>
    %312 = arith.addf %310, %311 : vector<16x128xf32>
    %313 = vector.broadcast %305 : vector<16x1xf32> to vector<16x128xf32>
    %314 = arith.mulf %312, %313 : vector<16x128xf32>
    %cst_77 = arith.constant dense<0.000000e+00> : vector<128xf32>
    %315 = vector.multi_reduction <add>, %314, %cst_77 [0] : vector<16x128xf32> to vector<128xf32>
    %316 = vector.shape_cast %315 : vector<128xf32> to vector<1x128xf32>
    %cst_78 = arith.constant 0.0833333358 : f32
    %317 = vector.broadcast %cst_78 : f32 to vector<1x128xf32>
    %318 = arith.mulf %316, %317 : vector<1x128xf32>
    %319 = vector.broadcast %318 : vector<1x128xf32> to vector<16x128xf32>
    %320 = arith.subf %312, %319 : vector<16x128xf32>
    %321 = vector.broadcast %305 : vector<16x1xf32> to vector<16x128xf32>
    %322 = arith.mulf %320, %321 : vector<16x128xf32>
    %323 = arith.mulf %322, %322 : vector<16x128xf32>
    %cst_79 = arith.constant dense<0.000000e+00> : vector<128xf32>
    %324 = vector.multi_reduction <add>, %323, %cst_79 [0] : vector<16x128xf32> to vector<128xf32>
    %325 = vector.shape_cast %324 : vector<128xf32> to vector<1x128xf32>
    %cst_80 = arith.constant 0.0833333358 : f32
    %326 = vector.broadcast %cst_80 : f32 to vector<1x128xf32>
    %327 = arith.mulf %325, %326 : vector<1x128xf32>
    %328 = vector.broadcast %318 : vector<1x128xf32> to vector<16x128xf32>
    %329 = arith.subf %312, %328 : vector<16x128xf32>
    %cst_81 = arith.constant 9.99999974E-6 : f32
    %330 = vector.broadcast %cst_81 : f32 to vector<1x128xf32>
    %331 = arith.addf %327, %330 : vector<1x128xf32>
    %332 = math.rsqrt %331 : vector<1x128xf32>
    %333 = vector.broadcast %332 : vector<1x128xf32> to vector<16x128xf32>
    %334 = arith.mulf %329, %333 : vector<16x128xf32>
    %335 = vector.broadcast %308 : vector<1x128xf32> to vector<16x128xf32>
    %336 = arith.mulf %334, %335 : vector<16x128xf32>
    %337 = vector.broadcast %309 : vector<1x128xf32> to vector<16x128xf32>
    %338 = arith.addf %336, %337 : vector<16x128xf32>
    %cst_82 = arith.constant 0.000000e+00 : f32
    %339 = vector.broadcast %cst_82 : f32 to vector<16x128xf32>
    %340 = arith.maximumf %338, %339 : vector<16x128xf32>
    %c6 = arith.constant 6 : index
    %c0_83 = arith.constant 0 : index
    %341 = vector.load %arg1[%c6, %c0_83] : memref<88x512xf32, #tpu.memory_space<vmem>>, vector<1x128xf32>
    %c7 = arith.constant 7 : index
    %c0_84 = arith.constant 0 : index
    %342 = vector.load %arg1[%c7, %c0_84] : memref<88x512xf32, #tpu.memory_space<vmem>>, vector<1x1xf32>
    %c8 = arith.constant 8 : index
    %c0_85 = arith.constant 0 : index
    %343 = vector.load %arg1[%c8, %c0_85] : memref<88x512xf32, #tpu.memory_space<vmem>>, vector<1x1xf32>
    %c9 = arith.constant 9 : index
    %c0_86 = arith.constant 0 : index
    %344 = vector.load %arg1[%c9, %c0_86] : memref<88x512xf32, #tpu.memory_space<vmem>>, vector<1x1xf32>
    %345 = vector.broadcast %341 : vector<1x128xf32> to vector<16x128xf32>
    %346 = arith.mulf %340, %345 : vector<16x128xf32>
    %cst_87 = arith.constant dense<0.000000e+00> : vector<16xf32>
    %347 = vector.multi_reduction <add>, %346, %cst_87 [1] : vector<16x128xf32> to vector<16xf32>
    %348 = vector.shape_cast %347 : vector<16xf32> to vector<16x1xf32>
    %349 = vector.broadcast %342 : vector<1x1xf32> to vector<16x1xf32>
    %350 = arith.addf %348, %349 : vector<16x1xf32>
    %351 = arith.mulf %350, %305 : vector<16x1xf32>
    %cst_88 = arith.constant dense<0.000000e+00> : vector<1xf32>
    %352 = vector.multi_reduction <add>, %351, %cst_88 [0] : vector<16x1xf32> to vector<1xf32>
    %353 = vector.shape_cast %352 : vector<1xf32> to vector<1x1xf32>
    %cst_89 = arith.constant 0.0833333358 : f32
    %354 = vector.broadcast %cst_89 : f32 to vector<1x1xf32>
    %355 = arith.mulf %353, %354 : vector<1x1xf32>
    %356 = vector.broadcast %355 : vector<1x1xf32> to vector<16x1xf32>
    %357 = arith.subf %350, %356 : vector<16x1xf32>
    %358 = arith.mulf %357, %305 : vector<16x1xf32>
    %359 = arith.mulf %358, %358 : vector<16x1xf32>
    %cst_90 = arith.constant dense<0.000000e+00> : vector<1xf32>
    %360 = vector.multi_reduction <add>, %359, %cst_90 [0] : vector<16x1xf32> to vector<1xf32>
    %361 = vector.shape_cast %360 : vector<1xf32> to vector<1x1xf32>
    %cst_91 = arith.constant 0.0833333358 : f32
    %362 = vector.broadcast %cst_91 : f32 to vector<1x1xf32>
    %363 = arith.mulf %361, %362 : vector<1x1xf32>
    %364 = vector.broadcast %355 : vector<1x1xf32> to vector<16x1xf32>
    %365 = arith.subf %350, %364 : vector<16x1xf32>
    %cst_92 = arith.constant 9.99999974E-6 : f32
    %366 = vector.broadcast %cst_92 : f32 to vector<1x1xf32>
    %367 = arith.addf %363, %366 : vector<1x1xf32>
    %368 = math.rsqrt %367 : vector<1x1xf32>
    %369 = vector.broadcast %368 : vector<1x1xf32> to vector<16x1xf32>
    %370 = arith.mulf %365, %369 : vector<16x1xf32>
    %371 = vector.broadcast %343 : vector<1x1xf32> to vector<16x1xf32>
    %372 = arith.mulf %370, %371 : vector<16x1xf32>
    %373 = vector.broadcast %344 : vector<1x1xf32> to vector<16x1xf32>
    %374 = arith.addf %372, %373 : vector<16x1xf32>
    %cst_93 = arith.constant 0.000000e+00 : f32
    %375 = vector.broadcast %cst_93 : f32 to vector<16x1xf32>
    %376 = arith.maximumf %374, %375 : vector<16x1xf32>
    %c0_94 = arith.constant 0 : index
    %c0_95 = arith.constant 0 : index
    %377 = vector.load %arg3[%c0_94, %c0_95] : memref<16x1xf32, #tpu.memory_space<vmem>>, vector<16x1xf32>
    tpu.vector_store %arg3[%c0_94, %c0_95], %376 {strides = array<i32>} : memref<16x1xf32, #tpu.memory_space<vmem>>, vector<16x1xf32>,
    return
  }
}

</mosaic_0001>

<bundles_post_ra>
// kernel: tpu_custom_call.1
= control target key start
LH: loop header
LB: loop body
LE: loop exit
PB: predicated region body
PF: predicated region fallthrough
CT: control target
= control target key end

     0   :  { %8 = vsyncpa [#allocation4], 0  ;;  %s6363_s12 = smov [#allocation3]   ;;  %s8044_s0 = inlined_call_operand.vmem [shape: f32[256,2], index: 0, kind: input, shape index: {}]   ;;  %s8045_s1 = inlined_call_operand.hbm [shape: f32[88,512], index: 1, kind: input, shape index: {}]   ;;  %s8046_s2 = inlined_call_operand.vmem [shape: f32[16,1], index: 2, kind: input, shape index: {}]   ;;  %s8047_s3 = inlined_call_operand.vmem [shape: f32[16,1], index: 3, kind: output, shape index: {}]  }
   0x1   :  { %s16_s13 = sshll.u32 %s6363_s12, 4  ;;  %s6339_s16 = scalar_lea.hbm %s8045_s1, 5632  ;;  %s17_s13 = int_to_ptr.vmem [resolvable:$true] %s16_s13 }
   0x2   :  { %p6340_p0 = scmp.ne.s32.totalorder %s8045_s1, %s6339_s16  ;;  %p6343_p1 = scmp.lt.u32.totalorder %s6339_s16, %s8045_s1 }
   0x4   :  { %p6345_p2 = pnand %p6343_p1, %p6340_p0 }
   0x6   :  { %6348 = shalt.err (!%p6345_p2)
}
   0x7   :  { %s6349_s21 = scalar_lea.vmem %s17_s13, 5632  ;;  %p6354_p4 = scmp.lt.s32.totalorder %s17_s13, %s17_s13 }
   0x8   :  { %p6350_p3 = scmp.ne.s32.totalorder %s17_s13, %s6349_s21  ;;  %p6355_p5 = scmp.lt.s32.totalorder %s6349_s21, %s6349_s21 }
   0xa   :  { %p6356_p6 = por %p6355_p5, %p6354_p4 }
   0xc   :  { %p6357_p7 = pnand %p6356_p6, %p6350_p3 }
   0xe   :  { %6360 = shalt.err (!%p6357_p7)
}
   0xf   :  { %s6364_s22 = smov 512   ;;  %s6365_s23 = smov 32  }
  0x10   :  { %22 = dma.hbm_to_vmem [thread:$0]  %s8045_s1, 5632, %s17_s13, [#allocation4], %s6364_s22, %s6364_s22, %s6365_s23  }
  0x11   :  { %6361 = dma.done.wait [#allocation4], 5632  }
  0x12   :  { %6362 = vsyncadd [#allocation4], 4294961664  ;;  %vm159_vm0 = vcmask 1041408   ;;  %vm62_vm1 = vcmask 15360   ;;  %v60_v0 = vld [vmem:[#allocation3 + $0x40] sm:$0x3] }
  0x13   :  { %v452_v1 = vld [vmem:[#allocation3 + $0x48] sm:$0x3]  ;;  %v6403_v2 = vld [vmem:[%s8044_s0] sm:$0xff]  ;;  %5534 = vmatprep.subr.msk.mxu0 %vm159_vm0, %v60_v0  ;;  %v842_v4 = vld [vmem:[#allocation3 + $0x50] sm:$0x3]  ;;  %v8048_v60 = vmov 0.0  }
  0x14   :  { %5584 = vmatprep.subr.msk.mxu1 %vm159_vm0, %v452_v1  ;;  %v6410_v3 = vld [vmem:[%s8044_s0 + $0x8] sm:$0xff]  ;;  %5535 = vmatpush3.msk.msra.mxu0 %vm159_vm0, %v60_v0  ;;  %v1232_v5 = vld [vmem:[#allocation3 + $0x58] sm:$0x3]  ;;  %v6425_v6 = vld [vmem:[%s8044_s0 + $0x10] sm:$0xff]  ;;  %vm1618_vm2 = vcmask 261120   ;;  %vm5158_vm3 = vcmask 7168  }
  0x15   :  { %5536 = vmatprep.mubr.msk.f32.mxu0 %vm62_vm1, %v6403_v2  ;;  %5585 = vmatpush3.msk.msra.mxu1 %vm159_vm0, %v452_v1  ;;  %v6432_v7 = vld [vmem:[%s8044_s0 + $0x18] sm:$0xff]  ;;  %v6439_v8 = vld [vmem:[%s8044_s0 + $0x20] sm:$0xff]  ;;  %v6456_v9 = vld [vmem:[%s8044_s0 + $0x28] sm:$0xff] }
  0x16   :  { %5586 = vmatprep.mubr.msk.f32.mxu1 %vm62_vm1, %v6403_v2  ;;  %5537 = vmatmul.mubr.msk.f32.vlgmr.msra.gmra.mrb[0].mxu0 %vm62_vm1, %v6410_v3  ;;  %v6461_v10 = vld [vmem:[%s8044_s0 + $0x30] sm:$0xff]  ;;  %v1591_v11 = vld [vmem:[#allocation3 + $0x68] sm:$0xff]  ;;  %v1593_v13 = vld [vmem:[#allocation3 + $0x78] sm:$0xff] }
  0x17   :  { %5587 = vmatmul.mubr.msk.f32.vlgmr.msra.gmra.mrb[0].mxu1 %vm62_vm1, %v6410_v3  ;;  %5634 = vmatprep.subr.msk.mxu0 %vm159_vm0, %v842_v4  ;;  %v1595_v12 = vld [vmem:[#allocation3 + $0x88] sm:$0xff]  ;;  %v6474_v14 = vld [vmem:[%s8044_s0 + $0x38] sm:$0xff]  ;;  %v6481_v17 = vld [vmem:[%s8044_s0 + $0x40] sm:$0xff] }
  0x18   :  { %5684 = vmatprep.subr.msk.mxu1 %vm159_vm0, %v1232_v5  ;;  %5635 = vmatpush3.msk.msra.mxu0 %vm159_vm0, %v842_v4  ;;  %v6476_v15 = vpack.c.bf16 %v1595_v12, %v1591_v11  ;;  %v1597_v16 = vld [vmem:[#allocation3 + $0x98] sm:$0xff]  ;;  %v6497_v19 = vld [vmem:[%s8044_s0 + $0x48] sm:$0xff]  ;;  %v6502_v20 = vld [vmem:[%s8044_s0 + $0x50] sm:$0xff] }
  0x19   :  { %5685 = vmatpush3.msk.msra.mxu1 %vm159_vm0, %v1232_v5  ;;  %5539 = vmatprep.mubr.msk.f32.mxu0 %vm62_vm1, %v6425_v6  ;;  %v6483_v18 = vpack.c.bf16 %v1597_v16, %v1593_v13  ;;  %v6516_v21 = vld [vmem:[%s8044_s0 + $0x58] sm:$0xff]  ;;  %v6521_v22 = vld [vmem:[%s8044_s0 + $0x60] sm:$0xff]  ;;  %v6534_v23 = vld [vmem:[%s8044_s0 + $0x68] sm:$0xff] }
  0x1a   :  { %5589 = vmatprep.mubr.msk.f32.mxu1 %vm62_vm1, %v6425_v6  ;;  %5540 = vmatmul.mubr.msk.f32.gmra.mrb[2].mxu0 %vm62_vm1, %v6432_v7  ;;  %v6539_v24 = vld [vmem:[%s8044_s0 + $0x70] sm:$0xff]  ;;  %v6552_v25 = vld [vmem:[%s8044_s0 + $0x78] sm:$0xff]  ;;  %v6557_v26 = vld [vmem:[%s8044_s0 + $0x80] sm:$0xff] }
  0x1b   :  { %5590 = vmatmul.mubr.msk.f32.gmra.mrb[2].mxu1 %vm62_vm1, %v6432_v7  ;;  %5542 = vmatprep.mubr.msk.f32.mxu0 %vm62_vm1, %v6439_v8  ;;  %v6570_v27 = vld [vmem:[%s8044_s0 + $0x88] sm:$0xff]  ;;  %v6575_v28 = vld [vmem:[%s8044_s0 + $0x90] sm:$0xff]  ;;  %v6588_v29 = vld [vmem:[%s8044_s0 + $0x98] sm:$0xff] }
  0x1c   :  { %5592 = vmatprep.mubr.msk.f32.mxu1 %vm62_vm1, %v6439_v8  ;;  %5746 = vmatprep.subr.bf16.mxu0 %v6476_v15  ;;  %v6593_v30 = vld [vmem:[%s8044_s0 + $0xa0] sm:$0xff]  ;;  %v6606_v31 = vld [vmem:[%s8044_s0 + $0xa8] sm:$0xff]  ;;  %v6611_v32 = vld [vmem:[%s8044_s0 + $0xb0] sm:$0xff] }
  0x1d   :  { %5754 = vmatprep.subr.bf16.mxu1 %v6483_v18  ;;  %v6624_v33 = vld [vmem:[%s8044_s0 + $0xb8] sm:$0xff]  ;;  %v6629_v34 = vld [vmem:[%s8044_s0 + $0xc0] sm:$0xff]  ;;  %v6642_v35 = vld [vmem:[%s8044_s0 + $0xc8] sm:$0xff] }
  0x1e   :  { %5543 = vmatmul.mubr.msk.f32.gmra.mrb[4].mxu0 %vm62_vm1, %v6456_v9  ;;  %v6647_v36 = vld [vmem:[%s8044_s0 + $0xd0] sm:$0xff]  ;;  %v6660_v37 = vld [vmem:[%s8044_s0 + $0xd8] sm:$0xff]  ;;  %v6665_v38 = vld [vmem:[%s8044_s0 + $0xe0] sm:$0xff] }
  0x1f   :  { %5593 = vmatmul.mubr.msk.f32.gmra.mrb[4].mxu1 %vm62_vm1, %v6456_v9  ;;  %5545 = vmatprep.mubr.msk.f32.mxu0 %vm62_vm1, %v6461_v10  ;;  %v6678_v39 = vld [vmem:[%s8044_s0 + $0xe8] sm:$0xff]  ;;  %v6683_v40 = vld [vmem:[%s8044_s0 + $0xf0] sm:$0xff]  ;;  %v6696_v41 = vld [vmem:[%s8044_s0 + $0xf8] sm:$0xff] }
  0x20   :  { %5595 = vmatprep.mubr.msk.f32.mxu1 %vm62_vm1, %v6461_v10  ;;  %v1590_v42 = vld [vmem:[#allocation3 + $0x60] sm:$0xff]  ;;  %v1592_v44 = vld [vmem:[#allocation3 + $0x70] sm:$0xff]  ;;  %v1599_v46 = vld [vmem:[#allocation3 + $0xa8] sm:$0xff] }
  0x21   :  { %v1594_v43 = vld [vmem:[#allocation3 + $0x80] sm:$0xff]  ;;  %v1596_v45 = vld [vmem:[#allocation3 + $0x90] sm:$0xff]  ;;  %v1603_v47 = vld [vmem:[#allocation3 + $0xc8] sm:$0xff] }
  0x22   :  { %5546 = vmatmul.mubr.msk.f32.gmra.mrb[6].mxu0 %vm62_vm1, %v6474_v14  ;;  %v1601_v48 = vld [vmem:[#allocation3 + $0xb8] sm:$0xff]  ;;  %v6706_v50 = vpack.c.bf16 %v1594_v43, %v1590_v42  ;;  %v6708_v51 = vpack.c.bf16 %v1596_v45, %v1592_v44  ;;  %v1598_v52 = vld [vmem:[#allocation3 + $0xa0] sm:$0xff]  ;;  %v6710_v53 = vpack.c.bf16 %v1603_v47, %v1599_v46  ;;  %v1600_v56 = vld [vmem:[#allocation3 + $0xb0] sm:$0xff] }
  0x23   :  { %5596 = vmatmul.mubr.msk.f32.gmra.mrb[6].mxu1 %vm62_vm1, %v6474_v14  ;;  %5548 = vmatprep.mubr.msk.f32.mxu0 %vm62_vm1, %v6481_v17  ;;  %v1605_v49 = vld [vmem:[#allocation3 + $0xd8] sm:$0xff]  ;;  %v1602_v55 = vld [vmem:[#allocation3 + $0xc0] sm:$0xff]  ;;  %v1604_v57 = vld [vmem:[#allocation3 + $0xd0] sm:$0xff] }
  0x24   :  { %5598 = vmatprep.mubr.msk.f32.mxu1 %vm62_vm1, %v6481_v17  ;;  %v6712_v54 = vpack.c.bf16 %v1605_v49, %v1601_v48  ;;  %v6724_v58 = vpack.c.bf16 %v1602_v55, %v1598_v52  ;;  %v6726_v59 = vpack.c.bf16 %v1604_v57, %v1600_v56  ;;  %v6876_v1 = vld [vmem:[#allocation3] ss:$0 sm:$0xff] }
  0x26   :  { %5549 = vmatmul.mubr.msk.f32.gmra.mrb[8].mxu0 %vm62_vm1, %v6497_v19 }
  0x27   :  { %5599 = vmatmul.mubr.msk.f32.gmra.mrb[8].mxu1 %vm62_vm1, %v6497_v19  ;;  %5551 = vmatprep.mubr.msk.f32.mxu0 %vm62_vm1, %v6502_v20 }
  0x28   :  { %5601 = vmatprep.mubr.msk.f32.mxu1 %vm62_vm1, %v6502_v20 }
  0x2a   :  { %5552 = vmatmul.mubr.msk.f32.gmra.mrb[10].mxu0 %vm62_vm1, %v6516_v21 }
  0x2b   :  { %5602 = vmatmul.mubr.msk.f32.gmra.mrb[10].mxu1 %vm62_vm1, %v6516_v21  ;;  %5554 = vmatprep.mubr.msk.f32.mxu0 %vm62_vm1, %v6521_v22 }
  0x2c   :  { %5604 = vmatprep.mubr.msk.f32.mxu1 %vm62_vm1, %v6521_v22 }
  0x2e   :  { %5555 = vmatmul.mubr.msk.f32.gmra.mrb[12].mxu0 %vm62_vm1, %v6534_v23 }
  0x2f   :  { %5605 = vmatmul.mubr.msk.f32.gmra.mrb[12].mxu1 %vm62_vm1, %v6534_v23  ;;  %5557 = vmatprep.mubr.msk.f32.mxu0 %vm62_vm1, %v6539_v24 }
  0x30   :  { %5607 = vmatprep.mubr.msk.f32.mxu1 %vm62_vm1, %v6539_v24 }
  0x32   :  { %5558 = vmatmul.mubr.msk.f32.gmra.mrb[14].mxu0 %vm62_vm1, %v6552_v25 }
  0x33   :  { %5608 = vmatmul.mubr.msk.f32.gmra.mrb[14].mxu1 %vm62_vm1, %v6552_v25  ;;  %5560 = vmatprep.mubr.msk.f32.mxu0 %vm62_vm1, %v6557_v26 }
  0x34   :  { %5610 = vmatprep.mubr.msk.f32.mxu1 %vm62_vm1, %v6557_v26 }
  0x36   :  { %5561 = vmatmul.mubr.msk.f32.gmra.mrb[16].mxu0 %vm62_vm1, %v6570_v27 }
  0x37   :  { %5611 = vmatmul.mubr.msk.f32.gmra.mrb[16].mxu1 %vm62_vm1, %v6570_v27  ;;  %5563 = vmatprep.mubr.msk.f32.mxu0 %vm62_vm1, %v6575_v28 }
  0x38   :  { %5613 = vmatprep.mubr.msk.f32.mxu1 %vm62_vm1, %v6575_v28 }
  0x3a   :  { %5564 = vmatmul.mubr.msk.f32.gmra.mrb[18].mxu0 %vm62_vm1, %v6588_v29 }
  0x3b   :  { %5614 = vmatmul.mubr.msk.f32.gmra.mrb[18].mxu1 %vm62_vm1, %v6588_v29  ;;  %5566 = vmatprep.mubr.msk.f32.mxu0 %vm62_vm1, %v6593_v30 }
  0x3c   :  { %5616 = vmatprep.mubr.msk.f32.mxu1 %vm62_vm1, %v6593_v30 }
  0x3e   :  { %5567 = vmatmul.mubr.msk.f32.gmra.mrb[20].mxu0 %vm62_vm1, %v6606_v31 }
  0x3f   :  { %5617 = vmatmul.mubr.msk.f32.gmra.mrb[20].mxu1 %vm62_vm1, %v6606_v31  ;;  %5569 = vmatprep.mubr.msk.f32.mxu0 %vm62_vm1, %v6611_v32 }
  0x40   :  { %5619 = vmatprep.mubr.msk.f32.mxu1 %vm62_vm1, %v6611_v32 }
  0x42   :  { %5570 = vmatmul.mubr.msk.f32.gmra.mrb[22].mxu0 %vm62_vm1, %v6624_v33 }
  0x43   :  { %5620 = vmatmul.mubr.msk.f32.gmra.mrb[22].mxu1 %vm62_vm1, %v6624_v33  ;;  %5572 = vmatprep.mubr.msk.f32.mxu0 %vm62_vm1, %v6629_v34 }
  0x44   :  { %5622 = vmatprep.mubr.msk.f32.mxu1 %vm62_vm1, %v6629_v34 }
  0x46   :  { %5573 = vmatmul.mubr.msk.f32.gmra.mrb[24].mxu0 %vm62_vm1, %v6642_v35 }
  0x47   :  { %5623 = vmatmul.mubr.msk.f32.gmra.mrb[24].mxu1 %vm62_vm1, %v6642_v35  ;;  %5575 = vmatprep.mubr.msk.f32.mxu0 %vm62_vm1, %v6647_v36 }
  0x48   :  { %5625 = vmatprep.mubr.msk.f32.mxu1 %vm62_vm1, %v6647_v36 }
  0x4a   :  { %5576 = vmatmul.mubr.msk.f32.gmra.mrb[26].mxu0 %vm62_vm1, %v6660_v37 }
  0x4b   :  { %5626 = vmatmul.mubr.msk.f32.gmra.mrb[26].mxu1 %vm62_vm1, %v6660_v37  ;;  %5578 = vmatprep.mubr.msk.f32.mxu0 %vm62_vm1, %v6665_v38 }
  0x4c   :  { %5628 = vmatprep.mubr.msk.f32.mxu1 %vm62_vm1, %v6665_v38 }
  0x4e   :  { %5579 = vmatmul.mubr.msk.f32.gmra.mrb[28].mxu0 %vm62_vm1, %v6678_v39 }
  0x4f   :  { %5629 = vmatmul.mubr.msk.f32.gmra.mrb[28].mxu1 %vm62_vm1, %v6678_v39  ;;  %5581 = vmatprep.mubr.msk.f32.mxu0 %vm62_vm1, %v6683_v40 }
  0x50   :  { %5631 = vmatprep.mubr.msk.f32.mxu1 %vm62_vm1, %v6683_v40 }
  0x52   :  { %5582 = vmatmul.mubr.msk.f32.gmra.mrb[30].mxu0 %vm62_vm1, %v6696_v41 }
  0x53   :  { %5632 = vmatmul.mubr.msk.f32.gmra.mrb[30].mxu1 %vm62_vm1, %v6696_v41  ;;  %5636 = vmatprep.mubr.msk.f32.mxu0 %vm62_vm1, %v6403_v2 }
  0x54   :  { %5686 = vmatprep.mubr.msk.f32.mxu1 %vm62_vm1, %v6403_v2  ;;  %v6878_v2 = vld [vmem:[#allocation3 + $0x8] ss:$0 sm:$0xff] }
  0x56   :  { %5637 = vmatmul.mubr.msk.f32.vlgmr.msra.gmra.mrb[32].mxu0 %vm62_vm1, %v6410_v3 }
  0x57   :  { %5687 = vmatmul.mubr.msk.f32.vlgmr.msra.gmra.mrb[32].mxu1 %vm62_vm1, %v6410_v3  ;;  %5748 = vmatpush1.bf16.msra.mxu0 %v6706_v50 }
  0x58   :  { %5756 = vmatpush1.bf16.msra.mxu1 %v6708_v51  ;;  %5639 = vmatprep.mubr.msk.f32.mxu0 %vm62_vm1, %v6425_v6 }
  0x59   :  { %5689 = vmatprep.mubr.msk.f32.mxu1 %vm62_vm1, %v6425_v6  ;;  %5750 = vmatprep.subr.bf16.mxu0 %v6710_v53 }
  0x5a   :  { %5758 = vmatprep.subr.bf16.mxu1 %v6712_v54  ;;  %5640 = vmatmul.mubr.msk.f32.gmra.mrb[34].mxu0 %vm62_vm1, %v6432_v7 }
  0x5b   :  { %5690 = vmatmul.mubr.msk.f32.gmra.mrb[34].mxu1 %vm62_vm1, %v6432_v7  ;;  %5642 = vmatprep.mubr.msk.f32.mxu0 %vm62_vm1, %v6439_v8 }
  0x5c   :  { %5692 = vmatprep.mubr.msk.f32.mxu1 %vm62_vm1, %v6439_v8  ;;  %5752 = vmatpush1.bf16.msra.mxu0 %v6724_v58 }
  0x5d   :  { %5760 = vmatpush1.bf16.msra.mxu1 %v6726_v59  ;;  %5762 = vmatprep.subr.bf16.mxu0 %v6476_v15 }
  0x5e   :  { %5770 = vmatprep.subr.bf16.mxu1 %v6483_v18  ;;  %5643 = vmatmul.mubr.msk.f32.gmra.mrb[36].mxu0 %vm62_vm1, %v6456_v9 }
  0x5f   :  { %5693 = vmatmul.mubr.msk.f32.gmra.mrb[36].mxu1 %vm62_vm1, %v6456_v9  ;;  %5645 = vmatprep.mubr.msk.f32.mxu0 %vm62_vm1, %v6461_v10 }
  0x60   :  { %5695 = vmatprep.mubr.msk.f32.mxu1 %vm62_vm1, %v6461_v10 }
  0x62   :  { %5646 = vmatmul.mubr.msk.f32.gmra.mrb[38].mxu0 %vm62_vm1, %v6474_v14 }
  0x63   :  { %5696 = vmatmul.mubr.msk.f32.gmra.mrb[38].mxu1 %vm62_vm1, %v6474_v14  ;;  %5648 = vmatprep.mubr.msk.f32.mxu0 %vm62_vm1, %v6481_v17 }
  0x64   :  { %5698 = vmatprep.mubr.msk.f32.mxu1 %vm62_vm1, %v6481_v17 }
  0x66   :  { %5649 = vmatmul.mubr.msk.f32.gmra.mrb[40].mxu0 %vm62_vm1, %v6497_v19 }
  0x67   :  { %5699 = vmatmul.mubr.msk.f32.gmra.mrb[40].mxu1 %vm62_vm1, %v6497_v19  ;;  %5651 = vmatprep.mubr.msk.f32.mxu0 %vm62_vm1, %v6502_v20 }
  0x68   :  { %5701 = vmatprep.mubr.msk.f32.mxu1 %vm62_vm1, %v6502_v20 }
  0x6a   :  { %5652 = vmatmul.mubr.msk.f32.gmra.mrb[42].mxu0 %vm62_vm1, %v6516_v21 }
  0x6b   :  { %5702 = vmatmul.mubr.msk.f32.gmra.mrb[42].mxu1 %vm62_vm1, %v6516_v21  ;;  %5654 = vmatprep.mubr.msk.f32.mxu0 %vm62_vm1, %v6521_v22 }
  0x6c   :  { %5704 = vmatprep.mubr.msk.f32.mxu1 %vm62_vm1, %v6521_v22 }
  0x6e   :  { %5655 = vmatmul.mubr.msk.f32.gmra.mrb[44].mxu0 %vm62_vm1, %v6534_v23 }
  0x6f   :  { %5705 = vmatmul.mubr.msk.f32.gmra.mrb[44].mxu1 %vm62_vm1, %v6534_v23  ;;  %5657 = vmatprep.mubr.msk.f32.mxu0 %vm62_vm1, %v6539_v24 }
  0x70   :  { %5707 = vmatprep.mubr.msk.f32.mxu1 %vm62_vm1, %v6539_v24 }
  0x72   :  { %5658 = vmatmul.mubr.msk.f32.gmra.mrb[46].mxu0 %vm62_vm1, %v6552_v25 }
  0x73   :  { %5708 = vmatmul.mubr.msk.f32.gmra.mrb[46].mxu1 %vm62_vm1, %v6552_v25  ;;  %5660 = vmatprep.mubr.msk.f32.mxu0 %vm62_vm1, %v6557_v26 }
  0x74   :  { %5710 = vmatprep.mubr.msk.f32.mxu1 %vm62_vm1, %v6557_v26 }
  0x76   :  { %5661 = vmatmul.mubr.msk.f32.gmra.mrb[48].mxu0 %vm62_vm1, %v6570_v27 }
  0x77   :  { %5711 = vmatmul.mubr.msk.f32.gmra.mrb[48].mxu1 %vm62_vm1, %v6570_v27  ;;  %5663 = vmatprep.mubr.msk.f32.mxu0 %vm62_vm1, %v6575_v28 }
  0x78   :  { %5713 = vmatprep.mubr.msk.f32.mxu1 %vm62_vm1, %v6575_v28 }
  0x7a   :  { %5664 = vmatmul.mubr.msk.f32.gmra.mrb[50].mxu0 %vm62_vm1, %v6588_v29 }
  0x7b   :  { %5714 = vmatmul.mubr.msk.f32.gmra.mrb[50].mxu1 %vm62_vm1, %v6588_v29  ;;  %5666 = vmatprep.mubr.msk.f32.mxu0 %vm62_vm1, %v6593_v30 }
  0x7c   :  { %5716 = vmatprep.mubr.msk.f32.mxu1 %vm62_vm1, %v6593_v30 }
  0x7e   :  { %5667 = vmatmul.mubr.msk.f32.gmra.mrb[52].mxu0 %vm62_vm1, %v6606_v31 }
  0x7f   :  { %5717 = vmatmul.mubr.msk.f32.gmra.mrb[52].mxu1 %vm62_vm1, %v6606_v31  ;;  %5669 = vmatprep.mubr.msk.f32.mxu0 %vm62_vm1, %v6611_v32 }
  0x80   :  { %5719 = vmatprep.mubr.msk.f32.mxu1 %vm62_vm1, %v6611_v32 }
  0x82   :  { %5670 = vmatmul.mubr.msk.f32.gmra.mrb[54].mxu0 %vm62_vm1, %v6624_v33 }
  0x83   :  { %5720 = vmatmul.mubr.msk.f32.gmra.mrb[54].mxu1 %vm62_vm1, %v6624_v33  ;;  %5672 = vmatprep.mubr.msk.f32.mxu0 %vm62_vm1, %v6629_v34 }
  0x84   :  { %5722 = vmatprep.mubr.msk.f32.mxu1 %vm62_vm1, %v6629_v34 }
  0x86   :  { %5673 = vmatmul.mubr.msk.f32.gmra.mrb[56].mxu0 %vm62_vm1, %v6642_v35 }
  0x87   :  { %5723 = vmatmul.mubr.msk.f32.gmra.mrb[56].mxu1 %vm62_vm1, %v6642_v35  ;;  %5675 = vmatprep.mubr.msk.f32.mxu0 %vm62_vm1, %v6647_v36 }
  0x88   :  { %5725 = vmatprep.mubr.msk.f32.mxu1 %vm62_vm1, %v6647_v36 }
  0x8a   :  { %5676 = vmatmul.mubr.msk.f32.gmra.mrb[58].mxu0 %vm62_vm1, %v6660_v37 }
  0x8b   :  { %5726 = vmatmul.mubr.msk.f32.gmra.mrb[58].mxu1 %vm62_vm1, %v6660_v37  ;;  %5678 = vmatprep.mubr.msk.f32.mxu0 %vm62_vm1, %v6665_v38 }
  0x8c   :  { %5728 = vmatprep.mubr.msk.f32.mxu1 %vm62_vm1, %v6665_v38 }
  0x8e   :  { %5679 = vmatmul.mubr.msk.f32.gmra.mrb[60].mxu0 %vm62_vm1, %v6678_v39 }
  0x8f   :  { %5729 = vmatmul.mubr.msk.f32.gmra.mrb[60].mxu1 %vm62_vm1, %v6678_v39  ;;  %5681 = vmatprep.mubr.msk.f32.mxu0 %vm62_vm1, %v6683_v40 }
  0x90   :  { %5731 = vmatprep.mubr.msk.f32.mxu1 %vm62_vm1, %v6683_v40 }
  0x92   :  { %5682 = vmatmul.mubr.msk.f32.gmra.mrb[62].mxu0 %vm62_vm1, %v6696_v41 }
  0x93   :  { %5732 = vmatmul.mubr.msk.f32.gmra.mrb[62].mxu1 %vm62_vm1, %v6696_v41  ;;  %1686 = vmatprep.mubr.f32.mxu0 %v8048_v60 }
  0x94   :  { %1763 = vmatprep.mubr.f32.mxu1 %v8048_v60 }
  0x96   :  { %1687 = vmatmul.mubr.f32.vlgmr.msra.gmra.mrb[64].mxu0 %v8048_v60 }
  0x97   :  { %1764 = vmatmul.mubr.f32.vlgmr.msra.gmra.mrb[64].mxu1 %v8048_v60  ;;  %1692 = vmatprep.mubr.f32.mxu0 %v8048_v60 }
  0x98   :  { %1769 = vmatprep.mubr.f32.mxu1 %v8048_v60  ;;  %5764 = vmatpush1.bf16.msra.mxu0 %v6706_v50 }
  0x99   :  { %5772 = vmatpush1.bf16.msra.mxu1 %v6708_v51  ;;  %5766 = vmatprep.subr.bf16.mxu0 %v6710_v53 }
  0x9a   :  { %5774 = vmatprep.subr.bf16.mxu1 %v6712_v54  ;;  %1693 = vmatmul.mubr.f32.gmra.mrb[66].mxu0 %v8048_v60 }
  0x9b   :  { %1770 = vmatmul.mubr.f32.gmra.mrb[66].mxu1 %v8048_v60  ;;  %1938 = vmatprep.mubr.f32.mxu0 %v8048_v60 }
  0x9c   :  { %2015 = vmatprep.mubr.f32.mxu1 %v8048_v60  ;;  %5768 = vmatpush1.bf16.msra.mxu0 %v6724_v58 }
  0x9d   :  { %5776 = vmatpush1.bf16.msra.mxu1 %v6726_v59  ;;  %5778 = vmatprep.subr.bf16.mxu0 %v6476_v15 }
  0x9e   :  { %5786 = vmatprep.subr.bf16.mxu1 %v6483_v18 }
  0xe9   :  { %v6868_v61 = vpop.f32.mrb[0].mxu0 }
  0xea   :  { %v6870_v62 = vpop.f32.mrb[0].mxu1  ;;  %v6872_v63 = vpop.f32.mrb[1].mxu0 }
  0xeb   :  { %v6874_v0 = vpop.f32.mrb[1].mxu1 }
  0xed   :  { %v5541_v3 = vpop.f32.mrb[2].mxu0 }
  0xee   :  { %v5591_v4 = vpop.f32.mrb[2].mxu1  ;;  %v6881_v5 = vadd.f32 %v5541_v3, %v6876_v1  ;;  %v239_v7 = vpop.f32.mrb[3].mxu0 }
  0xef   :  { %v6884_v6 = vadd.f32 %v5591_v4, %v6878_v2  ;;  %v629_v8 = vpop.f32.mrb[3].mxu1  ;;  %v6887_v9 = vadd.f32 %v239_v7, %v6876_v1 }
  0xf0   :  { %v6890_v10 = vadd.f32 %v629_v8, %v6878_v2 }
  0xf1   :  { %v5544_v11 = vpop.f32.mrb[4].mxu0 }
  0xf2   :  { %v5594_v12 = vpop.f32.mrb[4].mxu1  ;;  %v6893_v13 = vadd.f32 %v5544_v11, %v6876_v1  ;;  %v249_v16 = vpop.f32.mrb[5].mxu0 }
  0xf3   :  { %v6896_v14 = vadd.f32 %v5594_v12, %v6878_v2  ;;  %v639_v17 = vpop.f32.mrb[5].mxu1  ;;  %v6899_v19 = vadd.f32 %v249_v16, %v6876_v1 }
  0xf4   :  { %v6902_v20 = vadd.f32 %v639_v17, %v6878_v2 }
  0xf5   :  { %v5547_v21 = vpop.f32.mrb[6].mxu0 }
  0xf6   :  { %v5597_v22 = vpop.f32.mrb[6].mxu1  ;;  %v6905_v23 = vadd.f32 %v5547_v21, %v6876_v1  ;;  %v259_v25 = vpop.f32.mrb[7].mxu0 }
  0xf7   :  { %v6908_v24 = vadd.f32 %v5597_v22, %v6878_v2  ;;  %v649_v26 = vpop.f32.mrb[7].mxu1  ;;  %v6911_v27 = vadd.f32 %v259_v25, %v6876_v1 }
  0xf8   :  { %v6914_v28 = vadd.f32 %v649_v26, %v6878_v2 }
  0xf9   :  { %v5550_v29 = vpop.f32.mrb[8].mxu0 }
  0xfa   :  { %v5600_v30 = vpop.f32.mrb[8].mxu1  ;;  %v6917_v31 = vadd.f32 %v5550_v29, %v6876_v1  ;;  %v269_v33 = vpop.f32.mrb[9].mxu0 }
  0xfb   :  { %v6920_v32 = vadd.f32 %v5600_v30, %v6878_v2  ;;  %v659_v34 = vpop.f32.mrb[9].mxu1  ;;  %v6923_v35 = vadd.f32 %v269_v33, %v6876_v1 }
  0xfc   :  { %v6926_v36 = vadd.f32 %v659_v34, %v6878_v2 }
  0xfd   :  { %8050 = vst [vmem:[#allocation6_spill] sm:$0xff] %v6920_v32  ;;  %v5553_v37 = vpop.f32.mrb[10].mxu0 }
  0xfe   :  { %v5603_v38 = vpop.f32.mrb[10].mxu1  ;;  %v6929_v39 = vadd.f32 %v5553_v37, %v6876_v1  ;;  %v279_v41 = vpop.f32.mrb[11].mxu0 }
  0xff   :  { %v6932_v40 = vadd.f32 %v5603_v38, %v6878_v2  ;;  %v669_v42 = vpop.f32.mrb[11].mxu1  ;;  %v6935_v43 = vadd.f32 %v279_v41, %v6876_v1 }
 0x100   :  { %8051 = vst [vmem:[#allocation7_spill] sm:$0xff] %v6929_v39  ;;  %v6938_v44 = vadd.f32 %v669_v42, %v6878_v2 }
 0x101   :  { %8052 = vst [vmem:[#allocation8_spill] sm:$0xff] %v6932_v40  ;;  %8053 = vst [vmem:[#allocation9_spill] sm:$0xff] %v6935_v43  ;;  %v5556_v45 = vpop.f32.mrb[12].mxu0 }
 0x102   :  { %8054 = vst [vmem:[#allocation10_spill] sm:$0xff] %v6938_v44  ;;  %v5606_v46 = vpop.f32.mrb[12].mxu1  ;;  %v6941_v47 = vadd.f32 %v5556_v45, %v6876_v1  ;;  %v289_v49 = vpop.f32.mrb[13].mxu0 }
 0x103   :  { %v6944_v48 = vadd.f32 %v5606_v46, %v6878_v2  ;;  %v679_v52 = vpop.f32.mrb[13].mxu1  ;;  %v6947_v55 = vadd.f32 %v289_v49, %v6876_v1 }
 0x104   :  { %8055 = vst [vmem:[#allocation11_spill] sm:$0xff] %v6941_v47  ;;  %v6950_v56 = vadd.f32 %v679_v52, %v6878_v2 }
 0x105   :  { %8056 = vst [vmem:[#allocation12_spill] sm:$0xff] %v6944_v48  ;;  %8057 = vst [vmem:[#allocation13_spill] sm:$0xff] %v6947_v55  ;;  %v5559_v57 = vpop.f32.mrb[14].mxu0 }
 0x106   :  { %8058 = vst [vmem:[#allocation14_spill] sm:$0xff] %v6950_v56  ;;  %v5609_v3 = vpop.f32.mrb[14].mxu1  ;;  %v6953_v4 = vadd.f32 %v5559_v57, %v6876_v1  ;;  %v299_v8 = vpop.f32.mrb[15].mxu0 }
 0x107   :  { %v6956_v7 = vadd.f32 %v5609_v3, %v6878_v2  ;;  %v689_v11 = vpop.f32.mrb[15].mxu1  ;;  %v6959_v12 = vadd.f32 %v299_v8, %v6876_v1 }
 0x108   :  { %8059 = vst [vmem:[#allocation15_spill] sm:$0xff] %v6953_v4  ;;  %v6962_v16 = vadd.f32 %v689_v11, %v6878_v2 }
 0x109   :  { %8060 = vst [vmem:[#allocation16_spill] sm:$0xff] %v6956_v7  ;;  %8061 = vst [vmem:[#allocation17_spill] sm:$0xff] %v6959_v12  ;;  %v5562_v17 = vpop.f32.mrb[16].mxu0 }
 0x10a   :  { %8062 = vst [vmem:[#allocation18_spill] sm:$0xff] %v6962_v16  ;;  %v5612_v21 = vpop.f32.mrb[16].mxu1  ;;  %v6965_v22 = vadd.f32 %v5562_v17, %v6876_v1  ;;  %v309_v26 = vpop.f32.mrb[17].mxu0 }
 0x10b   :  { %v6968_v25 = vadd.f32 %v5612_v21, %v6878_v2  ;;  %v699_v29 = vpop.f32.mrb[17].mxu1  ;;  %v6971_v30 = vadd.f32 %v309_v26, %v6876_v1 }
 0x10c   :  { %8063 = vst [vmem:[#allocation19_spill] sm:$0xff] %v6965_v22  ;;  %v6974_v33 = vadd.f32 %v699_v29, %v6878_v2 }
 0x10d   :  { %8064 = vst [vmem:[#allocation20_spill] sm:$0xff] %v6968_v25  ;;  %8065 = vst [vmem:[#allocation21_spill] sm:$0xff] %v6971_v30  ;;  %v5565_v34 = vpop.f32.mrb[18].mxu0 }
 0x10e   :  { %8066 = vst [vmem:[#allocation22_spill] sm:$0xff] %v6974_v33  ;;  %v5615_v37 = vpop.f32.mrb[18].mxu1  ;;  %v6977_v38 = vadd.f32 %v5565_v34, %v6876_v1  ;;  %v319_v42 = vpop.f32.mrb[19].mxu0 }
 0x10f   :  { %v6980_v41 = vadd.f32 %v5615_v37, %v6878_v2  ;;  %v709_v45 = vpop.f32.mrb[19].mxu1  ;;  %v6983_v46 = vadd.f32 %v319_v42, %v6876_v1 }
 0x110   :  { %8067 = vst [vmem:[#allocation23_spill] sm:$0xff] %v6977_v38  ;;  %v6986_v49 = vadd.f32 %v709_v45, %v6878_v2 }
 0x111   :  { %8068 = vst [vmem:[#allocation24_spill] sm:$0xff] %v6980_v41  ;;  %8069 = vst [vmem:[#allocation25_spill] sm:$0xff] %v6983_v46  ;;  %v5568_v52 = vpop.f32.mrb[20].mxu0 }
 0x112   :  { %8070 = vst [vmem:[#allocation26_spill] sm:$0xff] %v6986_v49  ;;  %v5618_v57 = vpop.f32.mrb[20].mxu1  ;;  %v6989_v3 = vadd.f32 %v5568_v52, %v6876_v1  ;;  %v329_v11 = vpop.f32.mrb[21].mxu0 }
 0x113   :  { %v6992_v8 = vadd.f32 %v5618_v57, %v6878_v2  ;;  %v719_v17 = vpop.f32.mrb[21].mxu1  ;;  %v6995_v21 = vadd.f32 %v329_v11, %v6876_v1 }
 0x114   :  { %8071 = vst [vmem:[#allocation27_spill] sm:$0xff] %v6989_v3  ;;  %v6998_v26 = vadd.f32 %v719_v17, %v6878_v2 }
 0x115   :  { %8072 = vst [vmem:[#allocation28_spill] sm:$0xff] %v6992_v8  ;;  %8073 = vst [vmem:[#allocation29_spill] sm:$0xff] %v6995_v21  ;;  %v5571_v29 = vpop.f32.mrb[22].mxu0 }
 0x116   :  { %8074 = vst [vmem:[#allocation30_spill] sm:$0xff] %v6998_v26  ;;  %v5621_v34 = vpop.f32.mrb[22].mxu1  ;;  %v7001_v37 = vadd.f32 %v5571_v29, %v6876_v1  ;;  %v339_v45 = vpop.f32.mrb[23].mxu0 }
 0x117   :  { %v7004_v42 = vadd.f32 %v5621_v34, %v6878_v2  ;;  %v729_v52 = vpop.f32.mrb[23].mxu1  ;;  %v7007_v57 = vadd.f32 %v339_v45, %v6876_v1 }
 0x118   :  { %8075 = vst [vmem:[#allocation31_spill] sm:$0xff] %v7001_v37  ;;  %v7010_v60 = vadd.f32 %v729_v52, %v6878_v2 }
 0x119   :  { %8076 = vst [vmem:[#allocation32_spill] sm:$0xff] %v7004_v42  ;;  %8077 = vst [vmem:[#allocation33_spill] sm:$0xff] %v7007_v57  ;;  %v5574_v11 = vpop.f32.mrb[24].mxu0 }
 0x11a   :  { %8078 = vst [vmem:[#allocation34_spill] sm:$0xff] %v7010_v60  ;;  %v5624_v8 = vpop.f32.mrb[24].mxu1  ;;  %v7013_v17 = vadd.f32 %v5574_v11, %v6876_v1  ;;  %v349_v29 = vpop.f32.mrb[25].mxu0 }
 0x11b   :  { %v7016_v3 = vadd.f32 %v5624_v8, %v6878_v2  ;;  %v739_v37 = vpop.f32.mrb[25].mxu1  ;;  %v7019_v34 = vadd.f32 %v349_v29, %v6876_v1 }
 0x11c   :  { %8079 = vst [vmem:[#allocation35_spill] sm:$0xff] %v7013_v17  ;;  %v7022_v42 = vadd.f32 %v739_v37, %v6878_v2 }
 0x11d   :  { %8080 = vst [vmem:[#allocation36_spill] sm:$0xff] %v7016_v3  ;;  %8081 = vst [vmem:[#allocation37_spill] sm:$0xff] %v7019_v34  ;;  %v5577_v45 = vpop.f32.mrb[26].mxu0 }
 0x11e   :  { %8082 = vst [vmem:[#allocation38_spill] sm:$0xff] %v7022_v42  ;;  %v5627_v57 = vpop.f32.mrb[26].mxu1  ;;  %v7025_v52 = vadd.f32 %v5577_v45, %v6876_v1  ;;  %v359_v11 = vpop.f32.mrb[27].mxu0 }
 0x11f   :  { %v7028_v60 = vadd.f32 %v5627_v57, %v6878_v2  ;;  %v749_v17 = vpop.f32.mrb[27].mxu1  ;;  %v7031_v8 = vadd.f32 %v359_v11, %v6876_v1 }
 0x120   :  { %8083 = vst [vmem:[#allocation39_spill] sm:$0xff] %v7025_v52  ;;  %v7034_v3 = vadd.f32 %v749_v17, %v6878_v2 }
 0x121   :  { %8084 = vst [vmem:[#allocation40_spill] sm:$0xff] %v7028_v60  ;;  %8085 = vst [vmem:[#allocation41_spill] sm:$0xff] %v7031_v8  ;;  %v5580_v29 = vpop.f32.mrb[28].mxu0 }
 0x122   :  { %8086 = vst [vmem:[#allocation42_spill] sm:$0xff] %v7034_v3  ;;  %v5630_v34 = vpop.f32.mrb[28].mxu1  ;;  %v7037_v37 = vadd.f32 %v5580_v29, %v6876_v1  ;;  %v369_v45 = vpop.f32.mrb[29].mxu0 }
 0x123   :  { %v7040_v42 = vadd.f32 %v5630_v34, %v6878_v2  ;;  %v759_v52 = vpop.f32.mrb[29].mxu1  ;;  %v7043_v57 = vadd.f32 %v369_v45, %v6876_v1 }
 0x124   :  { %8087 = vst [vmem:[#allocation43_spill] sm:$0xff] %v7037_v37  ;;  %v7046_v60 = vadd.f32 %v759_v52, %v6878_v2 }
 0x125   :  { %8088 = vst [vmem:[#allocation44_spill] sm:$0xff] %v7040_v42  ;;  %8089 = vst [vmem:[#allocation45_spill] sm:$0xff] %v7043_v57  ;;  %v5583_v11 = vpop.f32.mrb[30].mxu0 }
 0x126   :  { %8090 = vst [vmem:[#allocation46_spill] sm:$0xff] %v7046_v60  ;;  %v5633_v8 = vpop.f32.mrb[30].mxu1  ;;  %v7049_v17 = vadd.f32 %v5583_v11, %v6876_v1  ;;  %v379_v29 = vpop.f32.mrb[31].mxu0  ;;  %v7068_v11 = vld [vmem:[#allocation3 + $0x10] ss:$0 sm:$0xff] }
 0x127   :  { %v7052_v3 = vadd.f32 %v5633_v8, %v6878_v2  ;;  %v769_v37 = vpop.f32.mrb[31].mxu1  ;;  %v7055_v34 = vadd.f32 %v379_v29, %v6876_v1  ;;  %v7070_v8 = vld [vmem:[#allocation3 + $0x18] ss:$0 sm:$0xff] }
 0x128   :  { %8091 = vst [vmem:[#allocation47_spill] sm:$0xff] %v7049_v17  ;;  %v7058_v42 = vadd.f32 %v769_v37, %v6878_v2 }
 0x129   :  { %8092 = vst [vmem:[#allocation48_spill] sm:$0xff] %v7052_v3  ;;  %8093 = vst [vmem:[#allocation49_spill] sm:$0xff] %v7055_v34  ;;  %v7060_v45 = vpop.f32.mrb[32].mxu0 }
 0x12a   :  { %8094 = vst [vmem:[#allocation50_spill] sm:$0xff] %v7058_v42  ;;  %v7062_v52 = vpop.f32.mrb[32].mxu1  ;;  %v7064_v60 = vpop.f32.mrb[33].mxu0 }
 0x12b   :  { %v7066_v57 = vpop.f32.mrb[33].mxu1 }
 0x12d   :  { %v5641_v3 = vpop.f32.mrb[34].mxu0 }
 0x12e   :  { %v5691_v17 = vpop.f32.mrb[34].mxu1  ;;  %v7073_v29 = vadd.f32 %v5641_v3, %v7068_v11  ;;  %v1019_v42 = vpop.f32.mrb[35].mxu0 }
 0x12f   :  { %v7076_v37 = vadd.f32 %v5691_v17, %v7070_v8  ;;  %v1409_v34 = vpop.f32.mrb[35].mxu1  ;;  %v7079_v26 = vadd.f32 %v1019_v42, %v7068_v11 }
 0x130   :  { %v7082_v21 = vadd.f32 %v1409_v34, %v7070_v8 }
 0x131   :  { %v5644_v41 = vpop.f32.mrb[36].mxu0 }
 0x132   :  { %v5694_v38 = vpop.f32.mrb[36].mxu1  ;;  %v7085_v49 = vadd.f32 %v5644_v41, %v7068_v11  ;;  %v1029_v3 = vpop.f32.mrb[37].mxu0 }
 0x133   :  { %v7088_v46 = vadd.f32 %v5694_v38, %v7070_v8  ;;  %v1419_v25 = vpop.f32.mrb[37].mxu1  ;;  %v7091_v17 = vadd.f32 %v1029_v3, %v7068_v11 }
 0x134   :  { %v7094_v22 = vadd.f32 %v1419_v25, %v7070_v8 }
 0x135   :  { %v5647_v42 = vpop.f32.mrb[38].mxu0 }
 0x136   :  { %v5697_v33 = vpop.f32.mrb[38].mxu1  ;;  %v7097_v34 = vadd.f32 %v5647_v42, %v7068_v11  ;;  %v1039_v41 = vpop.f32.mrb[39].mxu0 }
 0x137   :  { %v7100_v30 = vadd.f32 %v5697_v33, %v7070_v8  ;;  %v1429_v7 = vpop.f32.mrb[39].mxu1  ;;  %v7103_v38 = vadd.f32 %v1039_v41, %v7068_v11 }
 0x138   :  { %v7106_v4 = vadd.f32 %v1429_v7, %v7070_v8 }
 0x139   :  { %v5650_v3 = vpop.f32.mrb[40].mxu0 }
 0x13a   :  { %v5700_v16 = vpop.f32.mrb[40].mxu1  ;;  %v7109_v25 = vadd.f32 %v5650_v3, %v7068_v11  ;;  %v1049_v42 = vpop.f32.mrb[41].mxu0 }
 0x13b   :  { %v7112_v12 = vadd.f32 %v5700_v16, %v7070_v8  ;;  %v1439_v48 = vpop.f32.mrb[41].mxu1  ;;  %v7115_v33 = vadd.f32 %v1049_v42, %v7068_v11 }
 0x13c   :  { %8095 = vst [vmem:[#allocation51_spill] sm:$0xff] %v7109_v25  ;;  %v7118_v47 = vadd.f32 %v1439_v48, %v7070_v8 }
 0x13d   :  { %8096 = vst [vmem:[#allocation52_spill] sm:$0xff] %v7112_v12  ;;  %v5653_v41 = vpop.f32.mrb[42].mxu0 }
 0x13e   :  { %v5703_v56 = vpop.f32.mrb[42].mxu1  ;;  %v7121_v7 = vadd.f32 %v5653_v41, %v7068_v11  ;;  %v1059_v3 = vpop.f32.mrb[43].mxu0 }
 0x13f   :  { %v7124_v55 = vadd.f32 %v5703_v56, %v7070_v8  ;;  %v1449_v40 = vpop.f32.mrb[43].mxu1  ;;  %v7127_v16 = vadd.f32 %v1059_v3, %v7068_v11 }
 0x140   :  { %8097 = vst [vmem:[#allocation53_spill] sm:$0xff] %v7121_v7  ;;  %v7130_v39 = vadd.f32 %v1449_v40, %v7070_v8 }
 0x141   :  { %8098 = vst [vmem:[#allocation54_spill] sm:$0xff] %v7124_v55  ;;  %8099 = vst [vmem:[#allocation55_spill] sm:$0xff] %v7127_v16  ;;  %v5656_v42 = vpop.f32.mrb[44].mxu0 }
 0x142   :  { %8100 = vst [vmem:[#allocation56_spill] sm:$0xff] %v7130_v39  ;;  %v5706_v44 = vpop.f32.mrb[44].mxu1  ;;  %v7133_v48 = vadd.f32 %v5656_v42, %v7068_v11  ;;  %v1069_v41 = vpop.f32.mrb[45].mxu0 }
 0x143   :  { %v7136_v43 = vadd.f32 %v5706_v44, %v7070_v8  ;;  %v1459_v7 = vpop.f32.mrb[45].mxu1  ;;  %v7139_v56 = vadd.f32 %v1069_v41, %v7068_v11 }
 0x144   :  { %8101 = vst [vmem:[#allocation57_spill] sm:$0xff] %v7133_v48  ;;  %v7142_v55 = vadd.f32 %v1459_v7, %v7070_v8 }
 0x145   :  { %8102 = vst [vmem:[#allocation58_spill] sm:$0xff] %v7136_v43  ;;  %8103 = vst [vmem:[#allocation59_spill] sm:$0xff] %v7139_v56  ;;  %v5659_v3 = vpop.f32.mrb[46].mxu0 }
 0x146   :  { %8104 = vst [vmem:[#allocation60_spill] sm:$0xff] %v7142_v55  ;;  %v5709_v16 = vpop.f32.mrb[46].mxu1  ;;  %v7145_v40 = vadd.f32 %v5659_v3, %v7068_v11  ;;  %v1079_v42 = vpop.f32.mrb[47].mxu0 }
 0x147   :  { %v7148_v39 = vadd.f32 %v5709_v16, %v7070_v8  ;;  %v1469_v48 = vpop.f32.mrb[47].mxu1  ;;  %v7151_v44 = vadd.f32 %v1079_v42, %v7068_v11 }
 0x148   :  { %8105 = vst [vmem:[#allocation61_spill] sm:$0xff] %v7145_v40  ;;  %v7154_v43 = vadd.f32 %v1469_v48, %v7070_v8 }
 0x149   :  { %8106 = vst [vmem:[#allocation62_spill] sm:$0xff] %v7148_v39  ;;  %8107 = vst [vmem:[#allocation63_spill] sm:$0xff] %v7151_v44  ;;  %v5662_v41 = vpop.f32.mrb[48].mxu0 }
 0x14a   :  { %8108 = vst [vmem:[#allocation64_spill] sm:$0xff] %v7154_v43  ;;  %v5712_v56 = vpop.f32.mrb[48].mxu1  ;;  %v7157_v7 = vadd.f32 %v5662_v41, %v7068_v11  ;;  %v1089_v3 = vpop.f32.mrb[49].mxu0 }
 0x14b   :  { %v7160_v55 = vadd.f32 %v5712_v56, %v7070_v8  ;;  %v1479_v40 = vpop.f32.mrb[49].mxu1  ;;  %v7163_v16 = vadd.f32 %v1089_v3, %v7068_v11 }
 0x14c   :  { %8109 = vst [vmem:[#allocation65_spill] sm:$0xff] %v7157_v7  ;;  %v7166_v39 = vadd.f32 %v1479_v40, %v7070_v8 }
 0x14d   :  { %8110 = vst [vmem:[#allocation66_spill] sm:$0xff] %v7160_v55  ;;  %8111 = vst [vmem:[#allocation67_spill] sm:$0xff] %v7163_v16  ;;  %v5665_v42 = vpop.f32.mrb[50].mxu0 }
 0x14e   :  { %8112 = vst [vmem:[#allocation68_spill] sm:$0xff] %v7166_v39  ;;  %v5715_v44 = vpop.f32.mrb[50].mxu1  ;;  %v7169_v48 = vadd.f32 %v5665_v42, %v7068_v11  ;;  %v1099_v41 = vpop.f32.mrb[51].mxu0 }
 0x14f   :  { %v7172_v43 = vadd.f32 %v5715_v44, %v7070_v8  ;;  %v1489_v7 = vpop.f32.mrb[51].mxu1  ;;  %v7175_v56 = vadd.f32 %v1099_v41, %v7068_v11 }
 0x150   :  { %8113 = vst [vmem:[#allocation69_spill] sm:$0xff] %v7169_v48  ;;  %v7178_v55 = vadd.f32 %v1489_v7, %v7070_v8 }
 0x151   :  { %8114 = vst [vmem:[#allocation70_spill] sm:$0xff] %v7172_v43  ;;  %8115 = vst [vmem:[#allocation71_spill] sm:$0xff] %v7175_v56  ;;  %v5668_v3 = vpop.f32.mrb[52].mxu0 }
 0x152   :  { %8116 = vst [vmem:[#allocation72_spill] sm:$0xff] %v7178_v55  ;;  %v5718_v16 = vpop.f32.mrb[52].mxu1  ;;  %v7181_v40 = vadd.f32 %v5668_v3, %v7068_v11  ;;  %v1109_v42 = vpop.f32.mrb[53].mxu0 }
 0x153   :  { %v7184_v39 = vadd.f32 %v5718_v16, %v7070_v8  ;;  %v1499_v48 = vpop.f32.mrb[53].mxu1  ;;  %v7187_v44 = vadd.f32 %v1109_v42, %v7068_v11 }
 0x154   :  { %8117 = vst [vmem:[#allocation73_spill] sm:$0xff] %v7181_v40  ;;  %v7190_v43 = vadd.f32 %v1499_v48, %v7070_v8 }
 0x155   :  { %8118 = vst [vmem:[#allocation74_spill] sm:$0xff] %v7184_v39  ;;  %8119 = vst [vmem:[#allocation75_spill] sm:$0xff] %v7187_v44  ;;  %v5671_v41 = vpop.f32.mrb[54].mxu0 }
 0x156   :  { %8120 = vst [vmem:[#allocation76_spill] sm:$0xff] %v7190_v43  ;;  %v5721_v56 = vpop.f32.mrb[54].mxu1  ;;  %v7193_v7 = vadd.f32 %v5671_v41, %v7068_v11  ;;  %v1119_v3 = vpop.f32.mrb[55].mxu0 }
 0x157   :  { %v7196_v55 = vadd.f32 %v5721_v56, %v7070_v8  ;;  %v1509_v40 = vpop.f32.mrb[55].mxu1  ;;  %v7199_v16 = vadd.f32 %v1119_v3, %v7068_v11 }
 0x158   :  { %8121 = vst [vmem:[#allocation77_spill] sm:$0xff] %v7193_v7  ;;  %v7202_v39 = vadd.f32 %v1509_v40, %v7070_v8 }
 0x159   :  { %8122 = vst [vmem:[#allocation78_spill] sm:$0xff] %v7196_v55  ;;  %8123 = vst [vmem:[#allocation79_spill] sm:$0xff] %v7199_v16  ;;  %v5674_v42 = vpop.f32.mrb[56].mxu0 }
 0x15a   :  { %8124 = vst [vmem:[#allocation80_spill] sm:$0xff] %v7202_v39  ;;  %v5724_v44 = vpop.f32.mrb[56].mxu1  ;;  %v7205_v48 = vadd.f32 %v5674_v42, %v7068_v11  ;;  %v1129_v41 = vpop.f32.mrb[57].mxu0 }
 0x15b   :  { %v7208_v43 = vadd.f32 %v5724_v44, %v7070_v8  ;;  %v1519_v7 = vpop.f32.mrb[57].mxu1  ;;  %v7211_v56 = vadd.f32 %v1129_v41, %v7068_v11 }
 0x15c   :  { %8125 = vst [vmem:[#allocation81_spill] sm:$0xff] %v7205_v48  ;;  %v7214_v55 = vadd.f32 %v1519_v7, %v7070_v8 }
 0x15d   :  { %8126 = vst [vmem:[#allocation82_spill] sm:$0xff] %v7208_v43  ;;  %8127 = vst [vmem:[#allocation83_spill] sm:$0xff] %v7211_v56  ;;  %v5677_v3 = vpop.f32.mrb[58].mxu0 }
 0x15e   :  { %8128 = vst [vmem:[#allocation84_spill] sm:$0xff] %v7214_v55  ;;  %v5727_v16 = vpop.f32.mrb[58].mxu1  ;;  %v7217_v40 = vadd.f32 %v5677_v3, %v7068_v11  ;;  %v1139_v42 = vpop.f32.mrb[59].mxu0 }
 0x15f   :  { %v7220_v39 = vadd.f32 %v5727_v16, %v7070_v8  ;;  %v1529_v48 = vpop.f32.mrb[59].mxu1  ;;  %v7223_v44 = vadd.f32 %v1139_v42, %v7068_v11 }
 0x160   :  { %8129 = vst [vmem:[#allocation85_spill] sm:$0xff] %v7217_v40  ;;  %v7226_v43 = vadd.f32 %v1529_v48, %v7070_v8 }
 0x161   :  { %8130 = vst [vmem:[#allocation86_spill] sm:$0xff] %v7220_v39  ;;  %8131 = vst [vmem:[#allocation87_spill] sm:$0xff] %v7223_v44  ;;  %v5680_v41 = vpop.f32.mrb[60].mxu0 }
 0x162   :  { %8132 = vst [vmem:[#allocation88_spill] sm:$0xff] %v7226_v43  ;;  %v5730_v56 = vpop.f32.mrb[60].mxu1  ;;  %v7229_v7 = vadd.f32 %v5680_v41, %v7068_v11  ;;  %v1149_v3 = vpop.f32.mrb[61].mxu0 }
 0x163   :  { %v7232_v55 = vadd.f32 %v5730_v56, %v7070_v8  ;;  %v1539_v40 = vpop.f32.mrb[61].mxu1  ;;  %v7235_v16 = vadd.f32 %v1149_v3, %v7068_v11  ;;  %v1793_v3 = vlaneseq }
 0x164   :  { %8133 = vst [vmem:[#allocation89_spill] sm:$0xff] %v7229_v7  ;;  %v7238_v39 = vadd.f32 %v1539_v40, %v7070_v8  ;;  %v230_v40 = vadd.f32 %v6872_v63, %v6876_v1  ;;  %v235_v63 = vadd.f32 %v6868_v61, %v6876_v1 }
 0x165   :  { %8134 = vst [vmem:[#allocation90_spill] sm:$0xff] %v7232_v55  ;;  %8135 = vst [vmem:[#allocation91_spill] sm:$0xff] %v7235_v16  ;;  %v5683_v42 = vpop.f32.mrb[62].mxu0 }
 0x166   :  { %8136 = vst [vmem:[#allocation92_spill] sm:$0xff] %v7238_v39  ;;  %v5733_v44 = vpop.f32.mrb[62].mxu1  ;;  %v7241_v48 = vadd.f32 %v5683_v42, %v7068_v11  ;;  %v1159_v41 = vpop.f32.mrb[63].mxu0  ;;  %v1010_v39 = vadd.f32 %v7064_v60, %v7068_v11  ;;  %v620_v42 = vadd.f32 %v6874_v0, %v6878_v2  ;;  %v1015_v60 = vadd.f32 %v7060_v45, %v7068_v11  ;;  %v1607_v45 = vld [vmem:[#allocation3 + $0x1] ss:$8 sm:$0xf] }
 0x167   :  { %v7244_v43 = vadd.f32 %v5733_v44, %v7070_v8  ;;  %v1549_v7 = vpop.f32.mrb[63].mxu1  ;;  %v7247_v56 = vadd.f32 %v1159_v41, %v7068_v11  ;;  %v1400_v44 = vadd.f32 %v7066_v57, %v7070_v8  ;;  %v625_v0 = vadd.f32 %v6870_v62, %v6878_v2  ;;  %v1609_v2 = vld [vmem:[#allocation3 + $0x2] ss:$8 sm:$0xf] }
 0x168   :  { %8137 = vst [vmem:[#allocation93_spill] sm:$0xff] %v7241_v48  ;;  %v7250_v55 = vadd.f32 %v1549_v7, %v7070_v8 }
 0x169   :  { %8138 = vst [vmem:[#allocation94_spill] sm:$0xff] %v7244_v43  ;;  %8139 = vst [vmem:[#allocation95_spill] sm:$0xff] %v7247_v56  ;;  %v1688_v43 = vpop.f32.mrb[64].mxu0 }
 0x16a   :  { %8140 = vst [vmem:[#allocation96_spill] sm:$0xff] %v7250_v55  ;;  %v1765_v48 = vpop.f32.mrb[64].mxu1  ;;  %v1776_v41 = vadd.f32 %v1688_v43, %v230_v40  ;;  %v1690_v16 = vpop.f32.mrb[65].mxu0  ;;  %v7260_v55 = vshrl.u32 %v1793_v3, 7  ;;  %v1405_v43 = vadd.f32 %v7062_v52, %v7070_v8 }
 0x16b   :  { %v1778_v56 = vadd.f32 %v1765_v48, %v1010_v39  ;;  %v1767_v7 = vpop.f32.mrb[65].mxu1  ;;  %v1777_v12 = vadd.f32 %v1690_v16, %v620_v42 }
 0x16c   :  { %v1779_v32 = vadd.f32 %v1767_v7, %v1400_v44  ;;  %6015 = vtanh.f32 %v1776_v41  ;;  %v1795_v42 = vsub.s32 0, %v7260_v55  ;;  %v1799_v11 = vsub.s32 1, %v7260_v55 }
 0x16d   :  { %v1694_v39 = vpop.f32.mrb[66].mxu0  ;;  %6017 = vtanh.f32 %v1777_v12  ;;  %v1807_v62 = vsub.s32 3, %v7260_v55 }
 0x16e   :  { %v1771_v57 = vpop.f32.mrb[66].mxu1  ;;  %v1780_v48 = vadd.f32 %v1694_v39, %v235_v63  ;;  %v1696_v16 = vpop.f32.mrb[67].mxu0  ;;  %6019 = vtanh.f32 %v1779_v32  ;;  %v7273_v52 = vrot.slane %v1607_v45, %v1795_v42  ;;  %v7275_v12 = vrot.slane %v1607_v45, %v1799_v11 }
 0x16f   :  { %v1782_v3 = vadd.f32 %v1771_v57, %v1015_v60  ;;  %v1773_v40 = vpop.f32.mrb[67].mxu1  ;;  %v1781_v61 = vadd.f32 %v1696_v16, %v625_v0  ;;  %v7277_v44 = vrot.slane %v1609_v2, %v1795_v42  ;;  %v7279_v41 = vrot.slane %v1607_v45, %v1807_v62 }
 0x170   :  { %v1783_v1 = vadd.f32 %v1773_v40, %v1405_v43  ;;  %6021 = vtanh.f32 %v1780_v48  ;;  %v7282_v7 = vrot.slane %v1609_v2, %v1799_v11  ;;  %v7284_v60 = vrot.slane %v1609_v2, %v1807_v62 }
 0x171   :  { %6023 = vtanh.f32 %v1781_v61 }
 0x172   :  { %6025 = vtanh.f32 %v1783_v1 }
 0x173   :  { %6027 = vtanh.f32 %v1778_v56  ;;  %v1803_v56 = vsub.s32 2, %v7260_v55 }
 0x174   :  { %6029 = vtanh.f32 %v1782_v3 }
 0x175   :  { %v7307_v55 = vrot.slane %v1609_v2, %v1803_v56 }
 0x176   :  { %v6016_v8 = vpop.eup %6015 }
 0x177   :  { %v1813_v32 = vmul.f32 %v6016_v8, %v7273_v52  ;;  %v6018_v63 = vpop.eup %6017 }
 0x178   :  { %v6020_v0 = vpop.eup %6019  ;;  %v1814_v43 = vmul.f32 %v6018_v63, %v7275_v12 }
 0x179   :  { %v1842_v57 = vadd.f32 %v7277_v44, %v1813_v32  ;;  %v1816_v48 = vmul.f32 %v6020_v0, %v7279_v41 }
 0x17a   :  { %v6022_v39 = vpop.eup %6021  ;;  %v1843_v16 = vadd.f32 %v7282_v7, %v1814_v43 }
 0x17b   :  { %v1817_v40 = vmul.f32 %v6022_v39, %v7273_v52  ;;  %v6024_v42 = vpop.eup %6023  ;;  %v1845_v61 = vadd.f32 %v7284_v60, %v1816_v48 }
 0x17c   :  { %v6026_v1 = vpop.eup %6025  ;;  %v1850_v11 = vmul.f32 0.0, %v1843_v16  ;;  %v1818_v62 = vmul.f32 %v6024_v42, %v7275_v12  ;;  %v7301_v16 = vrot.slane %v1607_v45, %v1803_v56 }
 0x17d   :  { %v1852_v8 = vmul.f32 %v1845_v61, %v1842_v57  ;;  %v1846_v63 = vadd.f32 %v7277_v44, %v1817_v40  ;;  %v1820_v32 = vmul.f32 %v6026_v1, %v7279_v41  ;;  %v6028_v57 = vpop.eup %6027 }
 0x17e   :  { %v1847_v0 = vadd.f32 %v7282_v7, %v1818_v62  ;;  %v1815_v3 = vmul.f32 %v6028_v57, %v7301_v16  ;;  %v6030_v40 = vpop.eup %6029 }
 0x17f   :  { %v7297_v43 = vadd.f32 %v1852_v8, %v1850_v11  ;;  %v1849_v39 = vadd.f32 %v7284_v60, %v1820_v32  ;;  %v1819_v1 = vmul.f32 %v6030_v40, %v7301_v16  ;;  %v8141_v8 = vmov 0.0  }
 0x180   :  { %v1851_v25 = vmul.f32 0.0, %v1847_v0  ;;  %v1844_v61 = vadd.f32 %v7307_v55, %v1815_v3 }
 0x181   :  { %6031 = vtanh.f32 %v7297_v43  ;;  %v1853_v48 = vmul.f32 %v1849_v39, %v1846_v63 }
 0x183   :  { %v7303_v42 = vadd.f32 %v1853_v48, %v1851_v25  ;;  %v1848_v25 = vadd.f32 %v7307_v55, %v1819_v1 }
 0x185   :  { %6033 = vtanh.f32 %v7303_v42 }
 0x18b   :  { %v6032_v11 = vpop.eup %6031 }
 0x18c   :  { %v1858_v62 = vmul.f32 %v6032_v11, %v1844_v61 }
 0x18e   :  { %5334 = vmatmul.mubr.msk.f32.vlgmr.msra.gmra.mrb[68].mxu0 %vm1618_vm2, %v1858_v62  ;;  %5336 = vmatmul.mubr.msk.f32.vlgmr.msra.gmra.mrb[68].mxu1 %vm1618_vm2, %v1858_v62 }
 0x18f   :  { %v6034_v45 = vpop.eup %6033  ;;  %1944 = vmatprep.mubr.f32.mxu0 %v8141_v8  ;;  %2021 = vmatprep.mubr.f32.mxu1 %v8141_v8 }
 0x190   :  { %v1859_v2 = vmul.f32 %v6034_v45, %v1848_v25  ;;  %5780 = vmatpush1.bf16.msra.mxu0 %v6706_v50  ;;  %5788 = vmatpush1.bf16.msra.mxu1 %v6708_v51 }
 0x191   :  { %5782 = vmatprep.subr.bf16.mxu0 %v6710_v53  ;;  %5790 = vmatprep.subr.bf16.mxu1 %v6712_v54 }
 0x192   :  { %5335 = vmatmul.mubr.msk.f32.gmra.mrb[70].mxu0 %vm1618_vm2, %v1859_v2  ;;  %5337 = vmatmul.mubr.msk.f32.gmra.mrb[70].mxu1 %vm1618_vm2, %v1859_v2 }
 0x193   :  { %2148 = vmatprep.mubr.f32.mxu0 %v8141_v8  ;;  %2225 = vmatprep.mubr.f32.mxu1 %v8141_v8 }
 0x194   :  { %5784 = vmatpush1.bf16.msra.mxu0 %v6724_v58  ;;  %5792 = vmatpush1.bf16.msra.mxu1 %v6726_v59 }
 0x195   :  { %5794 = vmatprep.subr.bf16.mxu0 %v6476_v15  ;;  %5802 = vmatprep.subr.bf16.mxu1 %v6483_v18 }
 0x261   :  { %v1940_v63 = vpop.f32.mrb[68].mxu0  ;;  %v2017_v32 = vpop.f32.mrb[68].mxu1 }
 0x262   :  { %v2028_v56 = vadd.f32 %v1940_v63, %v6887_v9  ;;  %v2030_v0 = vadd.f32 %v2017_v32, %v7079_v26  ;;  %v1942_v39 = vpop.f32.mrb[69].mxu0  ;;  %v2019_v48 = vpop.f32.mrb[69].mxu1 }
 0x263   :  { %v2029_v57 = vadd.f32 %v1942_v39, %v6890_v10  ;;  %v2031_v3 = vadd.f32 %v2019_v48, %v7082_v21 }
 0x264   :  { %6035 = vtanh.f32 %v2028_v56 }
 0x265   :  { %v1946_v40 = vpop.f32.mrb[70].mxu0  ;;  %v2023_v61 = vpop.f32.mrb[70].mxu1  ;;  %6037 = vtanh.f32 %v2029_v57 }
 0x266   :  { %v2032_v1 = vadd.f32 %v1946_v40, %v6881_v5  ;;  %v2034_v11 = vadd.f32 %v2023_v61, %v7073_v29  ;;  %v1948_v62 = vpop.f32.mrb[71].mxu0  ;;  %v2025_v25 = vpop.f32.mrb[71].mxu1  ;;  %6039 = vtanh.f32 %v2031_v3 }
 0x267   :  { %v2033_v9 = vadd.f32 %v1948_v62, %v6884_v6  ;;  %v2035_v26 = vadd.f32 %v2025_v25, %v7076_v37 }
 0x268   :  { %6041 = vtanh.f32 %v2032_v1 }
 0x269   :  { %6043 = vtanh.f32 %v2033_v9 }
 0x26a   :  { %6045 = vtanh.f32 %v2035_v26 }
 0x26b   :  { %6047 = vtanh.f32 %v2030_v0 }
 0x26c   :  { %6049 = vtanh.f32 %v2034_v11 }
 0x26e   :  { %v6036_v10 = vpop.eup %6035 }
 0x26f   :  { %v2044_v21 = vmul.f32 %v6036_v10, %v7273_v52  ;;  %v6038_v45 = vpop.eup %6037 }
 0x270   :  { %v6040_v2 = vpop.eup %6039  ;;  %v2045_v63 = vmul.f32 %v6038_v45, %v7275_v12 }
 0x271   :  { %v2052_v29 = vadd.f32 %v2044_v21, %v7277_v44  ;;  %v2047_v32 = vmul.f32 %v6040_v2, %v7279_v41 }
 0x272   :  { %v6042_v5 = vpop.eup %6041  ;;  %v2053_v6 = vadd.f32 %v2045_v63, %v7282_v7 }
 0x273   :  { %v2048_v37 = vmul.f32 %v6042_v5, %v7273_v52  ;;  %v6044_v56 = vpop.eup %6043  ;;  %v2055_v39 = vadd.f32 %v2047_v32, %v7284_v60 }
 0x274   :  { %v6046_v48 = vpop.eup %6045  ;;  %v2060_v57 = vmul.f32 %v2053_v6, %v7297_v43  ;;  %v2049_v3 = vmul.f32 %v6044_v56, %v7275_v12 }
 0x275   :  { %v2062_v40 = vmul.f32 %v2055_v39, %v2052_v29  ;;  %v2056_v61 = vadd.f32 %v2048_v37, %v7277_v44  ;;  %v2051_v0 = vmul.f32 %v6046_v48, %v7279_v41  ;;  %v6048_v43 = vpop.eup %6047 }
 0x276   :  { %v2057_v1 = vadd.f32 %v2049_v3, %v7282_v7  ;;  %v2046_v11 = vmul.f32 %v6048_v43, %v7301_v16  ;;  %v6050_v21 = vpop.eup %6049 }
 0x277   :  { %v7348_v62 = vadd.f32 %v2062_v40, %v2060_v57  ;;  %v2059_v25 = vadd.f32 %v2051_v0, %v7284_v60  ;;  %v2050_v2 = vmul.f32 %v6050_v21, %v7301_v16 }
 0x278   :  { %v2061_v9 = vmul.f32 %v2057_v1, %v7303_v42  ;;  %v2054_v45 = vadd.f32 %v2046_v11, %v7307_v55 }
 0x279   :  { %6051 = vtanh.f32 %v7348_v62  ;;  %v2063_v26 = vmul.f32 %v2059_v25, %v2056_v61  ;;  %v2058_v42 = vadd.f32 %v2050_v2, %v7307_v55 }
 0x27b   :  { %v7353_v10 = vadd.f32 %v2063_v26, %v2061_v9 }
 0x27d   :  { %6053 = vtanh.f32 %v7353_v10 }
 0x283   :  { %v6052_v63 = vpop.eup %6051 }
 0x284   :  { %v2068_v5 = vmul.f32 %v6052_v63, %v2054_v45 }
 0x286   :  { %5338 = vmatmul.mubr.msk.f32.vlgmr.msra.gmra.mrb[72].mxu0 %vm1618_vm2, %v2068_v5  ;;  %5340 = vmatmul.mubr.msk.f32.vlgmr.msra.gmra.mrb[72].mxu1 %vm1618_vm2, %v2068_v5 }
 0x287   :  { %v6054_v29 = vpop.eup %6053  ;;  %2154 = vmatprep.mubr.f32.mxu0 %v8141_v8  ;;  %2231 = vmatprep.mubr.f32.mxu1 %v8141_v8 }
 0x288   :  { %v2069_v32 = vmul.f32 %v6054_v29, %v2058_v42  ;;  %5796 = vmatpush1.bf16.msra.mxu0 %v6706_v50  ;;  %5804 = vmatpush1.bf16.msra.mxu1 %v6708_v51 }
 0x289   :  { %5798 = vmatprep.subr.bf16.mxu0 %v6710_v53  ;;  %5806 = vmatprep.subr.bf16.mxu1 %v6712_v54 }
 0x28a   :  { %5339 = vmatmul.mubr.msk.f32.gmra.mrb[74].mxu0 %vm1618_vm2, %v2069_v32  ;;  %5341 = vmatmul.mubr.msk.f32.gmra.mrb[74].mxu1 %vm1618_vm2, %v2069_v32 }
 0x28b   :  { %2358 = vmatprep.mubr.f32.mxu0 %v8141_v8  ;;  %2435 = vmatprep.mubr.f32.mxu1 %v8141_v8 }
 0x28c   :  { %5800 = vmatpush1.bf16.msra.mxu0 %v6724_v58  ;;  %5808 = vmatpush1.bf16.msra.mxu1 %v6726_v59 }
 0x28d   :  { %5810 = vmatprep.subr.bf16.mxu0 %v6476_v15  ;;  %5818 = vmatprep.subr.bf16.mxu1 %v6483_v18 }
 0x359   :  { %v2150_v6 = vpop.f32.mrb[72].mxu0  ;;  %v2227_v37 = vpop.f32.mrb[72].mxu1 }
 0x35a   :  { %v2238_v56 = vadd.f32 %v2150_v6, %v6899_v19  ;;  %v2240_v39 = vadd.f32 %v2227_v37, %v7091_v17  ;;  %v2152_v48 = vpop.f32.mrb[73].mxu0  ;;  %v2229_v57 = vpop.f32.mrb[73].mxu1 }
 0x35b   :  { %v2239_v3 = vadd.f32 %v2152_v48, %v6902_v20  ;;  %v2241_v40 = vadd.f32 %v2229_v57, %v7094_v22 }
 0x35c   :  { %6055 = vtanh.f32 %v2238_v56 }
 0x35d   :  { %v2156_v61 = vpop.f32.mrb[74].mxu0  ;;  %v2233_v0 = vpop.f32.mrb[74].mxu1  ;;  %6057 = vtanh.f32 %v2239_v3 }
 0x35e   :  { %v2242_v1 = vadd.f32 %v2156_v61, %v6893_v13  ;;  %v2244_v25 = vadd.f32 %v2233_v0, %v7085_v49  ;;  %v2158_v9 = vpop.f32.mrb[75].mxu0  ;;  %v2235_v26 = vpop.f32.mrb[75].mxu1  ;;  %6059 = vtanh.f32 %v2241_v40 }
 0x35f   :  { %v2243_v19 = vadd.f32 %v2158_v9, %v6896_v14  ;;  %v2245_v17 = vadd.f32 %v2235_v26, %v7088_v46 }
 0x360   :  { %6061 = vtanh.f32 %v2242_v1 }
 0x361   :  { %6063 = vtanh.f32 %v2243_v19 }
 0x362   :  { %6065 = vtanh.f32 %v2245_v17 }
 0x363   :  { %6067 = vtanh.f32 %v2240_v39 }
 0x364   :  { %6069 = vtanh.f32 %v2244_v25 }
 0x366   :  { %v6056_v20 = vpop.eup %6055 }
 0x367   :  { %v2254_v22 = vmul.f32 %v6056_v20, %v7273_v52  ;;  %v6058_v43 = vpop.eup %6057 }
 0x368   :  { %v6060_v11 = vpop.eup %6059  ;;  %v2255_v21 = vmul.f32 %v6058_v43, %v7275_v12 }
 0x369   :  { %v2262_v49 = vadd.f32 %v2254_v22, %v7277_v44  ;;  %v2257_v45 = vmul.f32 %v6060_v11, %v7279_v41 }
 0x36a   :  { %v6062_v13 = vpop.eup %6061  ;;  %v2263_v14 = vadd.f32 %v2255_v21, %v7282_v7 }
 0x36b   :  { %v2258_v46 = vmul.f32 %v6062_v13, %v7273_v52  ;;  %v6064_v2 = vpop.eup %6063  ;;  %v2265_v63 = vadd.f32 %v2257_v45, %v7284_v60 }
 0x36c   :  { %v6066_v5 = vpop.eup %6065  ;;  %v2270_v42 = vmul.f32 %v2263_v14, %v7348_v62  ;;  %v2259_v29 = vmul.f32 %v6064_v2, %v7275_v12 }
 0x36d   :  { %v2272_v32 = vmul.f32 %v2265_v63, %v2262_v49  ;;  %v2266_v6 = vadd.f32 %v2258_v46, %v7277_v44  ;;  %v2261_v37 = vmul.f32 %v6066_v5, %v7279_v41  ;;  %v6068_v62 = vpop.eup %6067 }
 0x36e   :  { %v2267_v56 = vadd.f32 %v2259_v29, %v7282_v7  ;;  %v2256_v61 = vmul.f32 %v6068_v62, %v7301_v16  ;;  %v6070_v0 = vpop.eup %6069 }
 0x36f   :  { %v7396_v39 = vadd.f32 %v2272_v32, %v2270_v42  ;;  %v2269_v48 = vadd.f32 %v2261_v37, %v7284_v60  ;;  %v2260_v25 = vmul.f32 %v6070_v0, %v7301_v16 }
 0x370   :  { %v2271_v57 = vmul.f32 %v2267_v56, %v7353_v10  ;;  %v2264_v1 = vadd.f32 %v2256_v61, %v7307_v55 }
 0x371   :  { %6071 = vtanh.f32 %v7396_v39  ;;  %v2273_v3 = vmul.f32 %v2269_v48, %v2266_v6  ;;  %v2268_v10 = vadd.f32 %v2260_v25, %v7307_v55 }
 0x373   :  { %v7401_v40 = vadd.f32 %v2273_v3, %v2271_v57 }
 0x375   :  { %6073 = vtanh.f32 %v7401_v40 }
 0x37b   :  { %v6072_v9 = vpop.eup %6071 }
 0x37c   :  { %v2278_v26 = vmul.f32 %v6072_v9, %v2264_v1 }
 0x37e   :  { %5342 = vmatmul.mubr.msk.f32.vlgmr.msra.gmra.mrb[76].mxu0 %vm1618_vm2, %v2278_v26  ;;  %5344 = vmatmul.mubr.msk.f32.vlgmr.msra.gmra.mrb[76].mxu1 %vm1618_vm2, %v2278_v26 }
 0x37f   :  { %v6074_v19 = vpop.eup %6073  ;;  %2364 = vmatprep.mubr.f32.mxu0 %v8141_v8  ;;  %2441 = vmatprep.mubr.f32.mxu1 %v8141_v8 }
 0x380   :  { %v2279_v17 = vmul.f32 %v6074_v19, %v2268_v10  ;;  %5812 = vmatpush1.bf16.msra.mxu0 %v6706_v50  ;;  %5820 = vmatpush1.bf16.msra.mxu1 %v6708_v51 }
 0x381   :  { %5814 = vmatprep.subr.bf16.mxu0 %v6710_v53  ;;  %5822 = vmatprep.subr.bf16.mxu1 %v6712_v54 }
 0x382   :  { %5343 = vmatmul.mubr.msk.f32.gmra.mrb[78].mxu0 %vm1618_vm2, %v2279_v17  ;;  %5345 = vmatmul.mubr.msk.f32.gmra.mrb[78].mxu1 %vm1618_vm2, %v2279_v17 }
 0x383   :  { %2568 = vmatprep.mubr.f32.mxu0 %v8141_v8  ;;  %2645 = vmatprep.mubr.f32.mxu1 %v8141_v8 }
 0x384   :  { %5816 = vmatpush1.bf16.msra.mxu0 %v6724_v58  ;;  %5824 = vmatpush1.bf16.msra.mxu1 %v6726_v59 }
 0x385   :  { %5826 = vmatprep.subr.bf16.mxu0 %v6476_v15  ;;  %5834 = vmatprep.subr.bf16.mxu1 %v6483_v18 }
 0x451   :  { %v2360_v20 = vpop.f32.mrb[76].mxu0  ;;  %v2437_v22 = vpop.f32.mrb[76].mxu1 }
 0x452   :  { %v2448_v43 = vadd.f32 %v2360_v20, %v6911_v27  ;;  %v2450_v11 = vadd.f32 %v2437_v22, %v7103_v38  ;;  %v2362_v21 = vpop.f32.mrb[77].mxu0  ;;  %v2439_v13 = vpop.f32.mrb[77].mxu1 }
 0x453   :  { %v2449_v49 = vadd.f32 %v2362_v21, %v6914_v28  ;;  %v2451_v45 = vadd.f32 %v2439_v13, %v7106_v4 }
 0x454   :  { %6075 = vtanh.f32 %v2448_v43 }
 0x455   :  { %v2366_v14 = vpop.f32.mrb[78].mxu0  ;;  %v2443_v46 = vpop.f32.mrb[78].mxu1  ;;  %6077 = vtanh.f32 %v2449_v49 }
 0x456   :  { %v2452_v2 = vadd.f32 %v2366_v14, %v6905_v23  ;;  %v2454_v63 = vadd.f32 %v2443_v46, %v7097_v34  ;;  %v2368_v5 = vpop.f32.mrb[79].mxu0  ;;  %v2445_v42 = vpop.f32.mrb[79].mxu1  ;;  %6079 = vtanh.f32 %v2451_v45 }
 0x457   :  { %v2453_v27 = vadd.f32 %v2368_v5, %v6908_v24  ;;  %v2455_v38 = vadd.f32 %v2445_v42, %v7100_v30 }
 0x458   :  { %6081 = vtanh.f32 %v2452_v2 }
 0x459   :  { %6083 = vtanh.f32 %v2453_v27 }
 0x45a   :  { %6085 = vtanh.f32 %v2455_v38 }
 0x45b   :  { %6087 = vtanh.f32 %v2450_v11 }
 0x45c   :  { %6089 = vtanh.f32 %v2454_v63 }
 0x45e   :  { %v6076_v28 = vpop.eup %6075 }
 0x45f   :  { %v2464_v4 = vmul.f32 %v6076_v28, %v7273_v52  ;;  %v6078_v29 = vpop.eup %6077 }
 0x460   :  { %v6080_v32 = vpop.eup %6079  ;;  %v2465_v6 = vmul.f32 %v6078_v29, %v7275_v12 }
 0x461   :  { %v2472_v34 = vadd.f32 %v2464_v4, %v7277_v44  ;;  %v2467_v37 = vmul.f32 %v6080_v32, %v7279_v41  ;;  %v8142_v32 = vld [vmem:[#allocation51_spill] sm:$0xff] }
 0x462   :  { %v6082_v23 = vpop.eup %6081  ;;  %v2473_v24 = vadd.f32 %v2465_v6, %v7282_v7 }
 0x463   :  { %v2468_v30 = vmul.f32 %v6082_v23, %v7273_v52  ;;  %v6084_v56 = vpop.eup %6083  ;;  %v2475_v48 = vadd.f32 %v2467_v37, %v7284_v60 }
 0x464   :  { %v6086_v57 = vpop.eup %6085  ;;  %v2480_v3 = vmul.f32 %v2473_v24, %v7396_v39  ;;  %v2469_v62 = vmul.f32 %v6084_v56, %v7275_v12 }
 0x465   :  { %v2482_v61 = vmul.f32 %v2475_v48, %v2472_v34  ;;  %v2476_v0 = vadd.f32 %v2468_v30, %v7277_v44  ;;  %v2471_v1 = vmul.f32 %v6086_v57, %v7279_v41  ;;  %v6088_v39 = vpop.eup %6087 }
 0x466   :  { %v2477_v25 = vadd.f32 %v2469_v62, %v7282_v7  ;;  %v2466_v20 = vmul.f32 %v6088_v39, %v7301_v16  ;;  %v6090_v22 = vpop.eup %6089 }
 0x467   :  { %v7444_v9 = vadd.f32 %v2482_v61, %v2480_v3  ;;  %v2479_v26 = vadd.f32 %v2471_v1, %v7284_v60  ;;  %v2470_v11 = vmul.f32 %v6090_v22, %v7301_v16 }
 0x468   :  { %v2481_v10 = vmul.f32 %v2477_v25, %v7401_v40  ;;  %v2474_v43 = vadd.f32 %v2466_v20, %v7307_v55 }
 0x469   :  { %6091 = vtanh.f32 %v7444_v9  ;;  %v2483_v19 = vmul.f32 %v2479_v26, %v2476_v0  ;;  %v2478_v40 = vadd.f32 %v2470_v11, %v7307_v55 }
 0x46b   :  { %v7449_v17 = vadd.f32 %v2483_v19, %v2481_v10 }
 0x46d   :  { %6093 = vtanh.f32 %v7449_v17 }
 0x473   :  { %v6092_v21 = vpop.eup %6091 }
 0x474   :  { %v2488_v13 = vmul.f32 %v6092_v21, %v2474_v43 }
 0x476   :  { %5346 = vmatmul.mubr.msk.f32.vlgmr.msra.gmra.mrb[80].mxu0 %vm1618_vm2, %v2488_v13  ;;  %5348 = vmatmul.mubr.msk.f32.vlgmr.msra.gmra.mrb[80].mxu1 %vm1618_vm2, %v2488_v13 }
 0x477   :  { %v6094_v49 = vpop.eup %6093  ;;  %2574 = vmatprep.mubr.f32.mxu0 %v8141_v8  ;;  %2651 = vmatprep.mubr.f32.mxu1 %v8141_v8 }
 0x478   :  { %v2489_v45 = vmul.f32 %v6094_v49, %v2478_v40  ;;  %5828 = vmatpush1.bf16.msra.mxu0 %v6706_v50  ;;  %5836 = vmatpush1.bf16.msra.mxu1 %v6708_v51 }
 0x479   :  { %5830 = vmatprep.subr.bf16.mxu0 %v6710_v53  ;;  %5838 = vmatprep.subr.bf16.mxu1 %v6712_v54 }
 0x47a   :  { %5347 = vmatmul.mubr.msk.f32.gmra.mrb[82].mxu0 %vm1618_vm2, %v2489_v45  ;;  %5349 = vmatmul.mubr.msk.f32.gmra.mrb[82].mxu1 %vm1618_vm2, %v2489_v45 }
 0x47b   :  { %2778 = vmatprep.mubr.f32.mxu0 %v8141_v8  ;;  %2855 = vmatprep.mubr.f32.mxu1 %v8141_v8 }
 0x47c   :  { %5832 = vmatpush1.bf16.msra.mxu0 %v6724_v58  ;;  %5840 = vmatpush1.bf16.msra.mxu1 %v6726_v59 }
 0x47d   :  { %5842 = vmatprep.subr.bf16.mxu0 %v6476_v15  ;;  %5850 = vmatprep.subr.bf16.mxu1 %v6483_v18 }
 0x549   :  { %v2570_v14 = vpop.f32.mrb[80].mxu0  ;;  %v2647_v46 = vpop.f32.mrb[80].mxu1 }
 0x54a   :  { %v2658_v2 = vadd.f32 %v2570_v14, %v6923_v35  ;;  %v2660_v63 = vadd.f32 %v2647_v46, %v7115_v33  ;;  %v2572_v5 = vpop.f32.mrb[81].mxu0  ;;  %v2649_v42 = vpop.f32.mrb[81].mxu1  ;;  %v8143_v35 = vld [vmem:[#allocation6_spill] sm:$0xff]  ;;  %v8144_v33 = vld [vmem:[#allocation52_spill] sm:$0xff] }
 0x54b   :  { %v2659_v27 = vadd.f32 %v2572_v5, %v6926_v36  ;;  %v2661_v38 = vadd.f32 %v2649_v42, %v7118_v47 }
 0x54c   :  { %6095 = vtanh.f32 %v2658_v2 }
 0x54d   :  { %v2576_v28 = vpop.f32.mrb[82].mxu0  ;;  %v2653_v4 = vpop.f32.mrb[82].mxu1  ;;  %6097 = vtanh.f32 %v2659_v27 }
 0x54e   :  { %v2662_v29 = vadd.f32 %v2576_v28, %v6917_v31  ;;  %v2664_v6 = vadd.f32 %v2653_v4, %v8142_v32  ;;  %v2578_v23 = vpop.f32.mrb[83].mxu0  ;;  %v2655_v34 = vpop.f32.mrb[83].mxu1  ;;  %6099 = vtanh.f32 %v2661_v38  ;;  %v8145_v28 = vld [vmem:[#allocation9_spill] sm:$0xff] }
 0x54f   :  { %v2663_v37 = vadd.f32 %v2578_v23, %v8143_v35  ;;  %v2665_v24 = vadd.f32 %v2655_v34, %v8144_v33  ;;  %v8147_v34 = vld [vmem:[#allocation10_spill] sm:$0xff] }
 0x550   :  { %6101 = vtanh.f32 %v2662_v29  ;;  %v8146_v29 = vld [vmem:[#allocation55_spill] sm:$0xff] }
 0x551   :  { %6103 = vtanh.f32 %v2663_v37  ;;  %v8148_v37 = vld [vmem:[#allocation56_spill] sm:$0xff] }
 0x552   :  { %6105 = vtanh.f32 %v2665_v24 }
 0x553   :  { %6107 = vtanh.f32 %v2660_v63 }
 0x554   :  { %6109 = vtanh.f32 %v2664_v6 }
 0x556   :  { %v6096_v36 = vpop.eup %6095 }
 0x557   :  { %v2674_v47 = vmul.f32 %v6096_v36, %v7273_v52  ;;  %v6098_v30 = vpop.eup %6097 }
 0x558   :  { %v6100_v56 = vpop.eup %6099  ;;  %v2675_v48 = vmul.f32 %v6098_v30, %v7275_v12 }
 0x559   :  { %v2682_v57 = vadd.f32 %v2674_v47, %v7277_v44  ;;  %v2677_v3 = vmul.f32 %v6100_v56, %v7279_v41  ;;  %v8149_v47 = vld [vmem:[#allocation7_spill] sm:$0xff]  ;;  %v8150_v56 = vld [vmem:[#allocation53_spill] sm:$0xff] }
 0x55a   :  { %v6102_v31 = vpop.eup %6101  ;;  %v2683_v62 = vadd.f32 %v2675_v48, %v7282_v7 }
 0x55b   :  { %v2678_v61 = vmul.f32 %v6102_v31, %v7273_v52  ;;  %v6104_v0 = vpop.eup %6103  ;;  %v2685_v1 = vadd.f32 %v2677_v3, %v7284_v60  ;;  %v8151_v3 = vld [vmem:[#allocation8_spill] sm:$0xff] }
 0x55c   :  { %v6106_v25 = vpop.eup %6105  ;;  %v2690_v26 = vmul.f32 %v2683_v62, %v7444_v9  ;;  %v2679_v10 = vmul.f32 %v6104_v0, %v7275_v12 }
 0x55d   :  { %v2692_v19 = vmul.f32 %v2685_v1, %v2682_v57  ;;  %v2686_v39 = vadd.f32 %v2678_v61, %v7277_v44  ;;  %v2681_v20 = vmul.f32 %v6106_v25, %v7279_v41  ;;  %v6108_v9 = vpop.eup %6107  ;;  %v8152_v61 = vld [vmem:[#allocation54_spill] sm:$0xff] }
 0x55e   :  { %v2687_v22 = vadd.f32 %v2679_v10, %v7282_v7  ;;  %v2676_v49 = vmul.f32 %v6108_v9, %v7301_v16  ;;  %v6110_v45 = vpop.eup %6109 }
 0x55f   :  { %v7492_v43 = vadd.f32 %v2692_v19, %v2690_v26  ;;  %v2689_v11 = vadd.f32 %v2681_v20, %v7284_v60  ;;  %v2680_v46 = vmul.f32 %v6110_v45, %v7301_v16 }
 0x560   :  { %v2691_v21 = vmul.f32 %v2687_v22, %v7449_v17  ;;  %v2684_v14 = vadd.f32 %v2676_v49, %v7307_v55 }
 0x561   :  { %6111 = vtanh.f32 %v7492_v43  ;;  %v2693_v13 = vmul.f32 %v2689_v11, %v2686_v39  ;;  %v2688_v17 = vadd.f32 %v2680_v46, %v7307_v55 }
 0x563   :  { %v7497_v40 = vadd.f32 %v2693_v13, %v2691_v21 }
 0x565   :  { %6113 = vtanh.f32 %v7497_v40 }
 0x56b   :  { %v6112_v2 = vpop.eup %6111 }
 0x56c   :  { %v2698_v63 = vmul.f32 %v6112_v2, %v2684_v14 }
 0x56e   :  { %5350 = vmatmul.mubr.msk.f32.vlgmr.msra.gmra.mrb[84].mxu0 %vm1618_vm2, %v2698_v63  ;;  %5352 = vmatmul.mubr.msk.f32.vlgmr.msra.gmra.mrb[84].mxu1 %vm1618_vm2, %v2698_v63 }
 0x56f   :  { %v6114_v5 = vpop.eup %6113  ;;  %2784 = vmatprep.mubr.f32.mxu0 %v8141_v8  ;;  %2861 = vmatprep.mubr.f32.mxu1 %v8141_v8 }
 0x570   :  { %v2699_v42 = vmul.f32 %v6114_v5, %v2688_v17  ;;  %5844 = vmatpush1.bf16.msra.mxu0 %v6706_v50  ;;  %5852 = vmatpush1.bf16.msra.mxu1 %v6708_v51 }
 0x571   :  { %5846 = vmatprep.subr.bf16.mxu0 %v6710_v53  ;;  %5854 = vmatprep.subr.bf16.mxu1 %v6712_v54 }
 0x572   :  { %5351 = vmatmul.mubr.msk.f32.gmra.mrb[86].mxu0 %vm1618_vm2, %v2699_v42  ;;  %5353 = vmatmul.mubr.msk.f32.gmra.mrb[86].mxu1 %vm1618_vm2, %v2699_v42 }
 0x573   :  { %2988 = vmatprep.mubr.f32.mxu0 %v8141_v8  ;;  %3065 = vmatprep.mubr.f32.mxu1 %v8141_v8 }
 0x574   :  { %5848 = vmatpush1.bf16.msra.mxu0 %v6724_v58  ;;  %5856 = vmatpush1.bf16.msra.mxu1 %v6726_v59 }
 0x575   :  { %5858 = vmatprep.subr.bf16.mxu0 %v6476_v15  ;;  %5866 = vmatprep.subr.bf16.mxu1 %v6483_v18 }
 0x641   :  { %v2780_v27 = vpop.f32.mrb[84].mxu0  ;;  %v2857_v38 = vpop.f32.mrb[84].mxu1 }
 0x642   :  { %v2868_v4 = vadd.f32 %v2780_v27, %v8145_v28  ;;  %v2870_v32 = vadd.f32 %v2857_v38, %v8146_v29  ;;  %v2782_v6 = vpop.f32.mrb[85].mxu0  ;;  %v2859_v23 = vpop.f32.mrb[85].mxu1 }
 0x643   :  { %v2869_v35 = vadd.f32 %v2782_v6, %v8147_v34  ;;  %v2871_v33 = vadd.f32 %v2859_v23, %v8148_v37 }
 0x644   :  { %6115 = vtanh.f32 %v2868_v4 }
 0x645   :  { %v2786_v24 = vpop.f32.mrb[86].mxu0  ;;  %v2863_v36 = vpop.f32.mrb[86].mxu1  ;;  %6117 = vtanh.f32 %v2869_v35 }
 0x646   :  { %v2872_v30 = vadd.f32 %v2786_v24, %v8149_v47  ;;  %v2874_v48 = vadd.f32 %v2863_v36, %v8150_v56  ;;  %v2788_v31 = vpop.f32.mrb[87].mxu0  ;;  %v2865_v57 = vpop.f32.mrb[87].mxu1  ;;  %6119 = vtanh.f32 %v2871_v33  ;;  %v8153_v36 = vld [vmem:[#allocation13_spill] sm:$0xff] }
 0x647   :  { %v2873_v62 = vadd.f32 %v2788_v31, %v8151_v3  ;;  %v2875_v0 = vadd.f32 %v2865_v57, %v8152_v61  ;;  %v8155_v57 = vld [vmem:[#allocation14_spill] sm:$0xff] }
 0x648   :  { %6121 = vtanh.f32 %v2872_v30  ;;  %v8154_v30 = vld [vmem:[#allocation59_spill] sm:$0xff] }
 0x649   :  { %6123 = vtanh.f32 %v2873_v62  ;;  %v8156_v62 = vld [vmem:[#allocation60_spill] sm:$0xff] }
 0x64a   :  { %6125 = vtanh.f32 %v2875_v0 }
 0x64b   :  { %6127 = vtanh.f32 %v2870_v32 }
 0x64c   :  { %6129 = vtanh.f32 %v2874_v48 }
 0x64e   :  { %v6116_v1 = vpop.eup %6115 }
 0x64f   :  { %v2884_v25 = vmul.f32 %v6116_v1, %v7273_v52  ;;  %v6118_v26 = vpop.eup %6117 }
 0x650   :  { %v6120_v10 = vpop.eup %6119  ;;  %v2885_v19 = vmul.f32 %v6118_v26, %v7275_v12 }
 0x651   :  { %v2892_v20 = vadd.f32 %v2884_v25, %v7277_v44  ;;  %v2887_v22 = vmul.f32 %v6120_v10, %v7279_v41  ;;  %v8157_v25 = vld [vmem:[#allocation11_spill] sm:$0xff]  ;;  %v8158_v10 = vld [vmem:[#allocation57_spill] sm:$0xff] }
 0x652   :  { %v6122_v39 = vpop.eup %6121  ;;  %v2893_v11 = vadd.f32 %v2885_v19, %v7282_v7 }
 0x653   :  { %v2888_v21 = vmul.f32 %v6122_v39, %v7273_v52  ;;  %v6124_v13 = vpop.eup %6123  ;;  %v2895_v9 = vadd.f32 %v2887_v22, %v7284_v60  ;;  %v8159_v22 = vld [vmem:[#allocation12_spill] sm:$0xff] }
 0x654   :  { %v6126_v49 = vpop.eup %6125  ;;  %v2900_v45 = vmul.f32 %v2893_v11, %v7492_v43  ;;  %v2889_v14 = vmul.f32 %v6124_v13, %v7275_v12 }
 0x655   :  { %v2902_v46 = vmul.f32 %v2895_v9, %v2892_v20  ;;  %v2896_v2 = vadd.f32 %v2888_v21, %v7277_v44  ;;  %v2891_v63 = vmul.f32 %v6126_v49, %v7279_v41  ;;  %v6128_v43 = vpop.eup %6127  ;;  %v8160_v21 = vld [vmem:[#allocation58_spill] sm:$0xff] }
 0x656   :  { %v2897_v17 = vadd.f32 %v2889_v14, %v7282_v7  ;;  %v2886_v4 = vmul.f32 %v6128_v43, %v7301_v16  ;;  %v6130_v29 = vpop.eup %6129 }
 0x657   :  { %v7540_v5 = vadd.f32 %v2902_v46, %v2900_v45  ;;  %v2899_v42 = vadd.f32 %v2891_v63, %v7284_v60  ;;  %v2890_v6 = vmul.f32 %v6130_v29, %v7301_v16 }
 0x658   :  { %v2901_v27 = vmul.f32 %v2897_v17, %v7497_v40  ;;  %v2894_v32 = vadd.f32 %v2886_v4, %v7307_v55 }
 0x659   :  { %6131 = vtanh.f32 %v7540_v5  ;;  %v2903_v38 = vmul.f32 %v2899_v42, %v2896_v2  ;;  %v2898_v40 = vadd.f32 %v2890_v6, %v7307_v55 }
 0x65b   :  { %v7545_v28 = vadd.f32 %v2903_v38, %v2901_v27 }
 0x65d   :  { %6133 = vtanh.f32 %v7545_v28 }
 0x663   :  { %v6132_v23 = vpop.eup %6131 }
 0x664   :  { %v2908_v34 = vmul.f32 %v6132_v23, %v2894_v32 }
 0x666   :  { %5354 = vmatmul.mubr.msk.f32.vlgmr.msra.gmra.mrb[88].mxu0 %vm1618_vm2, %v2908_v34  ;;  %5356 = vmatmul.mubr.msk.f32.vlgmr.msra.gmra.mrb[88].mxu1 %vm1618_vm2, %v2908_v34 }
 0x667   :  { %v6134_v35 = vpop.eup %6133  ;;  %2994 = vmatprep.mubr.f32.mxu0 %v8141_v8  ;;  %3071 = vmatprep.mubr.f32.mxu1 %v8141_v8 }
 0x668   :  { %v2909_v37 = vmul.f32 %v6134_v35, %v2898_v40  ;;  %5860 = vmatpush1.bf16.msra.mxu0 %v6706_v50  ;;  %5868 = vmatpush1.bf16.msra.mxu1 %v6708_v51 }
 0x669   :  { %5862 = vmatprep.subr.bf16.mxu0 %v6710_v53  ;;  %5870 = vmatprep.subr.bf16.mxu1 %v6712_v54 }
 0x66a   :  { %5355 = vmatmul.mubr.msk.f32.gmra.mrb[90].mxu0 %vm1618_vm2, %v2909_v37  ;;  %5357 = vmatmul.mubr.msk.f32.gmra.mrb[90].mxu1 %vm1618_vm2, %v2909_v37 }
 0x66b   :  { %3198 = vmatprep.mubr.f32.mxu0 %v8141_v8  ;;  %3275 = vmatprep.mubr.f32.mxu1 %v8141_v8 }
 0x66c   :  { %5864 = vmatpush1.bf16.msra.mxu0 %v6724_v58  ;;  %5872 = vmatpush1.bf16.msra.mxu1 %v6726_v59 }
 0x66d   :  { %5874 = vmatprep.subr.bf16.mxu0 %v6476_v15  ;;  %5882 = vmatprep.subr.bf16.mxu1 %v6483_v18 }
 0x739   :  { %v2990_v33 = vpop.f32.mrb[88].mxu0  ;;  %v3067_v24 = vpop.f32.mrb[88].mxu1 }
 0x73a   :  { %v3078_v47 = vadd.f32 %v2990_v33, %v8153_v36  ;;  %v3080_v56 = vadd.f32 %v3067_v24, %v8154_v30  ;;  %v2992_v48 = vpop.f32.mrb[89].mxu0  ;;  %v3069_v31 = vpop.f32.mrb[89].mxu1 }
 0x73b   :  { %v3079_v3 = vadd.f32 %v2992_v48, %v8155_v57  ;;  %v3081_v61 = vadd.f32 %v3069_v31, %v8156_v62 }
 0x73c   :  { %6135 = vtanh.f32 %v3078_v47 }
 0x73d   :  { %v2996_v0 = vpop.f32.mrb[90].mxu0  ;;  %v3073_v1 = vpop.f32.mrb[90].mxu1  ;;  %6137 = vtanh.f32 %v3079_v3 }
 0x73e   :  { %v3082_v26 = vadd.f32 %v2996_v0, %v8157_v25  ;;  %v3084_v19 = vadd.f32 %v3073_v1, %v8158_v10  ;;  %v2998_v39 = vpop.f32.mrb[91].mxu0  ;;  %v3075_v20 = vpop.f32.mrb[91].mxu1  ;;  %6139 = vtanh.f32 %v3081_v61  ;;  %v8161_v1 = vld [vmem:[#allocation17_spill] sm:$0xff] }
 0x73f   :  { %v3083_v11 = vadd.f32 %v2998_v39, %v8159_v22  ;;  %v3085_v13 = vadd.f32 %v3075_v20, %v8160_v21  ;;  %v8163_v20 = vld [vmem:[#allocation18_spill] sm:$0xff] }
 0x740   :  { %6141 = vtanh.f32 %v3082_v26  ;;  %v8162_v26 = vld [vmem:[#allocation63_spill] sm:$0xff] }
 0x741   :  { %6143 = vtanh.f32 %v3083_v11  ;;  %v8164_v11 = vld [vmem:[#allocation64_spill] sm:$0xff] }
 0x742   :  { %6145 = vtanh.f32 %v3085_v13 }
 0x743   :  { %6147 = vtanh.f32 %v3080_v56 }
 0x744   :  { %6149 = vtanh.f32 %v3084_v19 }
 0x746   :  { %v6136_v9 = vpop.eup %6135 }
 0x747   :  { %v3094_v49 = vmul.f32 %v6136_v9, %v7273_v52  ;;  %v6138_v45 = vpop.eup %6137 }
 0x748   :  { %v6140_v14 = vpop.eup %6139  ;;  %v3095_v46 = vmul.f32 %v6138_v45, %v7275_v12 }
 0x749   :  { %v3102_v63 = vadd.f32 %v3094_v49, %v7277_v44  ;;  %v3097_v17 = vmul.f32 %v6140_v14, %v7279_v41  ;;  %v8165_v49 = vld [vmem:[#allocation15_spill] sm:$0xff]  ;;  %v8166_v14 = vld [vmem:[#allocation61_spill] sm:$0xff] }
 0x74a   :  { %v6142_v2 = vpop.eup %6141  ;;  %v3103_v42 = vadd.f32 %v3095_v46, %v7282_v7 }
 0x74b   :  { %v3098_v27 = vmul.f32 %v6142_v2, %v7273_v52  ;;  %v6144_v38 = vpop.eup %6143  ;;  %v3105_v43 = vadd.f32 %v3097_v17, %v7284_v60  ;;  %v8167_v17 = vld [vmem:[#allocation16_spill] sm:$0xff] }
 0x74c   :  { %v6146_v4 = vpop.eup %6145  ;;  %v3110_v29 = vmul.f32 %v3103_v42, %v7540_v5  ;;  %v3099_v32 = vmul.f32 %v6144_v38, %v7275_v12 }
 0x74d   :  { %v3112_v6 = vmul.f32 %v3105_v43, %v3102_v63  ;;  %v3106_v23 = vadd.f32 %v3098_v27, %v7277_v44  ;;  %v3101_v34 = vmul.f32 %v6146_v4, %v7279_v41  ;;  %v6148_v5 = vpop.eup %6147  ;;  %v8168_v27 = vld [vmem:[#allocation62_spill] sm:$0xff] }
 0x74e   :  { %v3107_v40 = vadd.f32 %v3099_v32, %v7282_v7  ;;  %v3096_v47 = vmul.f32 %v6148_v5, %v7301_v16  ;;  %v6150_v30 = vpop.eup %6149 }
 0x74f   :  { %v7588_v35 = vadd.f32 %v3112_v6, %v3110_v29  ;;  %v3109_v37 = vadd.f32 %v3101_v34, %v7284_v60  ;;  %v3100_v48 = vmul.f32 %v6150_v30, %v7301_v16 }
 0x750   :  { %v3111_v33 = vmul.f32 %v3107_v40, %v7545_v28  ;;  %v3104_v56 = vadd.f32 %v3096_v47, %v7307_v55 }
 0x751   :  { %6151 = vtanh.f32 %v7588_v35  ;;  %v3113_v24 = vmul.f32 %v3109_v37, %v3106_v23  ;;  %v3108_v28 = vadd.f32 %v3100_v48, %v7307_v55 }
 0x753   :  { %v7593_v36 = vadd.f32 %v3113_v24, %v3111_v33 }
 0x755   :  { %6153 = vtanh.f32 %v7593_v36 }
 0x75b   :  { %v6152_v31 = vpop.eup %6151 }
 0x75c   :  { %v3118_v57 = vmul.f32 %v6152_v31, %v3104_v56 }
 0x75e   :  { %5358 = vmatmul.mubr.msk.f32.vlgmr.msra.gmra.mrb[92].mxu0 %vm1618_vm2, %v3118_v57  ;;  %5360 = vmatmul.mubr.msk.f32.vlgmr.msra.gmra.mrb[92].mxu1 %vm1618_vm2, %v3118_v57 }
 0x75f   :  { %v6154_v3 = vpop.eup %6153  ;;  %3204 = vmatprep.mubr.f32.mxu0 %v8141_v8  ;;  %3281 = vmatprep.mubr.f32.mxu1 %v8141_v8 }
 0x760   :  { %v3119_v62 = vmul.f32 %v6154_v3, %v3108_v28  ;;  %5876 = vmatpush1.bf16.msra.mxu0 %v6706_v50  ;;  %5884 = vmatpush1.bf16.msra.mxu1 %v6708_v51 }
 0x761   :  { %5878 = vmatprep.subr.bf16.mxu0 %v6710_v53  ;;  %5886 = vmatprep.subr.bf16.mxu1 %v6712_v54 }
 0x762   :  { %5359 = vmatmul.mubr.msk.f32.gmra.mrb[94].mxu0 %vm1618_vm2, %v3119_v62  ;;  %5361 = vmatmul.mubr.msk.f32.gmra.mrb[94].mxu1 %vm1618_vm2, %v3119_v62 }
 0x763   :  { %3408 = vmatprep.mubr.f32.mxu0 %v8141_v8  ;;  %3485 = vmatprep.mubr.f32.mxu1 %v8141_v8 }
 0x764   :  { %5880 = vmatpush1.bf16.msra.mxu0 %v6724_v58  ;;  %5888 = vmatpush1.bf16.msra.mxu1 %v6726_v59 }
 0x765   :  { %5890 = vmatprep.subr.bf16.mxu0 %v6476_v15  ;;  %5898 = vmatprep.subr.bf16.mxu1 %v6483_v18 }
 0x831   :  { %v3200_v61 = vpop.f32.mrb[92].mxu0  ;;  %v3277_v0 = vpop.f32.mrb[92].mxu1 }
 0x832   :  { %v3288_v25 = vadd.f32 %v3200_v61, %v8161_v1  ;;  %v3290_v10 = vadd.f32 %v3277_v0, %v8162_v26  ;;  %v3202_v19 = vpop.f32.mrb[93].mxu0  ;;  %v3279_v39 = vpop.f32.mrb[93].mxu1 }
 0x833   :  { %v3289_v22 = vadd.f32 %v3202_v19, %v8163_v20  ;;  %v3291_v21 = vadd.f32 %v3279_v39, %v8164_v11 }
 0x834   :  { %6155 = vtanh.f32 %v3288_v25 }
 0x835   :  { %v3206_v13 = vpop.f32.mrb[94].mxu0  ;;  %v3283_v9 = vpop.f32.mrb[94].mxu1  ;;  %6157 = vtanh.f32 %v3289_v22 }
 0x836   :  { %v3292_v45 = vadd.f32 %v3206_v13, %v8165_v49  ;;  %v3294_v46 = vadd.f32 %v3283_v9, %v8166_v14  ;;  %v3208_v2 = vpop.f32.mrb[95].mxu0  ;;  %v3285_v63 = vpop.f32.mrb[95].mxu1  ;;  %6159 = vtanh.f32 %v3291_v21  ;;  %v8169_v9 = vld [vmem:[#allocation21_spill] sm:$0xff] }
 0x837   :  { %v3293_v42 = vadd.f32 %v3208_v2, %v8167_v17  ;;  %v3295_v38 = vadd.f32 %v3285_v63, %v8168_v27  ;;  %v8171_v63 = vld [vmem:[#allocation22_spill] sm:$0xff] }
 0x838   :  { %6161 = vtanh.f32 %v3292_v45  ;;  %v8170_v45 = vld [vmem:[#allocation67_spill] sm:$0xff] }
 0x839   :  { %6163 = vtanh.f32 %v3293_v42  ;;  %v8172_v42 = vld [vmem:[#allocation68_spill] sm:$0xff] }
 0x83a   :  { %6165 = vtanh.f32 %v3295_v38 }
 0x83b   :  { %6167 = vtanh.f32 %v3290_v10 }
 0x83c   :  { %6169 = vtanh.f32 %v3294_v46 }
 0x83e   :  { %v6156_v43 = vpop.eup %6155 }
 0x83f   :  { %v3304_v4 = vmul.f32 %v6156_v43, %v7273_v52  ;;  %v6158_v29 = vpop.eup %6157 }
 0x840   :  { %v6160_v32 = vpop.eup %6159  ;;  %v3305_v6 = vmul.f32 %v6158_v29, %v7275_v12 }
 0x841   :  { %v3312_v34 = vadd.f32 %v3304_v4, %v7277_v44  ;;  %v3307_v40 = vmul.f32 %v6160_v32, %v7279_v41  ;;  %v8173_v4 = vld [vmem:[#allocation19_spill] sm:$0xff]  ;;  %v8174_v32 = vld [vmem:[#allocation65_spill] sm:$0xff] }
 0x842   :  { %v6162_v23 = vpop.eup %6161  ;;  %v3313_v37 = vadd.f32 %v3305_v6, %v7282_v7 }
 0x843   :  { %v3308_v33 = vmul.f32 %v6162_v23, %v7273_v52  ;;  %v6164_v24 = vpop.eup %6163  ;;  %v3315_v5 = vadd.f32 %v3307_v40, %v7284_v60  ;;  %v8175_v40 = vld [vmem:[#allocation20_spill] sm:$0xff] }
 0x844   :  { %v6166_v47 = vpop.eup %6165  ;;  %v3320_v30 = vmul.f32 %v3313_v37, %v7588_v35  ;;  %v3309_v56 = vmul.f32 %v6164_v24, %v7275_v12 }
 0x845   :  { %v3322_v48 = vmul.f32 %v3315_v5, %v3312_v34  ;;  %v3316_v31 = vadd.f32 %v3308_v33, %v7277_v44  ;;  %v3311_v57 = vmul.f32 %v6166_v47, %v7279_v41  ;;  %v6168_v35 = vpop.eup %6167  ;;  %v8176_v33 = vld [vmem:[#allocation66_spill] sm:$0xff] }
 0x846   :  { %v3317_v28 = vadd.f32 %v3309_v56, %v7282_v7  ;;  %v3306_v25 = vmul.f32 %v6168_v35, %v7301_v16  ;;  %v6170_v26 = vpop.eup %6169 }
 0x847   :  { %v7636_v3 = vadd.f32 %v3322_v48, %v3320_v30  ;;  %v3319_v62 = vadd.f32 %v3311_v57, %v7284_v60  ;;  %v3310_v19 = vmul.f32 %v6170_v26, %v7301_v16 }
 0x848   :  { %v3321_v61 = vmul.f32 %v3317_v28, %v7593_v36  ;;  %v3314_v10 = vadd.f32 %v3306_v25, %v7307_v55 }
 0x849   :  { %6171 = vtanh.f32 %v7636_v3  ;;  %v3323_v0 = vmul.f32 %v3319_v62, %v3316_v31  ;;  %v3318_v36 = vadd.f32 %v3310_v19, %v7307_v55 }
 0x84b   :  { %v7641_v1 = vadd.f32 %v3323_v0, %v3321_v61 }
 0x84d   :  { %6173 = vtanh.f32 %v7641_v1 }
 0x853   :  { %v6172_v39 = vpop.eup %6171 }
 0x854   :  { %v3328_v20 = vmul.f32 %v6172_v39, %v3314_v10 }
 0x856   :  { %5362 = vmatmul.mubr.msk.f32.vlgmr.msra.gmra.mrb[96].mxu0 %vm1618_vm2, %v3328_v20  ;;  %5364 = vmatmul.mubr.msk.f32.vlgmr.msra.gmra.mrb[96].mxu1 %vm1618_vm2, %v3328_v20 }
 0x857   :  { %v6174_v22 = vpop.eup %6173  ;;  %3414 = vmatprep.mubr.f32.mxu0 %v8141_v8  ;;  %3491 = vmatprep.mubr.f32.mxu1 %v8141_v8 }
 0x858   :  { %v3329_v11 = vmul.f32 %v6174_v22, %v3318_v36  ;;  %5892 = vmatpush1.bf16.msra.mxu0 %v6706_v50  ;;  %5900 = vmatpush1.bf16.msra.mxu1 %v6708_v51 }
 0x859   :  { %5894 = vmatprep.subr.bf16.mxu0 %v6710_v53  ;;  %5902 = vmatprep.subr.bf16.mxu1 %v6712_v54 }
 0x85a   :  { %5363 = vmatmul.mubr.msk.f32.gmra.mrb[98].mxu0 %vm1618_vm2, %v3329_v11  ;;  %5365 = vmatmul.mubr.msk.f32.gmra.mrb[98].mxu1 %vm1618_vm2, %v3329_v11 }
 0x85b   :  { %3618 = vmatprep.mubr.f32.mxu0 %v8141_v8  ;;  %3695 = vmatprep.mubr.f32.mxu1 %v8141_v8 }
 0x85c   :  { %5896 = vmatpush1.bf16.msra.mxu0 %v6724_v58  ;;  %5904 = vmatpush1.bf16.msra.mxu1 %v6726_v59 }
 0x85d   :  { %5906 = vmatprep.subr.bf16.mxu0 %v6476_v15  ;;  %5914 = vmatprep.subr.bf16.mxu1 %v6483_v18 }
 0x929   :  { %v3410_v21 = vpop.f32.mrb[96].mxu0  ;;  %v3487_v13 = vpop.f32.mrb[96].mxu1 }
 0x92a   :  { %v3498_v49 = vadd.f32 %v3410_v21, %v8169_v9  ;;  %v3500_v14 = vadd.f32 %v3487_v13, %v8170_v45  ;;  %v3412_v46 = vpop.f32.mrb[97].mxu0  ;;  %v3489_v2 = vpop.f32.mrb[97].mxu1 }
 0x92b   :  { %v3499_v17 = vadd.f32 %v3412_v46, %v8171_v63  ;;  %v3501_v27 = vadd.f32 %v3489_v2, %v8172_v42 }
 0x92c   :  { %6175 = vtanh.f32 %v3498_v49 }
 0x92d   :  { %v3416_v38 = vpop.f32.mrb[98].mxu0  ;;  %v3493_v43 = vpop.f32.mrb[98].mxu1  ;;  %6177 = vtanh.f32 %v3499_v17 }
 0x92e   :  { %v3502_v29 = vadd.f32 %v3416_v38, %v8173_v4  ;;  %v3504_v6 = vadd.f32 %v3493_v43, %v8174_v32  ;;  %v3418_v23 = vpop.f32.mrb[99].mxu0  ;;  %v3495_v34 = vpop.f32.mrb[99].mxu1  ;;  %6179 = vtanh.f32 %v3501_v27  ;;  %v8177_v43 = vld [vmem:[#allocation25_spill] sm:$0xff] }
 0x92f   :  { %v3503_v37 = vadd.f32 %v3418_v23, %v8175_v40  ;;  %v3505_v24 = vadd.f32 %v3495_v34, %v8176_v33  ;;  %v8179_v34 = vld [vmem:[#allocation26_spill] sm:$0xff] }
 0x930   :  { %6181 = vtanh.f32 %v3502_v29  ;;  %v8178_v29 = vld [vmem:[#allocation71_spill] sm:$0xff] }
 0x931   :  { %6183 = vtanh.f32 %v3503_v37  ;;  %v8180_v37 = vld [vmem:[#allocation72_spill] sm:$0xff] }
 0x932   :  { %6185 = vtanh.f32 %v3505_v24 }
 0x933   :  { %6187 = vtanh.f32 %v3500_v14 }
 0x934   :  { %6189 = vtanh.f32 %v3504_v6 }
 0x936   :  { %v6176_v5 = vpop.eup %6175 }
 0x937   :  { %v3514_v47 = vmul.f32 %v6176_v5, %v7273_v52  ;;  %v6178_v30 = vpop.eup %6177 }
 0x938   :  { %v6180_v56 = vpop.eup %6179  ;;  %v3515_v48 = vmul.f32 %v6178_v30, %v7275_v12 }
 0x939   :  { %v3522_v57 = vadd.f32 %v3514_v47, %v7277_v44  ;;  %v3517_v28 = vmul.f32 %v6180_v56, %v7279_v41  ;;  %v8181_v47 = vld [vmem:[#allocation23_spill] sm:$0xff]  ;;  %v8182_v56 = vld [vmem:[#allocation69_spill] sm:$0xff] }
 0x93a   :  { %v6182_v31 = vpop.eup %6181  ;;  %v3523_v62 = vadd.f32 %v3515_v48, %v7282_v7 }
 0x93b   :  { %v3518_v61 = vmul.f32 %v6182_v31, %v7273_v52  ;;  %v6184_v0 = vpop.eup %6183  ;;  %v3525_v35 = vadd.f32 %v3517_v28, %v7284_v60  ;;  %v8183_v28 = vld [vmem:[#allocation24_spill] sm:$0xff] }
 0x93c   :  { %v6186_v25 = vpop.eup %6185  ;;  %v3530_v26 = vmul.f32 %v3523_v62, %v7636_v3  ;;  %v3519_v10 = vmul.f32 %v6184_v0, %v7275_v12 }
 0x93d   :  { %v3532_v19 = vmul.f32 %v3525_v35, %v3522_v57  ;;  %v3526_v39 = vadd.f32 %v3518_v61, %v7277_v44  ;;  %v3521_v20 = vmul.f32 %v6186_v25, %v7279_v41  ;;  %v6188_v3 = vpop.eup %6187  ;;  %v8184_v61 = vld [vmem:[#allocation70_spill] sm:$0xff] }
 0x93e   :  { %v3527_v36 = vadd.f32 %v3519_v10, %v7282_v7  ;;  %v3516_v49 = vmul.f32 %v6188_v3, %v7301_v16  ;;  %v6190_v45 = vpop.eup %6189 }
 0x93f   :  { %v7684_v22 = vadd.f32 %v3532_v19, %v3530_v26  ;;  %v3529_v11 = vadd.f32 %v3521_v20, %v7284_v60  ;;  %v3520_v46 = vmul.f32 %v6190_v45, %v7301_v16 }
 0x940   :  { %v3531_v21 = vmul.f32 %v3527_v36, %v7641_v1  ;;  %v3524_v14 = vadd.f32 %v3516_v49, %v7307_v55 }
 0x941   :  { %6191 = vtanh.f32 %v7684_v22  ;;  %v3533_v13 = vmul.f32 %v3529_v11, %v3526_v39  ;;  %v3528_v1 = vadd.f32 %v3520_v46, %v7307_v55 }
 0x943   :  { %v7689_v9 = vadd.f32 %v3533_v13, %v3531_v21 }
 0x945   :  { %6193 = vtanh.f32 %v7689_v9 }
 0x94b   :  { %v6192_v2 = vpop.eup %6191 }
 0x94c   :  { %v3538_v63 = vmul.f32 %v6192_v2, %v3524_v14 }
 0x94e   :  { %5366 = vmatmul.mubr.msk.f32.vlgmr.msra.gmra.mrb[100].mxu0 %vm1618_vm2, %v3538_v63  ;;  %5368 = vmatmul.mubr.msk.f32.vlgmr.msra.gmra.mrb[100].mxu1 %vm1618_vm2, %v3538_v63 }
 0x94f   :  { %v6194_v17 = vpop.eup %6193  ;;  %3624 = vmatprep.mubr.f32.mxu0 %v8141_v8  ;;  %3701 = vmatprep.mubr.f32.mxu1 %v8141_v8 }
 0x950   :  { %v3539_v42 = vmul.f32 %v6194_v17, %v3528_v1  ;;  %5908 = vmatpush1.bf16.msra.mxu0 %v6706_v50  ;;  %5916 = vmatpush1.bf16.msra.mxu1 %v6708_v51 }
 0x951   :  { %5910 = vmatprep.subr.bf16.mxu0 %v6710_v53  ;;  %5918 = vmatprep.subr.bf16.mxu1 %v6712_v54 }
 0x952   :  { %5367 = vmatmul.mubr.msk.f32.gmra.mrb[102].mxu0 %vm1618_vm2, %v3539_v42  ;;  %5369 = vmatmul.mubr.msk.f32.gmra.mrb[102].mxu1 %vm1618_vm2, %v3539_v42 }
 0x953   :  { %3828 = vmatprep.mubr.f32.mxu0 %v8141_v8  ;;  %3905 = vmatprep.mubr.f32.mxu1 %v8141_v8 }
 0x954   :  { %5912 = vmatpush1.bf16.msra.mxu0 %v6724_v58  ;;  %5920 = vmatpush1.bf16.msra.mxu1 %v6726_v59 }
 0x955   :  { %5922 = vmatprep.subr.bf16.mxu0 %v6476_v15  ;;  %5930 = vmatprep.subr.bf16.mxu1 %v6483_v18 }
 0xa21   :  { %v3620_v27 = vpop.f32.mrb[100].mxu0  ;;  %v3697_v38 = vpop.f32.mrb[100].mxu1 }
 0xa22   :  { %v3708_v4 = vadd.f32 %v3620_v27, %v8177_v43  ;;  %v3710_v32 = vadd.f32 %v3697_v38, %v8178_v29  ;;  %v3622_v6 = vpop.f32.mrb[101].mxu0  ;;  %v3699_v23 = vpop.f32.mrb[101].mxu1 }
 0xa23   :  { %v3709_v40 = vadd.f32 %v3622_v6, %v8179_v34  ;;  %v3711_v33 = vadd.f32 %v3699_v23, %v8180_v37 }
 0xa24   :  { %6195 = vtanh.f32 %v3708_v4 }
 0xa25   :  { %v3626_v24 = vpop.f32.mrb[102].mxu0  ;;  %v3703_v5 = vpop.f32.mrb[102].mxu1  ;;  %6197 = vtanh.f32 %v3709_v40 }
 0xa26   :  { %v3712_v30 = vadd.f32 %v3626_v24, %v8181_v47  ;;  %v3714_v48 = vadd.f32 %v3703_v5, %v8182_v56  ;;  %v3628_v31 = vpop.f32.mrb[103].mxu0  ;;  %v3705_v57 = vpop.f32.mrb[103].mxu1  ;;  %6199 = vtanh.f32 %v3711_v33  ;;  %v8185_v5 = vld [vmem:[#allocation29_spill] sm:$0xff] }
 0xa27   :  { %v3713_v62 = vadd.f32 %v3628_v31, %v8183_v28  ;;  %v3715_v0 = vadd.f32 %v3705_v57, %v8184_v61  ;;  %v8187_v57 = vld [vmem:[#allocation30_spill] sm:$0xff] }
 0xa28   :  { %6201 = vtanh.f32 %v3712_v30  ;;  %v8186_v30 = vld [vmem:[#allocation75_spill] sm:$0xff] }
 0xa29   :  { %6203 = vtanh.f32 %v3713_v62  ;;  %v8188_v62 = vld [vmem:[#allocation76_spill] sm:$0xff] }
 0xa2a   :  { %6205 = vtanh.f32 %v3715_v0 }
 0xa2b   :  { %6207 = vtanh.f32 %v3710_v32 }
 0xa2c   :  { %6209 = vtanh.f32 %v3714_v48 }
 0xa2e   :  { %v6196_v35 = vpop.eup %6195 }
 0xa2f   :  { %v3724_v25 = vmul.f32 %v6196_v35, %v7273_v52  ;;  %v6198_v26 = vpop.eup %6197 }
 0xa30   :  { %v6200_v10 = vpop.eup %6199  ;;  %v3725_v19 = vmul.f32 %v6198_v26, %v7275_v12 }
 0xa31   :  { %v3732_v20 = vadd.f32 %v3724_v25, %v7277_v44  ;;  %v3727_v36 = vmul.f32 %v6200_v10, %v7279_v41  ;;  %v8189_v25 = vld [vmem:[#allocation27_spill] sm:$0xff]  ;;  %v8190_v10 = vld [vmem:[#allocation73_spill] sm:$0xff] }
 0xa32   :  { %v6202_v39 = vpop.eup %6201  ;;  %v3733_v11 = vadd.f32 %v3725_v19, %v7282_v7 }
 0xa33   :  { %v3728_v21 = vmul.f32 %v6202_v39, %v7273_v52  ;;  %v6204_v13 = vpop.eup %6203  ;;  %v3735_v3 = vadd.f32 %v3727_v36, %v7284_v60  ;;  %v8191_v36 = vld [vmem:[#allocation28_spill] sm:$0xff] }
 0xa34   :  { %v6206_v49 = vpop.eup %6205  ;;  %v3740_v45 = vmul.f32 %v3733_v11, %v7684_v22  ;;  %v3729_v14 = vmul.f32 %v6204_v13, %v7275_v12 }
 0xa35   :  { %v3742_v46 = vmul.f32 %v3735_v3, %v3732_v20  ;;  %v3736_v2 = vadd.f32 %v3728_v21, %v7277_v44  ;;  %v3731_v63 = vmul.f32 %v6206_v49, %v7279_v41  ;;  %v6208_v22 = vpop.eup %6207  ;;  %v8192_v21 = vld [vmem:[#allocation74_spill] sm:$0xff] }
 0xa36   :  { %v3737_v1 = vadd.f32 %v3729_v14, %v7282_v7  ;;  %v3726_v4 = vmul.f32 %v6208_v22, %v7301_v16  ;;  %v6210_v29 = vpop.eup %6209 }
 0xa37   :  { %v7732_v17 = vadd.f32 %v3742_v46, %v3740_v45  ;;  %v3739_v42 = vadd.f32 %v3731_v63, %v7284_v60  ;;  %v3730_v6 = vmul.f32 %v6210_v29, %v7301_v16 }
 0xa38   :  { %v3741_v27 = vmul.f32 %v3737_v1, %v7689_v9  ;;  %v3734_v32 = vadd.f32 %v3726_v4, %v7307_v55 }
 0xa39   :  { %6211 = vtanh.f32 %v7732_v17  ;;  %v3743_v38 = vmul.f32 %v3739_v42, %v3736_v2  ;;  %v3738_v9 = vadd.f32 %v3730_v6, %v7307_v55 }
 0xa3b   :  { %v7737_v43 = vadd.f32 %v3743_v38, %v3741_v27 }
 0xa3d   :  { %6213 = vtanh.f32 %v7737_v43 }
 0xa43   :  { %v6212_v23 = vpop.eup %6211 }
 0xa44   :  { %v3748_v34 = vmul.f32 %v6212_v23, %v3734_v32 }
 0xa46   :  { %5370 = vmatmul.mubr.msk.f32.vlgmr.msra.gmra.mrb[104].mxu0 %vm1618_vm2, %v3748_v34  ;;  %5372 = vmatmul.mubr.msk.f32.vlgmr.msra.gmra.mrb[104].mxu1 %vm1618_vm2, %v3748_v34 }
 0xa47   :  { %v6214_v40 = vpop.eup %6213  ;;  %3834 = vmatprep.mubr.f32.mxu0 %v8141_v8  ;;  %3911 = vmatprep.mubr.f32.mxu1 %v8141_v8 }
 0xa48   :  { %v3749_v37 = vmul.f32 %v6214_v40, %v3738_v9  ;;  %5924 = vmatpush1.bf16.msra.mxu0 %v6706_v50  ;;  %5932 = vmatpush1.bf16.msra.mxu1 %v6708_v51 }
 0xa49   :  { %5926 = vmatprep.subr.bf16.mxu0 %v6710_v53  ;;  %5934 = vmatprep.subr.bf16.mxu1 %v6712_v54 }
 0xa4a   :  { %5371 = vmatmul.mubr.msk.f32.gmra.mrb[106].mxu0 %vm1618_vm2, %v3749_v37  ;;  %5373 = vmatmul.mubr.msk.f32.gmra.mrb[106].mxu1 %vm1618_vm2, %v3749_v37 }
 0xa4b   :  { %4038 = vmatprep.mubr.f32.mxu0 %v8141_v8  ;;  %4115 = vmatprep.mubr.f32.mxu1 %v8141_v8 }
 0xa4c   :  { %5928 = vmatpush1.bf16.msra.mxu0 %v6724_v58  ;;  %5936 = vmatpush1.bf16.msra.mxu1 %v6726_v59 }
 0xa4d   :  { %5938 = vmatprep.subr.bf16.mxu0 %v6476_v15  ;;  %5946 = vmatprep.subr.bf16.mxu1 %v6483_v18 }
 0xb19   :  { %v3830_v33 = vpop.f32.mrb[104].mxu0  ;;  %v3907_v24 = vpop.f32.mrb[104].mxu1 }
 0xb1a   :  { %v3918_v47 = vadd.f32 %v3830_v33, %v8185_v5  ;;  %v3920_v56 = vadd.f32 %v3907_v24, %v8186_v30  ;;  %v3832_v48 = vpop.f32.mrb[105].mxu0  ;;  %v3909_v31 = vpop.f32.mrb[105].mxu1 }
 0xb1b   :  { %v3919_v28 = vadd.f32 %v3832_v48, %v8187_v57  ;;  %v3921_v61 = vadd.f32 %v3909_v31, %v8188_v62 }
 0xb1c   :  { %6215 = vtanh.f32 %v3918_v47 }
 0xb1d   :  { %v3836_v0 = vpop.f32.mrb[106].mxu0  ;;  %v3913_v35 = vpop.f32.mrb[106].mxu1  ;;  %6217 = vtanh.f32 %v3919_v28 }
 0xb1e   :  { %v3922_v26 = vadd.f32 %v3836_v0, %v8189_v25  ;;  %v3924_v19 = vadd.f32 %v3913_v35, %v8190_v10  ;;  %v3838_v39 = vpop.f32.mrb[107].mxu0  ;;  %v3915_v20 = vpop.f32.mrb[107].mxu1  ;;  %6219 = vtanh.f32 %v3921_v61  ;;  %v8193_v35 = vld [vmem:[#allocation33_spill] sm:$0xff] }
 0xb1f   :  { %v3923_v11 = vadd.f32 %v3838_v39, %v8191_v36  ;;  %v3925_v13 = vadd.f32 %v3915_v20, %v8192_v21  ;;  %v8195_v20 = vld [vmem:[#allocation34_spill] sm:$0xff] }
 0xb20   :  { %6221 = vtanh.f32 %v3922_v26  ;;  %v8194_v26 = vld [vmem:[#allocation79_spill] sm:$0xff] }
 0xb21   :  { %6223 = vtanh.f32 %v3923_v11  ;;  %v8196_v11 = vld [vmem:[#allocation80_spill] sm:$0xff] }
 0xb22   :  { %6225 = vtanh.f32 %v3925_v13 }
 0xb23   :  { %6227 = vtanh.f32 %v3920_v56 }
 0xb24   :  { %6229 = vtanh.f32 %v3924_v19 }
 0xb26   :  { %v6216_v3 = vpop.eup %6215 }
 0xb27   :  { %v3934_v49 = vmul.f32 %v6216_v3, %v7273_v52  ;;  %v6218_v45 = vpop.eup %6217 }
 0xb28   :  { %v6220_v14 = vpop.eup %6219  ;;  %v3935_v46 = vmul.f32 %v6218_v45, %v7275_v12 }
 0xb29   :  { %v3942_v63 = vadd.f32 %v3934_v49, %v7277_v44  ;;  %v3937_v1 = vmul.f32 %v6220_v14, %v7279_v41  ;;  %v8197_v49 = vld [vmem:[#allocation31_spill] sm:$0xff]  ;;  %v8198_v14 = vld [vmem:[#allocation77_spill] sm:$0xff] }
 0xb2a   :  { %v6222_v2 = vpop.eup %6221  ;;  %v3943_v42 = vadd.f32 %v3935_v46, %v7282_v7 }
 0xb2b   :  { %v3938_v27 = vmul.f32 %v6222_v2, %v7273_v52  ;;  %v6224_v38 = vpop.eup %6223  ;;  %v3945_v22 = vadd.f32 %v3937_v1, %v7284_v60  ;;  %v8199_v1 = vld [vmem:[#allocation32_spill] sm:$0xff] }
 0xb2c   :  { %v6226_v4 = vpop.eup %6225  ;;  %v3950_v29 = vmul.f32 %v3943_v42, %v7732_v17  ;;  %v3939_v32 = vmul.f32 %v6224_v38, %v7275_v12 }
 0xb2d   :  { %v3952_v6 = vmul.f32 %v3945_v22, %v3942_v63  ;;  %v3946_v23 = vadd.f32 %v3938_v27, %v7277_v44  ;;  %v3941_v34 = vmul.f32 %v6226_v4, %v7279_v41  ;;  %v6228_v17 = vpop.eup %6227  ;;  %v8200_v27 = vld [vmem:[#allocation78_spill] sm:$0xff] }
 0xb2e   :  { %v3947_v9 = vadd.f32 %v3939_v32, %v7282_v7  ;;  %v3936_v47 = vmul.f32 %v6228_v17, %v7301_v16  ;;  %v6230_v30 = vpop.eup %6229 }
 0xb2f   :  { %v7780_v40 = vadd.f32 %v3952_v6, %v3950_v29  ;;  %v3949_v37 = vadd.f32 %v3941_v34, %v7284_v60  ;;  %v3940_v48 = vmul.f32 %v6230_v30, %v7301_v16 }
 0xb30   :  { %v3951_v33 = vmul.f32 %v3947_v9, %v7737_v43  ;;  %v3944_v56 = vadd.f32 %v3936_v47, %v7307_v55 }
 0xb31   :  { %6231 = vtanh.f32 %v7780_v40  ;;  %v3953_v24 = vmul.f32 %v3949_v37, %v3946_v23  ;;  %v3948_v43 = vadd.f32 %v3940_v48, %v7307_v55 }
 0xb33   :  { %v7785_v5 = vadd.f32 %v3953_v24, %v3951_v33 }
 0xb35   :  { %6233 = vtanh.f32 %v7785_v5 }
 0xb3b   :  { %v6232_v31 = vpop.eup %6231 }
 0xb3c   :  { %v3958_v57 = vmul.f32 %v6232_v31, %v3944_v56 }
 0xb3e   :  { %5374 = vmatmul.mubr.msk.f32.vlgmr.msra.gmra.mrb[108].mxu0 %vm1618_vm2, %v3958_v57  ;;  %5376 = vmatmul.mubr.msk.f32.vlgmr.msra.gmra.mrb[108].mxu1 %vm1618_vm2, %v3958_v57 }
 0xb3f   :  { %v6234_v28 = vpop.eup %6233  ;;  %4044 = vmatprep.mubr.f32.mxu0 %v8141_v8  ;;  %4121 = vmatprep.mubr.f32.mxu1 %v8141_v8 }
 0xb40   :  { %v3959_v62 = vmul.f32 %v6234_v28, %v3948_v43  ;;  %5940 = vmatpush1.bf16.msra.mxu0 %v6706_v50  ;;  %5948 = vmatpush1.bf16.msra.mxu1 %v6708_v51 }
 0xb41   :  { %5942 = vmatprep.subr.bf16.mxu0 %v6710_v53  ;;  %5950 = vmatprep.subr.bf16.mxu1 %v6712_v54 }
 0xb42   :  { %5375 = vmatmul.mubr.msk.f32.gmra.mrb[110].mxu0 %vm1618_vm2, %v3959_v62  ;;  %5377 = vmatmul.mubr.msk.f32.gmra.mrb[110].mxu1 %vm1618_vm2, %v3959_v62 }
 0xb43   :  { %4248 = vmatprep.mubr.f32.mxu0 %v8141_v8  ;;  %4325 = vmatprep.mubr.f32.mxu1 %v8141_v8 }
 0xb44   :  { %5944 = vmatpush1.bf16.msra.mxu0 %v6724_v58  ;;  %5952 = vmatpush1.bf16.msra.mxu1 %v6726_v59 }
 0xb45   :  { %5954 = vmatprep.subr.bf16.mxu0 %v6476_v15  ;;  %5962 = vmatprep.subr.bf16.mxu1 %v6483_v18 }
 0xc11   :  { %v4040_v61 = vpop.f32.mrb[108].mxu0  ;;  %v4117_v0 = vpop.f32.mrb[108].mxu1 }
 0xc12   :  { %v4128_v25 = vadd.f32 %v4040_v61, %v8193_v35  ;;  %v4130_v10 = vadd.f32 %v4117_v0, %v8194_v26  ;;  %v4042_v19 = vpop.f32.mrb[109].mxu0  ;;  %v4119_v39 = vpop.f32.mrb[109].mxu1 }
 0xc13   :  { %v4129_v36 = vadd.f32 %v4042_v19, %v8195_v20  ;;  %v4131_v21 = vadd.f32 %v4119_v39, %v8196_v11 }
 0xc14   :  { %6235 = vtanh.f32 %v4128_v25 }
 0xc15   :  { %v4046_v13 = vpop.f32.mrb[110].mxu0  ;;  %v4123_v3 = vpop.f32.mrb[110].mxu1  ;;  %6237 = vtanh.f32 %v4129_v36 }
 0xc16   :  { %v4132_v45 = vadd.f32 %v4046_v13, %v8197_v49  ;;  %v4134_v46 = vadd.f32 %v4123_v3, %v8198_v14  ;;  %v4048_v2 = vpop.f32.mrb[111].mxu0  ;;  %v4125_v63 = vpop.f32.mrb[111].mxu1  ;;  %6239 = vtanh.f32 %v4131_v21  ;;  %v8201_v3 = vld [vmem:[#allocation37_spill] sm:$0xff] }
 0xc17   :  { %v4133_v42 = vadd.f32 %v4048_v2, %v8199_v1  ;;  %v4135_v38 = vadd.f32 %v4125_v63, %v8200_v27  ;;  %v8203_v63 = vld [vmem:[#allocation38_spill] sm:$0xff] }
 0xc18   :  { %6241 = vtanh.f32 %v4132_v45  ;;  %v8202_v45 = vld [vmem:[#allocation83_spill] sm:$0xff] }
 0xc19   :  { %6243 = vtanh.f32 %v4133_v42  ;;  %v8204_v42 = vld [vmem:[#allocation84_spill] sm:$0xff] }
 0xc1a   :  { %6245 = vtanh.f32 %v4135_v38 }
 0xc1b   :  { %6247 = vtanh.f32 %v4130_v10 }
 0xc1c   :  { %6249 = vtanh.f32 %v4134_v46 }
 0xc1e   :  { %v6236_v22 = vpop.eup %6235 }
 0xc1f   :  { %v4144_v4 = vmul.f32 %v6236_v22, %v7273_v52  ;;  %v6238_v29 = vpop.eup %6237 }
 0xc20   :  { %v6240_v32 = vpop.eup %6239  ;;  %v4145_v6 = vmul.f32 %v6238_v29, %v7275_v12 }
 0xc21   :  { %v4152_v34 = vadd.f32 %v4144_v4, %v7277_v44  ;;  %v4147_v9 = vmul.f32 %v6240_v32, %v7279_v41  ;;  %v8205_v4 = vld [vmem:[#allocation35_spill] sm:$0xff]  ;;  %v8206_v32 = vld [vmem:[#allocation81_spill] sm:$0xff] }
 0xc22   :  { %v6242_v23 = vpop.eup %6241  ;;  %v4153_v37 = vadd.f32 %v4145_v6, %v7282_v7 }
 0xc23   :  { %v4148_v33 = vmul.f32 %v6242_v23, %v7273_v52  ;;  %v6244_v24 = vpop.eup %6243  ;;  %v4155_v17 = vadd.f32 %v4147_v9, %v7284_v60  ;;  %v8207_v9 = vld [vmem:[#allocation36_spill] sm:$0xff] }
 0xc24   :  { %v6246_v47 = vpop.eup %6245  ;;  %v4160_v30 = vmul.f32 %v4153_v37, %v7780_v40  ;;  %v4149_v56 = vmul.f32 %v6244_v24, %v7275_v12 }
 0xc25   :  { %v4162_v48 = vmul.f32 %v4155_v17, %v4152_v34  ;;  %v4156_v31 = vadd.f32 %v4148_v33, %v7277_v44  ;;  %v4151_v57 = vmul.f32 %v6246_v47, %v7279_v41  ;;  %v6248_v40 = vpop.eup %6247  ;;  %v8208_v33 = vld [vmem:[#allocation82_spill] sm:$0xff] }
 0xc26   :  { %v4157_v43 = vadd.f32 %v4149_v56, %v7282_v7  ;;  %v4146_v25 = vmul.f32 %v6248_v40, %v7301_v16  ;;  %v6250_v26 = vpop.eup %6249 }
 0xc27   :  { %v7828_v28 = vadd.f32 %v4162_v48, %v4160_v30  ;;  %v4159_v62 = vadd.f32 %v4151_v57, %v7284_v60  ;;  %v4150_v19 = vmul.f32 %v6250_v26, %v7301_v16 }
 0xc28   :  { %v4161_v61 = vmul.f32 %v4157_v43, %v7785_v5  ;;  %v4154_v10 = vadd.f32 %v4146_v25, %v7307_v55 }
 0xc29   :  { %6251 = vtanh.f32 %v7828_v28  ;;  %v4163_v0 = vmul.f32 %v4159_v62, %v4156_v31  ;;  %v4158_v5 = vadd.f32 %v4150_v19, %v7307_v55 }
 0xc2b   :  { %v7833_v35 = vadd.f32 %v4163_v0, %v4161_v61 }
 0xc2d   :  { %6253 = vtanh.f32 %v7833_v35 }
 0xc33   :  { %v6252_v39 = vpop.eup %6251 }
 0xc34   :  { %v4168_v20 = vmul.f32 %v6252_v39, %v4154_v10 }
 0xc36   :  { %5378 = vmatmul.mubr.msk.f32.vlgmr.msra.gmra.mrb[112].mxu0 %vm1618_vm2, %v4168_v20  ;;  %5380 = vmatmul.mubr.msk.f32.vlgmr.msra.gmra.mrb[112].mxu1 %vm1618_vm2, %v4168_v20 }
 0xc37   :  { %v6254_v36 = vpop.eup %6253  ;;  %4254 = vmatprep.mubr.f32.mxu0 %v8141_v8  ;;  %4331 = vmatprep.mubr.f32.mxu1 %v8141_v8 }
 0xc38   :  { %v4169_v11 = vmul.f32 %v6254_v36, %v4158_v5  ;;  %5956 = vmatpush1.bf16.msra.mxu0 %v6706_v50  ;;  %5964 = vmatpush1.bf16.msra.mxu1 %v6708_v51 }
 0xc39   :  { %5958 = vmatprep.subr.bf16.mxu0 %v6710_v53  ;;  %5966 = vmatprep.subr.bf16.mxu1 %v6712_v54 }
 0xc3a   :  { %5379 = vmatmul.mubr.msk.f32.gmra.mrb[114].mxu0 %vm1618_vm2, %v4169_v11  ;;  %5381 = vmatmul.mubr.msk.f32.gmra.mrb[114].mxu1 %vm1618_vm2, %v4169_v11 }
 0xc3b   :  { %4458 = vmatprep.mubr.f32.mxu0 %v8141_v8  ;;  %4535 = vmatprep.mubr.f32.mxu1 %v8141_v8 }
 0xc3c   :  { %5960 = vmatpush1.bf16.msra.mxu0 %v6724_v58  ;;  %5968 = vmatpush1.bf16.msra.mxu1 %v6726_v59 }
 0xc3d   :  { %5970 = vmatprep.subr.bf16.mxu0 %v6476_v15  ;;  %5978 = vmatprep.subr.bf16.mxu1 %v6483_v18 }
 0xd09   :  { %v4250_v21 = vpop.f32.mrb[112].mxu0  ;;  %v4327_v13 = vpop.f32.mrb[112].mxu1 }
 0xd0a   :  { %v4338_v49 = vadd.f32 %v4250_v21, %v8201_v3  ;;  %v4340_v14 = vadd.f32 %v4327_v13, %v8202_v45  ;;  %v4252_v46 = vpop.f32.mrb[113].mxu0  ;;  %v4329_v2 = vpop.f32.mrb[113].mxu1 }
 0xd0b   :  { %v4339_v1 = vadd.f32 %v4252_v46, %v8203_v63  ;;  %v4341_v27 = vadd.f32 %v4329_v2, %v8204_v42 }
 0xd0c   :  { %6255 = vtanh.f32 %v4338_v49 }
 0xd0d   :  { %v4256_v38 = vpop.f32.mrb[114].mxu0  ;;  %v4333_v22 = vpop.f32.mrb[114].mxu1  ;;  %6257 = vtanh.f32 %v4339_v1 }
 0xd0e   :  { %v4342_v29 = vadd.f32 %v4256_v38, %v8205_v4  ;;  %v4344_v6 = vadd.f32 %v4333_v22, %v8206_v32  ;;  %v4258_v23 = vpop.f32.mrb[115].mxu0  ;;  %v4335_v34 = vpop.f32.mrb[115].mxu1  ;;  %6259 = vtanh.f32 %v4341_v27  ;;  %v8209_v22 = vld [vmem:[#allocation41_spill] sm:$0xff] }
 0xd0f   :  { %v4343_v37 = vadd.f32 %v4258_v23, %v8207_v9  ;;  %v4345_v24 = vadd.f32 %v4335_v34, %v8208_v33  ;;  %v8211_v34 = vld [vmem:[#allocation42_spill] sm:$0xff] }
 0xd10   :  { %6261 = vtanh.f32 %v4342_v29  ;;  %v8210_v29 = vld [vmem:[#allocation87_spill] sm:$0xff] }
 0xd11   :  { %6263 = vtanh.f32 %v4343_v37  ;;  %v8212_v37 = vld [vmem:[#allocation88_spill] sm:$0xff] }
 0xd12   :  { %6265 = vtanh.f32 %v4345_v24 }
 0xd13   :  { %6267 = vtanh.f32 %v4340_v14 }
 0xd14   :  { %6269 = vtanh.f32 %v4344_v6 }
 0xd16   :  { %v6256_v17 = vpop.eup %6255 }
 0xd17   :  { %v4354_v47 = vmul.f32 %v6256_v17, %v7273_v52  ;;  %v6258_v30 = vpop.eup %6257 }
 0xd18   :  { %v6260_v56 = vpop.eup %6259  ;;  %v4355_v48 = vmul.f32 %v6258_v30, %v7275_v12  ;;  %v8214_v30 = vld [vmem:[#allocation85_spill] sm:$0xff] }
 0xd19   :  { %v4362_v57 = vadd.f32 %v4354_v47, %v7277_v44  ;;  %v4357_v43 = vmul.f32 %v6260_v56, %v7279_v41  ;;  %v8213_v47 = vld [vmem:[#allocation39_spill] sm:$0xff] }
 0xd1a   :  { %v6262_v31 = vpop.eup %6261  ;;  %v4363_v62 = vadd.f32 %v4355_v48, %v7282_v7 }
 0xd1b   :  { %v4358_v61 = vmul.f32 %v6262_v31, %v7273_v52  ;;  %v6264_v0 = vpop.eup %6263  ;;  %v4365_v40 = vadd.f32 %v4357_v43, %v7284_v60  ;;  %v8215_v31 = vld [vmem:[#allocation40_spill] sm:$0xff]  ;;  %v8216_v43 = vld [vmem:[#allocation86_spill] sm:$0xff] }
 0xd1c   :  { %v6266_v25 = vpop.eup %6265  ;;  %v4370_v26 = vmul.f32 %v4363_v62, %v7828_v28  ;;  %v4359_v10 = vmul.f32 %v6264_v0, %v7275_v12 }
 0xd1d   :  { %v4372_v19 = vmul.f32 %v4365_v40, %v4362_v57  ;;  %v4366_v39 = vadd.f32 %v4358_v61, %v7277_v44  ;;  %v4361_v20 = vmul.f32 %v6266_v25, %v7279_v41  ;;  %v6268_v28 = vpop.eup %6267 }
 0xd1e   :  { %v4367_v5 = vadd.f32 %v4359_v10, %v7282_v7  ;;  %v4356_v49 = vmul.f32 %v6268_v28, %v7301_v16  ;;  %v6270_v45 = vpop.eup %6269 }
 0xd1f   :  { %v7876_v36 = vadd.f32 %v4372_v19, %v4370_v26  ;;  %v4369_v11 = vadd.f32 %v4361_v20, %v7284_v60  ;;  %v4360_v46 = vmul.f32 %v6270_v45, %v7301_v16 }
 0xd20   :  { %v4371_v21 = vmul.f32 %v4367_v5, %v7833_v35  ;;  %v4364_v14 = vadd.f32 %v4356_v49, %v7307_v55 }
 0xd21   :  { %6271 = vtanh.f32 %v7876_v36  ;;  %v4373_v13 = vmul.f32 %v4369_v11, %v4366_v39  ;;  %v4368_v35 = vadd.f32 %v4360_v46, %v7307_v55 }
 0xd23   :  { %v7881_v3 = vadd.f32 %v4373_v13, %v4371_v21 }
 0xd25   :  { %6273 = vtanh.f32 %v7881_v3 }
 0xd2b   :  { %v6272_v2 = vpop.eup %6271 }
 0xd2c   :  { %v4378_v63 = vmul.f32 %v6272_v2, %v4364_v14 }
 0xd2e   :  { %5382 = vmatmul.mubr.msk.f32.vlgmr.msra.gmra.mrb[116].mxu0 %vm1618_vm2, %v4378_v63  ;;  %5384 = vmatmul.mubr.msk.f32.vlgmr.msra.gmra.mrb[116].mxu1 %vm1618_vm2, %v4378_v63 }
 0xd2f   :  { %v6274_v1 = vpop.eup %6273  ;;  %4464 = vmatprep.mubr.f32.mxu0 %v8141_v8  ;;  %4541 = vmatprep.mubr.f32.mxu1 %v8141_v8 }
 0xd30   :  { %v4379_v42 = vmul.f32 %v6274_v1, %v4368_v35  ;;  %5972 = vmatpush1.bf16.msra.mxu0 %v6706_v50  ;;  %5980 = vmatpush1.bf16.msra.mxu1 %v6708_v51 }
 0xd31   :  { %5974 = vmatprep.subr.bf16.mxu0 %v6710_v53  ;;  %5982 = vmatprep.subr.bf16.mxu1 %v6712_v54 }
 0xd32   :  { %5383 = vmatmul.mubr.msk.f32.gmra.mrb[118].mxu0 %vm1618_vm2, %v4379_v42  ;;  %5385 = vmatmul.mubr.msk.f32.gmra.mrb[118].mxu1 %vm1618_vm2, %v4379_v42 }
 0xd33   :  { %4668 = vmatprep.mubr.f32.mxu0 %v8141_v8  ;;  %4745 = vmatprep.mubr.f32.mxu1 %v8141_v8 }
 0xd34   :  { %5976 = vmatpush1.bf16.msra.mxu0 %v6724_v58  ;;  %5984 = vmatpush1.bf16.msra.mxu1 %v6726_v59 }
 0xd35   :  { %5986 = vmatprep.subr.bf16.mxu0 %v6476_v15  ;;  %5994 = vmatprep.subr.bf16.mxu1 %v6483_v18 }
 0xe01   :  { %v4460_v27 = vpop.f32.mrb[116].mxu0  ;;  %v4537_v38 = vpop.f32.mrb[116].mxu1 }
 0xe02   :  { %v4548_v4 = vadd.f32 %v4460_v27, %v8209_v22  ;;  %v4550_v32 = vadd.f32 %v4537_v38, %v8210_v29  ;;  %v4462_v6 = vpop.f32.mrb[117].mxu0  ;;  %v4539_v23 = vpop.f32.mrb[117].mxu1 }
 0xe03   :  { %v4549_v9 = vadd.f32 %v4462_v6, %v8211_v34  ;;  %v4551_v33 = vadd.f32 %v4539_v23, %v8212_v37  ;;  %v8217_v37 = vld [vmem:[#allocation45_spill] sm:$0xff] }
 0xe04   :  { %6275 = vtanh.f32 %v4548_v4 }
 0xe05   :  { %v4466_v24 = vpop.f32.mrb[118].mxu0  ;;  %v4543_v17 = vpop.f32.mrb[118].mxu1  ;;  %6277 = vtanh.f32 %v4549_v9 }
 0xe06   :  { %v4552_v15 = vadd.f32 %v4466_v24, %v8213_v47  ;;  %v4554_v18 = vadd.f32 %v4543_v17, %v8214_v30  ;;  %v4468_v56 = vpop.f32.mrb[119].mxu0  ;;  %v4545_v48 = vpop.f32.mrb[119].mxu1  ;;  %6279 = vtanh.f32 %v4551_v33  ;;  %v8218_v33 = vld [vmem:[#allocation91_spill] sm:$0xff]  ;;  %v8219_v17 = vld [vmem:[#allocation46_spill] sm:$0xff] }
 0xe07   :  { %v4553_v57 = vadd.f32 %v4468_v56, %v8215_v31  ;;  %v4555_v62 = vadd.f32 %v4545_v48, %v8216_v43  ;;  %v8221_v48 = vld [vmem:[#allocation43_spill] sm:$0xff]  ;;  %v8222_v31 = vld [vmem:[#allocation89_spill] sm:$0xff] }
 0xe08   :  { %6281 = vtanh.f32 %v4552_v15  ;;  %v8220_v15 = vld [vmem:[#allocation92_spill] sm:$0xff] }
 0xe09   :  { %6283 = vtanh.f32 %v4553_v57 }
 0xe0a   :  { %6285 = vtanh.f32 %v4555_v62  ;;  %v8223_v62 = vld [vmem:[#allocation44_spill] sm:$0xff] }
 0xe0b   :  { %6287 = vtanh.f32 %v4550_v32 }
 0xe0c   :  { %6289 = vtanh.f32 %v4554_v18 }
 0xe0e   :  { %v6276_v61 = vpop.eup %6275 }
 0xe0f   :  { %v4564_v0 = vmul.f32 %v6276_v61, %v7273_v52  ;;  %v6278_v40 = vpop.eup %6277 }
 0xe10   :  { %v6280_v25 = vpop.eup %6279  ;;  %v4565_v26 = vmul.f32 %v6278_v40, %v7275_v12 }
 0xe11   :  { %v4572_v19 = vadd.f32 %v4564_v0, %v7277_v44  ;;  %v4567_v39 = vmul.f32 %v6280_v25, %v7279_v41  ;;  %v8224_v0 = vld [vmem:[#allocation90_spill] sm:$0xff] }
 0xe12   :  { %v6282_v10 = vpop.eup %6281  ;;  %v4573_v20 = vadd.f32 %v4565_v26, %v7282_v7 }
 0xe13   :  { %v4568_v5 = vmul.f32 %v6282_v10, %v7273_v52  ;;  %v6284_v11 = vpop.eup %6283  ;;  %v4575_v21 = vadd.f32 %v4567_v39, %v7284_v60 }
 0xe14   :  { %v6286_v13 = vpop.eup %6285  ;;  %v4580_v28 = vmul.f32 %v4573_v20, %v7876_v36  ;;  %v4569_v49 = vmul.f32 %v6284_v11, %v7275_v12 }
 0xe15   :  { %v4582_v45 = vmul.f32 %v4575_v21, %v4572_v19  ;;  %v4576_v14 = vadd.f32 %v4568_v5, %v7277_v44  ;;  %v4571_v46 = vmul.f32 %v6286_v13, %v7279_v41  ;;  %v6288_v36 = vpop.eup %6287 }
 0xe16   :  { %v4577_v2 = vadd.f32 %v4569_v49, %v7282_v7  ;;  %v4566_v38 = vmul.f32 %v6288_v36, %v7301_v16  ;;  %v6290_v22 = vpop.eup %6289 }
 0xe17   :  { %v7924_v63 = vadd.f32 %v4582_v45, %v4580_v28  ;;  %v4579_v35 = vadd.f32 %v4571_v46, %v7284_v60  ;;  %v4570_v29 = vmul.f32 %v6290_v22, %v7301_v16 }
 0xe18   :  { %v4581_v1 = vmul.f32 %v4577_v2, %v7881_v3  ;;  %v4574_v4 = vadd.f32 %v4566_v38, %v7307_v55 }
 0xe19   :  { %6291 = vtanh.f32 %v7924_v63  ;;  %v4583_v42 = vmul.f32 %v4579_v35, %v4576_v14  ;;  %v4578_v3 = vadd.f32 %v4570_v29, %v7307_v55 }
 0xe1b   :  { %v7929_v27 = vadd.f32 %v4583_v42, %v4581_v1 }
 0xe1d   :  { %6293 = vtanh.f32 %v7929_v27 }
 0xe23   :  { %v6292_v32 = vpop.eup %6291 }
 0xe24   :  { %v4588_v6 = vmul.f32 %v6292_v32, %v4574_v4 }
 0xe26   :  { %5386 = vmatmul.mubr.msk.f32.vlgmr.msra.gmra.mrb[120].mxu0 %vm1618_vm2, %v4588_v6  ;;  %5388 = vmatmul.mubr.msk.f32.vlgmr.msra.gmra.mrb[120].mxu1 %vm1618_vm2, %v4588_v6 }
 0xe27   :  { %v6294_v23 = vpop.eup %6293  ;;  %4674 = vmatprep.mubr.f32.mxu0 %v8141_v8  ;;  %4751 = vmatprep.mubr.f32.mxu1 %v8141_v8 }
 0xe28   :  { %v4589_v34 = vmul.f32 %v6294_v23, %v4578_v3  ;;  %5988 = vmatpush1.bf16.msra.mxu0 %v6706_v50  ;;  %5996 = vmatpush1.bf16.msra.mxu1 %v6708_v51 }
 0xe29   :  { %5990 = vmatprep.subr.bf16.mxu0 %v6710_v53  ;;  %5998 = vmatprep.subr.bf16.mxu1 %v6712_v54 }
 0xe2a   :  { %5387 = vmatmul.mubr.msk.f32.gmra.mrb[122].mxu0 %vm1618_vm2, %v4589_v34  ;;  %5389 = vmatmul.mubr.msk.f32.gmra.mrb[122].mxu1 %vm1618_vm2, %v4589_v34 }
 0xe2b   :  { %4878 = vmatprep.mubr.f32.mxu0 %v8141_v8  ;;  %4955 = vmatprep.mubr.f32.mxu1 %v8141_v8 }
 0xe2c   :  { %5992 = vmatpush1.bf16.msra.mxu0 %v6724_v58  ;;  %6000 = vmatpush1.bf16.msra.mxu1 %v6726_v59 }
 0xef9   :  { %v4670_v9 = vpop.f32.mrb[120].mxu0  ;;  %v4747_v50 = vpop.f32.mrb[120].mxu1 }
 0xefa   :  { %v4758_v51 = vadd.f32 %v4670_v9, %v8217_v37  ;;  %v4760_v53 = vadd.f32 %v4747_v50, %v8218_v33  ;;  %v4672_v24 = vpop.f32.mrb[121].mxu0  ;;  %v4749_v54 = vpop.f32.mrb[121].mxu1  ;;  %v5013_v33 = vld [vmem:[#allocation3 + $0x100] sm:$0xff] }
 0xefb   :  { %v4759_v47 = vadd.f32 %v4672_v24, %v8219_v17  ;;  %v4761_v30 = vadd.f32 %v4749_v54, %v8220_v15  ;;  %v5015_v54 = vld [vmem:[#allocation3 + $0x140] sm:$0xff]  ;;  %v7997_v15 = vld [vmem:[%s8046_s2 + $0x8] sm:$0xff] }
 0xefc   :  { %6295 = vtanh.f32 %v4758_v51  ;;  %v5012_v51 = vld [vmem:[#allocation3 + $0xe0] sm:$0xff] }
 0xefd   :  { %v4676_v18 = vpop.f32.mrb[122].mxu0  ;;  %v4753_v56 = vpop.f32.mrb[122].mxu1  ;;  %6297 = vtanh.f32 %v4759_v47  ;;  %v6001_v24 = vpack.c.bf16 %v5013_v33, %v5012_v51  ;;  %v7991_v47 = vld [vmem:[%s8046_s2] sm:$0xff] }
 0xefe   :  { %v4762_v58 = vadd.f32 %v4676_v18, %v8221_v48  ;;  %v4764_v59 = vadd.f32 %v4753_v56, %v8222_v31  ;;  %v4678_v57 = vpop.f32.mrb[123].mxu0  ;;  %v4755_v43 = vpop.f32.mrb[123].mxu1  ;;  %6299 = vtanh.f32 %v4761_v30  ;;  %v8225_v56 = vld [vmem:[#allocation49_spill] sm:$0xff] }
 0xeff   :  { %v4763_v61 = vadd.f32 %v4678_v57, %v8223_v62  ;;  %v4765_v40 = vadd.f32 %v4755_v43, %v8224_v0  ;;  %6002 = vmatprep.subr.bf16.mxu0 %v6001_v24  ;;  %v8227_v43 = vld [vmem:[#allocation50_spill] sm:$0xff] }
 0xf00   :  { %6301 = vtanh.f32 %v4762_v58  ;;  %v8226_v58 = vld [vmem:[#allocation95_spill] sm:$0xff] }
 0xf01   :  { %6303 = vtanh.f32 %v4763_v61  ;;  %v8228_v61 = vld [vmem:[#allocation96_spill] sm:$0xff] }
 0xf02   :  { %6305 = vtanh.f32 %v4765_v40 }
 0xf03   :  { %6307 = vtanh.f32 %v4760_v53  ;;  %v5014_v53 = vld [vmem:[#allocation3 + $0x120] sm:$0xff] }
 0xf04   :  { %6309 = vtanh.f32 %v4764_v59  ;;  %v6005_v17 = vpack.c.bf16 %v5015_v54, %v5014_v53 }
 0xf06   :  { %v6296_v25 = vpop.eup %6295 }
 0xf07   :  { %v4774_v26 = vmul.f32 %v6296_v25, %v7273_v52  ;;  %v6298_v10 = vpop.eup %6297 }
 0xf08   :  { %v6300_v19 = vpop.eup %6299  ;;  %v4775_v39 = vmul.f32 %v6298_v10, %v7275_v12 }
 0xf09   :  { %v4782_v5 = vadd.f32 %v4774_v26, %v7277_v44  ;;  %v4777_v11 = vmul.f32 %v6300_v19, %v7279_v41  ;;  %v8229_v26 = vld [vmem:[#allocation47_spill] sm:$0xff]  ;;  %v8230_v19 = vld [vmem:[#allocation93_spill] sm:$0xff] }
 0xf0a   :  { %v6302_v20 = vpop.eup %6301  ;;  %v4783_v21 = vadd.f32 %v4775_v39, %v7282_v7 }
 0xf0b   :  { %v4778_v13 = vmul.f32 %v6302_v20, %v7273_v52  ;;  %v6304_v28 = vpop.eup %6303  ;;  %v4785_v49 = vadd.f32 %v4777_v11, %v7284_v60  ;;  %v8231_v11 = vld [vmem:[#allocation48_spill] sm:$0xff] }
 0xf0c   :  { %v6306_v45 = vpop.eup %6305  ;;  %v4790_v14 = vmul.f32 %v4783_v21, %v7924_v63  ;;  %v4779_v46 = vmul.f32 %v6304_v28, %v7275_v12 }
 0xf0d   :  { %v4792_v2 = vmul.f32 %v4785_v49, %v4782_v5  ;;  %v4786_v35 = vadd.f32 %v4778_v13, %v7277_v44  ;;  %v4781_v1 = vmul.f32 %v6306_v45, %v7279_v41  ;;  %v6308_v63 = vpop.eup %6307  ;;  %v8232_v13 = vld [vmem:[#allocation94_spill] sm:$0xff] }
 0xf0e   :  { %v4787_v42 = vadd.f32 %v4779_v46, %v7282_v7  ;;  %v4776_v32 = vmul.f32 %v6308_v63, %v7301_v16  ;;  %v6310_v6 = vpop.eup %6309 }
 0xf0f   :  { %v7970_v36 = vadd.f32 %v4792_v2, %v4790_v14  ;;  %v4789_v38 = vadd.f32 %v4781_v1, %v7284_v60  ;;  %v4780_v23 = vmul.f32 %v6310_v6, %v7301_v16 }
 0xf10   :  { %v4791_v22 = vmul.f32 %v4787_v42, %v7929_v27  ;;  %v4784_v3 = vadd.f32 %v4776_v32, %v7307_v55 }
 0xf11   :  { %6311 = vtanh.f32 %v7970_v36  ;;  %v4793_v4 = vmul.f32 %v4789_v38, %v4786_v35  ;;  %v4788_v27 = vadd.f32 %v4780_v23, %v7307_v55 }
 0xf13   :  { %v7975_v29 = vadd.f32 %v4793_v4, %v4791_v22 }
 0xf15   :  { %6313 = vtanh.f32 %v7975_v29 }
 0xf1b   :  { %v6312_v34 = vpop.eup %6311 }
 0xf1c   :  { %v4798_v9 = vmul.f32 %v6312_v34, %v4784_v3 }
 0xf1e   :  { %5390 = vmatmul.mubr.msk.f32.vlgmr.msra.gmra.mrb[124].mxu0 %vm1618_vm2, %v4798_v9  ;;  %5392 = vmatmul.mubr.msk.f32.vlgmr.msra.gmra.mrb[124].mxu1 %vm1618_vm2, %v4798_v9 }
 0xf1f   :  { %v6314_v50 = vpop.eup %6313  ;;  %4884 = vmatprep.mubr.f32.mxu0 %v8141_v8  ;;  %4961 = vmatprep.mubr.f32.mxu1 %v8141_v8  ;;  %v6367_v8 = vmov 0  }
 0xf20   :  { %v4799_v37 = vmul.f32 %v6314_v50, %v4788_v27  ;;  %6004 = vmatpush3.bf16.msra.mxu0 %v6001_v24  ;;  %6014 = vset.pattern.permute.xlu0 %v6367_v8  ;;  %v5016_v8 = vld [vmem:[#allocation3 + $0x3] ss:$0 sm:$0xff] }
 0xf21   :  { %6006 = vmatprep.subr.bf16.mxu0 %v6005_v17  ;;  %5102 = vperm.xlu0 %6014, %v7991_v47  }
 0xf22   :  { %5391 = vmatmul.mubr.msk.f32.gmra.mrb[126].mxu0 %vm1618_vm2, %v4799_v37  ;;  %5393 = vmatmul.mubr.msk.f32.gmra.mrb[126].mxu1 %vm1618_vm2, %v4799_v37 }
 0xf24   :  { %6008 = vmatpush3.bf16.msra.mxu0 %v6005_v17 }
 0xf25   :  { %5107 = vperm.xlu0 %6014, %v7997_v15  }
 0xfa0   :  { %v5103_v17 = vpop.permute.xlu0 %5102 }
 0xff1   :  { %v4880_v30 = vpop.f32.mrb[124].mxu0  ;;  %v4957_v18 = vpop.f32.mrb[124].mxu1 }
 0xff2   :  { %v4968_v48 = vadd.f32 %v4880_v30, %v8225_v56  ;;  %v4970_v31 = vadd.f32 %v4957_v18, %v8226_v58  ;;  %v4882_v59 = vpop.f32.mrb[125].mxu0  ;;  %v4959_v57 = vpop.f32.mrb[125].mxu1 }
 0xff3   :  { %v4969_v62 = vadd.f32 %v4882_v59, %v8227_v43  ;;  %v4971_v0 = vadd.f32 %v4959_v57, %v8228_v61 }
 0xff4   :  { %6315 = vtanh.f32 %v4968_v48  ;;  %v5108_v48 = vpop.permute.xlu0 %5107 }
 0xff5   :  { %v4886_v40 = vpop.f32.mrb[126].mxu0  ;;  %v4963_v25 = vpop.f32.mrb[126].mxu1  ;;  %6317 = vtanh.f32 %v4969_v62 }
 0xff6   :  { %v4972_v10 = vadd.f32 %v4886_v40, %v8229_v26  ;;  %v4974_v39 = vadd.f32 %v4963_v25, %v8230_v19  ;;  %v4888_v20 = vpop.f32.mrb[127].mxu0  ;;  %v4965_v5 = vpop.f32.mrb[127].mxu1  ;;  %6319 = vtanh.f32 %v4971_v0 }
 0xff7   :  { %v4973_v21 = vadd.f32 %v4888_v20, %v8231_v11  ;;  %v4975_v28 = vadd.f32 %v4965_v5, %v8232_v13 }
 0xff8   :  { %6321 = vtanh.f32 %v4972_v10 }
 0xff9   :  { %6323 = vtanh.f32 %v4973_v21 }
 0xffa   :  { %6325 = vtanh.f32 %v4975_v28 }
 0xffb   :  { %6327 = vtanh.f32 %v4970_v31 }
 0xffc   :  { %6329 = vtanh.f32 %v4974_v39 }
 0xffe   :  { %v6316_v49 = vpop.eup %6315 }
 0xfff   :  { %v4984_v45 = vmul.f32 %v6316_v49, %v7273_v52  ;;  %v6318_v14 = vpop.eup %6317 }
0x1000   :  { %v6320_v46 = vpop.eup %6319  ;;  %v4985_v2 = vmul.f32 %v6318_v14, %v7275_v12 }
0x1001   :  { %v4992_v1 = vadd.f32 %v4984_v45, %v7277_v44  ;;  %v4987_v42 = vmul.f32 %v6320_v46, %v7279_v41 }
0x1002   :  { %v6322_v35 = vpop.eup %6321  ;;  %v4993_v38 = vadd.f32 %v4985_v2, %v7282_v7 }
0x1003   :  { %v4988_v22 = vmul.f32 %v6322_v35, %v7273_v52  ;;  %v6324_v4 = vpop.eup %6323  ;;  %v4995_v63 = vadd.f32 %v4987_v42, %v7284_v60  ;;  %v5017_v35 = vld [vmem:[#allocation3 + $0x4] ss:$0 sm:$0xff] }
0x1004   :  { %v6326_v32 = vpop.eup %6325  ;;  %v5000_v6 = vmul.f32 %v4993_v38, %v7970_v36  ;;  %v4989_v3 = vmul.f32 %v6324_v4, %v7275_v12  ;;  %v5018_v38 = vld [vmem:[#allocation3 + $0x5] ss:$0 sm:$0xff] }
0x1005   :  { %v5002_v23 = vmul.f32 %v4995_v63, %v4992_v1  ;;  %v4996_v34 = vadd.f32 %v4988_v22, %v7277_v44  ;;  %v4991_v9 = vmul.f32 %v6326_v32, %v7279_v41  ;;  %v6328_v33 = vpop.eup %6327 }
0x1006   :  { %v4997_v27 = vadd.f32 %v4989_v3, %v7282_v7  ;;  %v4986_v12 = vmul.f32 %v6328_v33, %v7301_v16  ;;  %v6330_v36 = vpop.eup %6329 }
0x1007   :  { %v5004_v50 = vadd.f32 %v5002_v23, %v5000_v6  ;;  %v4999_v37 = vadd.f32 %v4991_v9, %v7284_v60  ;;  %v4990_v44 = vmul.f32 %v6330_v36, %v7301_v16  ;;  %v5144_v6 = vld [vmem:[#allocation3 + $0x6] ss:$0 sm:$0xff] }
0x1008   :  { %v5001_v52 = vmul.f32 %v4997_v27, %v7975_v29  ;;  %v4994_v24 = vadd.f32 %v4986_v12, %v7307_v55  ;;  %v5145_v27 = vld [vmem:[#allocation3 + $0x7] ss:$0 sm:$0xff] }
0x1009   :  { %v5003_v51 = vmul.f32 %v4999_v37, %v4996_v34  ;;  %6331 = vtanh.f32 %v5004_v50  ;;  %v4998_v7 = vadd.f32 %v4990_v44, %v7307_v55 }
0x100b   :  { %v5005_v53 = vadd.f32 %v5003_v51, %v5001_v52 }
0x100d   :  { %6333 = vtanh.f32 %v5005_v53 }
0x1013   :  { %v6332_v41 = vpop.eup %6331 }
0x1014   :  { %v5008_v54 = vmul.f32 %v6332_v41, %v4994_v24 }
0x1016   :  { %5742 = vmatprep.mubr.msk.f32.mxu0 %vm1618_vm2, %v5008_v54 }
0x1017   :  { %v6334_v60 = vpop.eup %6333 }
0x1018   :  { %v5009_v29 = vmul.f32 %v6334_v60, %v4998_v7 }
0x101a   :  { %5743 = vmatmul.mubr.msk.f32.vlgmr.msra.gmra.mrb[128].mxu0 %vm1618_vm2, %v5009_v29 }
0x10ed   :  { %v5744_v30 = vpop.f32.mrb[128].mxu0 }
0x10ee   :  { %v5097_v18 = vadd.f32 %v5744_v30, %v5016_v8  ;;  %v5091_v56 = vpop.f32.mrb[129].mxu0 }
0x10ef   :  { %v5092_v58 = vadd.f32 %v5091_v56, %v5016_v8 }
0x10f0   :  { %v5111_v16 = vmul.f32 %v5108_v48, %v5097_v18 }
0x10f1   :  { %v5110_v31 = vmul.f32 %v5103_v17, %v5092_v58 }
0x10f3   :  { %v5112_v59 = vadd.f32 %v5111_v16, %v5110_v31 }
0x10f5   :  { %v5113_v57 = vrot.slane %v5112_v59, 4 }
0x10f7   :  { %v5114_v43 = vadd.f32 %v5113_v57, %v5112_v59 }
0x10f9   :  { %v5115_v62 = vrot.slane %v5114_v43, 2 }
0x10fb   :  { %v5116_v55 = vadd.f32 %v5115_v62, %v5114_v43 }
0x10fd   :  { %v5117_v61 = vrot.slane %v5116_v55, 1 }
0x10ff   :  { %v5118_v0 = vadd.f32 %v5117_v61, %v5116_v55 }
0x1101   :  { %v5119_v40 = vmul.f32 0.083333336, %v5118_v0 }
0x1103   :  { %v5120_v25 = vsub.f32 %v5092_v58, %v5119_v40  ;;  %v5121_v26 = vsub.f32 %v5097_v18, %v5119_v40 }
0x1105   :  { %v5122_v10 = vmul.f32 %v5120_v25, %v5103_v17  ;;  %v5123_v19 = vmul.f32 %v5121_v26, %v5108_v48 }
0x1107   :  { %v5124_v39 = vmul.f32 %v5122_v10, %v5122_v10  ;;  %v5125_v20 = vmul.f32 %v5123_v19, %v5123_v19  ;;  %v5147_v19 = vld [vmem:[#allocation3 + $0x21] ss:$0 sm:$0xff] }
0x1109   :  { %v5126_v5 = vadd.f32 %v5125_v20, %v5124_v39 }
0x110b   :  { %v5127_v11 = vrot.slane %v5126_v5, 4 }
0x110d   :  { %v5128_v21 = vadd.f32 %v5127_v11, %v5126_v5 }
0x110f   :  { %v5129_v13 = vrot.slane %v5128_v21, 2 }
0x1111   :  { %v5130_v28 = vadd.f32 %v5129_v13, %v5128_v21 }
0x1113   :  { %v5131_v49 = vrot.slane %v5130_v28, 1 }
0x1115   :  { %v5132_v45 = vadd.f32 %v5131_v49, %v5130_v28 }
0x1117   :  { %v5133_v14 = vmul.f32 0.083333336, %v5132_v45 }
0x1119   :  { %v5134_v46 = vadd.f32 1e-05, %v5133_v14 }
0x111b   :  { %6335 = vrsqrt.f32 %v5134_v46 }
0x1125   :  { %v6336_v2 = vpop.eup %6335 }
0x1126   :  { %v5136_v1 = vmul.f32 %v6336_v2, %v5120_v25  ;;  %v5137_v42 = vmul.f32 %v6336_v2, %v5121_v26 }
0x1128   :  { %v5138_v22 = vmul.f32 %v5136_v1, %v5017_v35  ;;  %v5139_v4 = vmul.f32 %v5137_v42, %v5017_v35 }
0x112a   :  { %v5140_v63 = vadd.f32 %v5138_v22, %v5018_v38  ;;  %v5141_v32 = vadd.f32 %v5139_v4, %v5018_v38 }
0x112c   :  { %v5142_v3 = vmax.f32 %v5140_v63, 0.0  ;;  %v5143_v34 = vmax.f32 %v5141_v32, 0.0 }
0x112e   :  { %v5148_v23 = vmul.f32 %v5144_v6, %v5142_v3  ;;  %v5149_v9 = vmul.f32 %v5144_v6, %v5143_v34 }
0x1130   :  { %5150 = vadd.xlane.f32.xlu1 %v5148_v23 }
0x1134   :  { %5152 = vadd.xlane.f32.xlu1 %v5149_v9 }
0x11bd   :  { %v5151_v50 = vpop.xlane.xlu1 %5150 }
0x11be   :  { %v5154_v37 = vadd.f32 %v5151_v50, %v5145_v27 }
0x11c0   :  { %v5156_v51 = vmul.f32 %v5154_v37, %v7991_v47 }
0x11c1   :  { %v5153_v52 = vpop.xlane.xlu1 %5152 }
0x11c2   :  { %v5155_v33 = vadd.f32 %v5153_v52, %v5145_v27  ;;  %v5159_v12 = vsel %vm5158_vm3, %v5156_v51, 0.0 }
0x11c4   :  { %v5157_v53 = vmul.f32 %v5155_v33, %v7997_v15 }
0x11c6   :  { %v5160_v36 = vsel %vm5158_vm3, %v5157_v53, 0.0 }
0x11c7   :  { %v5161_v44 = vadd.f32 %v5160_v36, %v5159_v12 }
0x11c9   :  { %v5162_v24 = vrot.slane %v5161_v44, 4 }
0x11cb   :  { %v5163_v41 = vadd.f32 %v5162_v24, %v5161_v44 }
0x11cd   :  { %v5164_v54 = vrot.slane %v5163_v41, 2 }
0x11cf   :  { %v5165_v7 = vadd.f32 %v5164_v54, %v5163_v41 }
0x11d1   :  { %v5166_v60 = vrot.slane %v5165_v7, 1 }
0x11d3   :  { %v5167_v29 = vadd.f32 %v5166_v60, %v5165_v7 }
0x11d5   :  { %v5168_v17 = vmul.f32 0.083333336, %v5167_v29 }
0x11d7   :  { %v5169_v8 = vsub.f32 %v5154_v37, %v5168_v17  ;;  %v5170_v30 = vsub.f32 %v5155_v33, %v5168_v17 }
0x11d9   :  { %v5171_v18 = vmul.f32 %v5169_v8, %v7991_v47  ;;  %v5172_v56 = vmul.f32 %v5170_v30, %v7997_v15  ;;  %v5146_v47 = vld [vmem:[#allocation3 + $0x20] ss:$0 sm:$0xff] }
0x11db   :  { %v5173_v48 = vmul.f32 %v5171_v18, %v5171_v18  ;;  %v5174_v58 = vmul.f32 %v5172_v56, %v5172_v56 }
0x11dd   :  { %v5175_v16 = vsel %vm5158_vm3, %v5173_v48, 0.0  ;;  %v5176_v31 = vsel %vm5158_vm3, %v5174_v58, 0.0 }
0x11de   :  { %v5177_v59 = vadd.f32 %v5176_v31, %v5175_v16 }
0x11e0   :  { %v5178_v57 = vrot.slane %v5177_v59, 4 }
0x11e2   :  { %v5179_v43 = vadd.f32 %v5178_v57, %v5177_v59 }
0x11e4   :  { %v5180_v62 = vrot.slane %v5179_v43, 2 }
0x11e6   :  { %v5181_v55 = vadd.f32 %v5180_v62, %v5179_v43 }
0x11e8   :  { %v5182_v61 = vrot.slane %v5181_v55, 1 }
0x11ea   :  { %v5183_v0 = vadd.f32 %v5182_v61, %v5181_v55 }
0x11ec   :  { %v5184_v40 = vmul.f32 0.083333336, %v5183_v0 }
0x11ee   :  { %v5185_v25 = vadd.f32 1e-05, %v5184_v40 }
0x11f0   :  { %6337 = vrsqrt.f32 %v5185_v25 }
0x11fa   :  { %v6338_v26 = vpop.eup %6337 }
0x11fb   :  { %v5187_v10 = vmul.f32 %v6338_v26, %v5169_v8  ;;  %v5188_v15 = vmul.f32 %v6338_v26, %v5170_v30 }
0x11fd   :  { %v5189_v39 = vmul.f32 %v5187_v10, %v5146_v47  ;;  %v5190_v20 = vmul.f32 %v5188_v15, %v5146_v47 }
0x11ff   :  { %v5191_v5 = vadd.f32 %v5189_v39, %v5147_v19  ;;  %v5192_v11 = vadd.f32 %v5190_v20, %v5147_v19 }
0x1201   :  { %v5193_v21 = vmax.f32 %v5191_v5, 0.0  ;;  %v5194_v13 = vmax.f32 %v5192_v11, 0.0 }
0x1203   :  { %5195 = vst.msk [vmem:[%s8047_s3] sm:$0xff] %vm5158_vm3, %v5193_v21  ;;  %5196 = vst.msk [vmem:[%s8047_s3 + $0x8] sm:$0xff] %vm5158_vm3, %v5194_v13 }
0x1204   :  { %5201 = vsyncpa [#allocation4], 1 }

</bundles_post_ra>
